<compile_context>
chip_gen: v6e
topology: v6e:2x2x1
jax: 0.10.0
libtpu: 0.0.40
codegen_flags: <defaults>
</compile_context>

<pallas_src>
import jax
import jax.numpy as jnp
import numpy as np
from jax import lax
from jax.experimental import pallas as pl
from jax.experimental.pallas import tpu as pltpu

BATCH_TILE = 128  # lane width; one lane per image


def _cnn_kernel(x_ref, w1_ref, b1_ref, w2_ref, b2_ref,
                fc1w_ref, fc1b_ref, fc2w_ref, fc2b_ref,
                logits_ref, feat_ref,
                s1_ref, h1_ref, s2_ref, fcin_ref):
    f32 = jnp.float32
    Bt = x_ref.shape[-1]

    # ---- conv1 (1->10, 3x3 valid) -> maxpool 2x2 -> relu  => h1_ref (10,13,13,Bt)
    def conv1_channel(c, carry):
        # Two row-halves keep the per-half accumulator small enough for vregs.
        for (r0, hgt, pr, po) in ((0, 14, 7, 0), (14, 12, 6, 7)):
            conv = jnp.zeros((hgt, 26, Bt), f32)
            for t in range(9):
                di, dj = divmod(t, 3)
                conv = conv + w1_ref[c * 9 + t] * x_ref[pl.ds(r0 + di, hgt),
                                                        pl.ds(dj, 26), :]
            rr = conv.reshape(pr, 2, 26, Bt)             # split H rows into pairs
            s1_ref[pl.ds(po, pr), :, :] = jnp.maximum(rr[:, 0], rr[:, 1])
        # column (sublane) pooling via stride-2 reads, bias (commutes with max), relu
        pooled = jnp.maximum(s1_ref[:, pl.ds(0, 13, stride=2), :],
                             s1_ref[:, pl.ds(1, 13, stride=2), :])   # (13,13,Bt)
        h1_ref[c] = jnp.maximum(pooled + b1_ref[c], 0.0)
        return carry

    lax.fori_loop(0, 10, conv1_channel, 0)

    # ---- conv2 (10->10, 3x3 valid) -> maxpool 2x2 (floor) -> relu => fcin (250,Bt)
    def conv2_channel(c, carry):
        def accum_k(k, acc):
            base = c * 90 + k * 9
            for t in range(9):
                di, dj = divmod(t, 3)
                acc = acc + w2_ref[base + t] * h1_ref[k, pl.ds(di, 11),
                                                      pl.ds(dj, 11), :]
            return acc

        conv = lax.fori_loop(0, 10, accum_k, jnp.zeros((11, 11, Bt), f32))
        rr = conv[0:10].reshape(5, 2, 11, Bt)            # floor pooling: drop row 10
        s2_ref[...] = jnp.maximum(rr[:, 0], rr[:, 1])    # (5, 11, Bt)
        pooled = jnp.maximum(s2_ref[:, pl.ds(0, 5, stride=2), :],
                             s2_ref[:, pl.ds(1, 5, stride=2), :])     # (5, 5, Bt)
        act = jnp.maximum(pooled + b2_ref[c], 0.0)       # (5, 5, Bt)
        # scatter into NCHW flatten order: row = c*25 + h*5 + w
        for h in range(5):
            fcin_ref[pl.ds(c * 25 + h * 5, 5), :] = act[h]
        return carry

    lax.fori_loop(0, 10, conv2_channel, 0)

    # ---- fc1 (250->50) + relu, fc2 (50->10): real MXU GEMMs, lane-dense outputs
    feat = jnp.dot(fc1w_ref[...], fcin_ref[...], preferred_element_type=f32)
    feat = jnp.maximum(feat + fc1b_ref[...], 0.0)        # (50, Bt)
    feat_ref[...] = feat
    logits_ref[...] = (jnp.dot(fc2w_ref[...], feat, preferred_element_type=f32)
                       + fc2b_ref[...])                  # (10, Bt)


def model_forward(x_nchw, params, batch_tile=BATCH_TILE):
    """params are torch-shaped; returns (logits (B,10), features (B,50))."""
    w1, b1, w2, b2, fc1w, fc1b, fc2w, fc2b = params
    B = x_nchw.shape[0]
    Bt = batch_tile
    Bp = ((B + Bt - 1) // Bt) * Bt

    # batch on the last (lane) axis; pad batch up to the tile size
    x_hwb = jnp.transpose(x_nchw[:, 0], (1, 2, 0)).astype(jnp.float32)  # (28,28,B)
    if Bp != B:
        x_hwb = jnp.pad(x_hwb, ((0, 0), (0, 0), (0, Bp - B)))

    # scalar conv weights/biases go to SMEM (flat, row-major == torch layout)
    w1_s = w1.reshape(-1).astype(jnp.float32)            # (90,)   c*9 + di*3 + dj
    w2_s = w2.reshape(-1).astype(jnp.float32)            # (900,)  c*90 + k*9 + di*3 + dj
    b1_s = b1.astype(jnp.float32)                        # (10,)
    b2_s = b2.astype(jnp.float32)                        # (10,)
    # fc weights: torch fc1.weight is already (50, 250) in (c,h,w) flatten order
    fc1w_m = fc1w.astype(jnp.float32)                    # (50, 250)
    fc1b_m = fc1b.reshape(50, 1).astype(jnp.float32)
    fc2w_m = fc2w.astype(jnp.float32)                    # (10, 50)
    fc2b_m = fc2b.reshape(10, 1).astype(jnp.float32)

    smem = pl.BlockSpec(memory_space=pltpu.MemorySpace.SMEM)

    logits_t, feats_t = pl.pallas_call(
        _cnn_kernel,
        out_shape=(jax.ShapeDtypeStruct((10, Bp), jnp.float32),
                   jax.ShapeDtypeStruct((50, Bp), jnp.float32)),
        grid=(Bp // Bt,),
        in_specs=[
            pl.BlockSpec((28, 28, Bt), lambda b: (0, 0, b)),   # x (H, W, batch)
            smem,                                              # w1 (90,)
            smem,                                              # b1 (10,)
            smem,                                              # w2 (900,)
            smem,                                              # b2 (10,)
            pl.BlockSpec((50, 250), lambda b: (0, 0)),         # fc1 weight
            pl.BlockSpec((50, 1), lambda b: (0, 0)),           # fc1 bias
            pl.BlockSpec((10, 50), lambda b: (0, 0)),          # fc2 weight
            pl.BlockSpec((10, 1), lambda b: (0, 0)),           # fc2 bias
        ],
        out_specs=(pl.BlockSpec((10, Bt), lambda b: (0, b)),   # logits (lane-dense)
                   pl.BlockSpec((50, Bt), lambda b: (0, b))),  # features (lane-dense)
        scratch_shapes=[
            pltpu.VMEM((13, 26, Bt), jnp.float32),     # s1: conv1 row-pooled temp
            pltpu.VMEM((10, 13, 13, Bt), jnp.float32),  # h1: pool1+relu activations
            pltpu.VMEM((5, 11, Bt), jnp.float32),      # s2: conv2 row-pooled temp
            pltpu.VMEM((250, Bt), jnp.float32),        # fcin: flattened fc1 input
        ],
        compiler_params=pltpu.CompilerParams(
            dimension_semantics=("parallel",),
            vmem_limit_bytes=32 * 1024 * 1024),
    )(x_hwb, w1_s, b1_s, w2_s, b2_s, fc1w_m, fc1b_m, fc2w_m, fc2b_m)

    logits = jnp.transpose(logits_t[:, :B], (1, 0))
    feats = jnp.transpose(feats_t[:, :B], (1, 0))
    return logits, feats


def ref_forward(x_nchw, params):
    """Pure-JAX reference with exact PyTorch (NCHW) semantics."""
    w1, b1, w2, b2, fc1w, fc1b, fc2w, fc2b = params
    dn = ('NCHW', 'OIHW', 'NCHW')
    hp = lax.Precision.HIGHEST
    c1 = lax.conv_general_dilated(x_nchw, w1, (1, 1), 'VALID',
                                  dimension_numbers=dn,
                                  precision=hp) + b1.reshape(1, -1, 1, 1)
    p1 = lax.reduce_window(c1, -jnp.inf, lax.max, (1, 1, 2, 2), (1, 1, 2, 2), 'VALID')
    h1 = jnp.maximum(p1, 0.0)
    c2 = lax.conv_general_dilated(h1, w2, (1, 1), 'VALID',
                                  dimension_numbers=dn,
                                  precision=hp) + b2.reshape(1, -1, 1, 1)
    p2 = lax.reduce_window(c2, -jnp.inf, lax.max, (1, 1, 2, 2), (1, 1, 2, 2), 'VALID')
    h2 = jnp.maximum(p2, 0.0)
    flat = h2.reshape(h2.shape[0], -1)                   # NCHW flatten == .view(-1, 250)
    feats = jnp.maximum(jnp.dot(flat, fc1w.T, precision=hp) + fc1b, 0.0)
    logits = jnp.dot(feats, fc2w.T, precision=hp) + fc2b
    return logits, feats


if __name__ == "__main__":
    key = jax.random.PRNGKey(0)
    ks = jax.random.split(key, 9)
    B = 2
    # Shapes are fixed by the module (28x28 input -> 250-dim flatten).
    x = jax.random.normal(ks[0], (B, 1, 28, 28), jnp.float32)

    # Deterministic synthetic parameters with PyTorch shapes.
    w1 = jax.random.normal(ks[1], (10, 1, 3, 3), jnp.float32) * 0.2
    b1 = jax.random.normal(ks[2], (10,), jnp.float32) * 0.1
    w2 = jax.random.normal(ks[3], (10, 10, 3, 3), jnp.float32) * 0.1
    b2 = jax.random.normal(ks[4], (10,), jnp.float32) * 0.1
    fc1w = jax.random.normal(ks[5], (50, 250), jnp.float32) * 0.05
    fc1b = jax.random.normal(ks[6], (50,), jnp.float32) * 0.1
    fc2w = jax.random.normal(ks[7], (10, 50), jnp.float32) * 0.1
    fc2b = jax.random.normal(ks[8], (10,), jnp.float32) * 0.1
    params = (w1, b1, w2, b2, fc1w, fc1b, fc2w, fc2b)

    logits, feats = model_forward(x, params)
    jax.block_until_ready((logits, feats))

    ref_logits, ref_feats = ref_forward(x, params)
    assert logits.shape == (B, 10) and feats.shape == (B, 50)
    np.testing.assert_allclose(np.asarray(logits), np.asarray(ref_logits),
                               rtol=2e-3, atol=2e-3)
    np.testing.assert_allclose(np.asarray(feats), np.asarray(ref_feats),
                               rtol=2e-3, atol=2e-3)
    print("KERNEL_OK")
</pallas_src>

<mosaic_0001>
module attributes {stable_mosaic.version = 11 : i64} {
  func.func @_cnn_kernel(%arg0: i32, %arg1: memref<28x28x128xf32, #tpu.memory_space<vmem>>, %arg2: memref<90xf32, #tpu.memory_space<smem>>, %arg3: memref<10xf32, #tpu.memory_space<smem>>, %arg4: memref<900xf32, #tpu.memory_space<smem>>, %arg5: memref<10xf32, #tpu.memory_space<smem>>, %arg6: memref<50x250xf32, #tpu.memory_space<vmem>>, %arg7: memref<50x1xf32, #tpu.memory_space<vmem>>, %arg8: memref<10x50xf32, #tpu.memory_space<vmem>>, %arg9: memref<10x1xf32, #tpu.memory_space<vmem>>, %arg10: memref<10x128xf32, #tpu.memory_space<vmem>>, %arg11: memref<50x128xf32, #tpu.memory_space<vmem>>, %arg12: memref<13x26x128xf32, #tpu.memory_space<vmem>>, %arg13: memref<10x13x13x128xf32, #tpu.memory_space<vmem>>, %arg14: memref<5x11x128xf32, #tpu.memory_space<vmem>>, %arg15: memref<250x128xf32, #tpu.memory_space<vmem>>) attributes {dimension_semantics = [#tpu.dimension_semantics<parallel>], iteration_bounds = array<i64: 1>, scalar_prefetch = 0 : i64, scratch_operands = 4 : i64, tpu.core_type = #tpu.core_type<tc>, window_params = [{transform_indices = @transform_0, window_bounds = array<i64: 28, 28, 128>}, {transform_indices = @transform_1, window_bounds = array<i64: 90>}, {transform_indices = @transform_2, window_bounds = array<i64: 10>}, {transform_indices = @transform_3, window_bounds = array<i64: 900>}, {transform_indices = @transform_4, window_bounds = array<i64: 10>}, {pipeline_mode = #tpu.pipeline_mode<synchronous>, transform_indices = @transform_5, window_bounds = array<i64: 50, 250>}, {pipeline_mode = #tpu.pipeline_mode<synchronous>, transform_indices = @transform_6, window_bounds = array<i64: 50, 1>}, {pipeline_mode = #tpu.pipeline_mode<synchronous>, transform_indices = @transform_7, window_bounds = array<i64: 10, 50>}, {pipeline_mode = #tpu.pipeline_mode<synchronous>, transform_indices = @transform_8, window_bounds = array<i64: 10, 1>}, {transform_indices = @transform_9, window_bounds = array<i64: 10, 128>}, {transform_indices = @transform_10, window_bounds = array<i64: 50, 128>}]} {
    %c0_i32 = arith.constant 0 : i32
    %c10_i32 = arith.constant 10 : i32
    %0 = arith.addi %c0_i32, %c10_i32 : i32
    %c1_i32 = arith.constant 1 : i32
    scf.for %arg16 = %c0_i32 to %0 step %c1_i32  : i32 {
      %cst_20 = arith.constant 0.000000e+00 : f32
      %17 = vector.broadcast %cst_20 : f32 to vector<14x26x128xf32>
      %c9_i32 = arith.constant 9 : i32
      %18 = arith.muli %arg16, %c9_i32 : i32
      %c0_i32_21 = arith.constant 0 : i32
      %19 = arith.addi %18, %c0_i32_21 : i32
      %20 = arith.index_cast %19 : i32 to index
      %21 = memref.load %arg2[%20] : memref<90xf32, #tpu.memory_space<smem>>
      %c0_22 = arith.constant 0 : index
      %c0_23 = arith.constant 0 : index
      %c0_24 = arith.constant 0 : index
      %22 = vector.load %arg1[%c0_22, %c0_23, %c0_24] : memref<28x28x128xf32, #tpu.memory_space<vmem>>, vector<14x26x128xf32>
      %23 = vector.broadcast %21 : f32 to vector<14x26x128xf32>
      %24 = arith.mulf %23, %22 : vector<14x26x128xf32>
      %25 = arith.addf %17, %24 : vector<14x26x128xf32>
      %c9_i32_25 = arith.constant 9 : i32
      %26 = arith.muli %arg16, %c9_i32_25 : i32
      %c1_i32_26 = arith.constant 1 : i32
      %27 = arith.addi %26, %c1_i32_26 : i32
      %28 = arith.index_cast %27 : i32 to index
      %29 = memref.load %arg2[%28] : memref<90xf32, #tpu.memory_space<smem>>
      %c0_27 = arith.constant 0 : index
      %c1 = arith.constant 1 : index
      %c0_28 = arith.constant 0 : index
      %30 = vector.load %arg1[%c0_27, %c1, %c0_28] : memref<28x28x128xf32, #tpu.memory_space<vmem>>, vector<14x26x128xf32>
      %31 = vector.broadcast %29 : f32 to vector<14x26x128xf32>
      %32 = arith.mulf %31, %30 : vector<14x26x128xf32>
      %33 = arith.addf %25, %32 : vector<14x26x128xf32>
      %c9_i32_29 = arith.constant 9 : i32
      %34 = arith.muli %arg16, %c9_i32_29 : i32
      %c2_i32 = arith.constant 2 : i32
      %35 = arith.addi %34, %c2_i32 : i32
      %36 = arith.index_cast %35 : i32 to index
      %37 = memref.load %arg2[%36] : memref<90xf32, #tpu.memory_space<smem>>
      %c0_30 = arith.constant 0 : index
      %c2 = arith.constant 2 : index
      %c0_31 = arith.constant 0 : index
      %38 = vector.load %arg1[%c0_30, %c2, %c0_31] : memref<28x28x128xf32, #tpu.memory_space<vmem>>, vector<14x26x128xf32>
      %39 = vector.broadcast %37 : f32 to vector<14x26x128xf32>
      %40 = arith.mulf %39, %38 : vector<14x26x128xf32>
      %41 = arith.addf %33, %40 : vector<14x26x128xf32>
      %c9_i32_32 = arith.constant 9 : i32
      %42 = arith.muli %arg16, %c9_i32_32 : i32
      %c3_i32 = arith.constant 3 : i32
      %43 = arith.addi %42, %c3_i32 : i32
      %44 = arith.index_cast %43 : i32 to index
      %45 = memref.load %arg2[%44] : memref<90xf32, #tpu.memory_space<smem>>
      %c1_33 = arith.constant 1 : index
      %c0_34 = arith.constant 0 : index
      %c0_35 = arith.constant 0 : index
      %46 = vector.load %arg1[%c1_33, %c0_34, %c0_35] : memref<28x28x128xf32, #tpu.memory_space<vmem>>, vector<14x26x128xf32>
      %47 = vector.broadcast %45 : f32 to vector<14x26x128xf32>
      %48 = arith.mulf %47, %46 : vector<14x26x128xf32>
      %49 = arith.addf %41, %48 : vector<14x26x128xf32>
      %c9_i32_36 = arith.constant 9 : i32
      %50 = arith.muli %arg16, %c9_i32_36 : i32
      %c4_i32 = arith.constant 4 : i32
      %51 = arith.addi %50, %c4_i32 : i32
      %52 = arith.index_cast %51 : i32 to index
      %53 = memref.load %arg2[%52] : memref<90xf32, #tpu.memory_space<smem>>
      %c1_37 = arith.constant 1 : index
      %c1_38 = arith.constant 1 : index
      %c0_39 = arith.constant 0 : index
      %54 = vector.load %arg1[%c1_37, %c1_38, %c0_39] : memref<28x28x128xf32, #tpu.memory_space<vmem>>, vector<14x26x128xf32>
      %55 = vector.broadcast %53 : f32 to vector<14x26x128xf32>
      %56 = arith.mulf %55, %54 : vector<14x26x128xf32>
      %57 = arith.addf %49, %56 : vector<14x26x128xf32>
      %c9_i32_40 = arith.constant 9 : i32
      %58 = arith.muli %arg16, %c9_i32_40 : i32
      %c5_i32 = arith.constant 5 : i32
      %59 = arith.addi %58, %c5_i32 : i32
      %60 = arith.index_cast %59 : i32 to index
      %61 = memref.load %arg2[%60] : memref<90xf32, #tpu.memory_space<smem>>
      %c1_41 = arith.constant 1 : index
      %c2_42 = arith.constant 2 : index
      %c0_43 = arith.constant 0 : index
      %62 = vector.load %arg1[%c1_41, %c2_42, %c0_43] : memref<28x28x128xf32, #tpu.memory_space<vmem>>, vector<14x26x128xf32>
      %63 = vector.broadcast %61 : f32 to vector<14x26x128xf32>
      %64 = arith.mulf %63, %62 : vector<14x26x128xf32>
      %65 = arith.addf %57, %64 : vector<14x26x128xf32>
      %c9_i32_44 = arith.constant 9 : i32
      %66 = arith.muli %arg16, %c9_i32_44 : i32
      %c6_i32 = arith.constant 6 : i32
      %67 = arith.addi %66, %c6_i32 : i32
      %68 = arith.index_cast %67 : i32 to index
      %69 = memref.load %arg2[%68] : memref<90xf32, #tpu.memory_space<smem>>
      %c2_45 = arith.constant 2 : index
      %c0_46 = arith.constant 0 : index
      %c0_47 = arith.constant 0 : index
      %70 = vector.load %arg1[%c2_45, %c0_46, %c0_47] : memref<28x28x128xf32, #tpu.memory_space<vmem>>, vector<14x26x128xf32>
      %71 = vector.broadcast %69 : f32 to vector<14x26x128xf32>
      %72 = arith.mulf %71, %70 : vector<14x26x128xf32>
      %73 = arith.addf %65, %72 : vector<14x26x128xf32>
      %c9_i32_48 = arith.constant 9 : i32
      %74 = arith.muli %arg16, %c9_i32_48 : i32
      %c7_i32 = arith.constant 7 : i32
      %75 = arith.addi %74, %c7_i32 : i32
      %76 = arith.index_cast %75 : i32 to index
      %77 = memref.load %arg2[%76] : memref<90xf32, #tpu.memory_space<smem>>
      %c2_49 = arith.constant 2 : index
      %c1_50 = arith.constant 1 : index
      %c0_51 = arith.constant 0 : index
      %78 = vector.load %arg1[%c2_49, %c1_50, %c0_51] : memref<28x28x128xf32, #tpu.memory_space<vmem>>, vector<14x26x128xf32>
      %79 = vector.broadcast %77 : f32 to vector<14x26x128xf32>
      %80 = arith.mulf %79, %78 : vector<14x26x128xf32>
      %81 = arith.addf %73, %80 : vector<14x26x128xf32>
      %c9_i32_52 = arith.constant 9 : i32
      %82 = arith.muli %arg16, %c9_i32_52 : i32
      %c8_i32 = arith.constant 8 : i32
      %83 = arith.addi %82, %c8_i32 : i32
      %84 = arith.index_cast %83 : i32 to index
      %85 = memref.load %arg2[%84] : memref<90xf32, #tpu.memory_space<smem>>
      %c2_53 = arith.constant 2 : index
      %c2_54 = arith.constant 2 : index
      %c0_55 = arith.constant 0 : index
      %86 = vector.load %arg1[%c2_53, %c2_54, %c0_55] : memref<28x28x128xf32, #tpu.memory_space<vmem>>, vector<14x26x128xf32>
      %87 = vector.broadcast %85 : f32 to vector<14x26x128xf32>
      %88 = arith.mulf %87, %86 : vector<14x26x128xf32>
      %89 = arith.addf %81, %88 : vector<14x26x128xf32>
      %90 = vector.shape_cast %89 : vector<14x26x128xf32> to vector<7x2x26x128xf32>
      %91 = vector.extract_strided_slice %90 {offsets = [0, 0, 0, 0], sizes = [7, 1, 26, 128], strides = [1, 1, 1, 1]} : vector<7x2x26x128xf32> to vector<7x1x26x128xf32>
      %92 = vector.shape_cast %91 : vector<7x1x26x128xf32> to vector<7x26x128xf32>
      %93 = vector.extract_strided_slice %90 {offsets = [0, 1, 0, 0], sizes = [7, 1, 26, 128], strides = [1, 1, 1, 1]} : vector<7x2x26x128xf32> to vector<7x1x26x128xf32>
      %94 = vector.shape_cast %93 : vector<7x1x26x128xf32> to vector<7x26x128xf32>
      %95 = arith.maximumf %92, %94 : vector<7x26x128xf32>
      %c0_56 = arith.constant 0 : index
      %c0_57 = arith.constant 0 : index
      %c0_58 = arith.constant 0 : index
      %96 = vector.load %arg12[%c0_56, %c0_57, %c0_58] : memref<13x26x128xf32, #tpu.memory_space<vmem>>, vector<7x26x128xf32>
      tpu.vector_store %arg12[%c0_56, %c0_57, %c0_58], %95 {strides = array<i32>} : memref<13x26x128xf32, #tpu.memory_space<vmem>>, vector<7x26x128xf32>,
      %cst_59 = arith.constant 0.000000e+00 : f32
      %97 = vector.broadcast %cst_59 : f32 to vector<12x26x128xf32>
      %c9_i32_60 = arith.constant 9 : i32
      %98 = arith.muli %arg16, %c9_i32_60 : i32
      %c0_i32_61 = arith.constant 0 : i32
      %99 = arith.addi %98, %c0_i32_61 : i32
      %100 = arith.index_cast %99 : i32 to index
      %101 = memref.load %arg2[%100] : memref<90xf32, #tpu.memory_space<smem>>
      %c14 = arith.constant 14 : index
      %c0_62 = arith.constant 0 : index
      %c0_63 = arith.constant 0 : index
      %102 = vector.load %arg1[%c14, %c0_62, %c0_63] : memref<28x28x128xf32, #tpu.memory_space<vmem>>, vector<12x26x128xf32>
      %103 = vector.broadcast %101 : f32 to vector<12x26x128xf32>
      %104 = arith.mulf %103, %102 : vector<12x26x128xf32>
      %105 = arith.addf %97, %104 : vector<12x26x128xf32>
      %c9_i32_64 = arith.constant 9 : i32
      %106 = arith.muli %arg16, %c9_i32_64 : i32
      %c1_i32_65 = arith.constant 1 : i32
      %107 = arith.addi %106, %c1_i32_65 : i32
      %108 = arith.index_cast %107 : i32 to index
      %109 = memref.load %arg2[%108] : memref<90xf32, #tpu.memory_space<smem>>
      %c14_66 = arith.constant 14 : index
      %c1_67 = arith.constant 1 : index
      %c0_68 = arith.constant 0 : index
      %110 = vector.load %arg1[%c14_66, %c1_67, %c0_68] : memref<28x28x128xf32, #tpu.memory_space<vmem>>, vector<12x26x128xf32>
      %111 = vector.broadcast %109 : f32 to vector<12x26x128xf32>
      %112 = arith.mulf %111, %110 : vector<12x26x128xf32>
      %113 = arith.addf %105, %112 : vector<12x26x128xf32>
      %c9_i32_69 = arith.constant 9 : i32
      %114 = arith.muli %arg16, %c9_i32_69 : i32
      %c2_i32_70 = arith.constant 2 : i32
      %115 = arith.addi %114, %c2_i32_70 : i32
      %116 = arith.index_cast %115 : i32 to index
      %117 = memref.load %arg2[%116] : memref<90xf32, #tpu.memory_space<smem>>
      %c14_71 = arith.constant 14 : index
      %c2_72 = arith.constant 2 : index
      %c0_73 = arith.constant 0 : index
      %118 = vector.load %arg1[%c14_71, %c2_72, %c0_73] : memref<28x28x128xf32, #tpu.memory_space<vmem>>, vector<12x26x128xf32>
      %119 = vector.broadcast %117 : f32 to vector<12x26x128xf32>
      %120 = arith.mulf %119, %118 : vector<12x26x128xf32>
      %121 = arith.addf %113, %120 : vector<12x26x128xf32>
      %c9_i32_74 = arith.constant 9 : i32
      %122 = arith.muli %arg16, %c9_i32_74 : i32
      %c3_i32_75 = arith.constant 3 : i32
      %123 = arith.addi %122, %c3_i32_75 : i32
      %124 = arith.index_cast %123 : i32 to index
      %125 = memref.load %arg2[%124] : memref<90xf32, #tpu.memory_space<smem>>
      %c15 = arith.constant 15 : index
      %c0_76 = arith.constant 0 : index
      %c0_77 = arith.constant 0 : index
      %126 = vector.load %arg1[%c15, %c0_76, %c0_77] : memref<28x28x128xf32, #tpu.memory_space<vmem>>, vector<12x26x128xf32>
      %127 = vector.broadcast %125 : f32 to vector<12x26x128xf32>
      %128 = arith.mulf %127, %126 : vector<12x26x128xf32>
      %129 = arith.addf %121, %128 : vector<12x26x128xf32>
      %c9_i32_78 = arith.constant 9 : i32
      %130 = arith.muli %arg16, %c9_i32_78 : i32
      %c4_i32_79 = arith.constant 4 : i32
      %131 = arith.addi %130, %c4_i32_79 : i32
      %132 = arith.index_cast %131 : i32 to index
      %133 = memref.load %arg2[%132] : memref<90xf32, #tpu.memory_space<smem>>
      %c15_80 = arith.constant 15 : index
      %c1_81 = arith.constant 1 : index
      %c0_82 = arith.constant 0 : index
      %134 = vector.load %arg1[%c15_80, %c1_81, %c0_82] : memref<28x28x128xf32, #tpu.memory_space<vmem>>, vector<12x26x128xf32>
      %135 = vector.broadcast %133 : f32 to vector<12x26x128xf32>
      %136 = arith.mulf %135, %134 : vector<12x26x128xf32>
      %137 = arith.addf %129, %136 : vector<12x26x128xf32>
      %c9_i32_83 = arith.constant 9 : i32
      %138 = arith.muli %arg16, %c9_i32_83 : i32
      %c5_i32_84 = arith.constant 5 : i32
      %139 = arith.addi %138, %c5_i32_84 : i32
      %140 = arith.index_cast %139 : i32 to index
      %141 = memref.load %arg2[%140] : memref<90xf32, #tpu.memory_space<smem>>
      %c15_85 = arith.constant 15 : index
      %c2_86 = arith.constant 2 : index
      %c0_87 = arith.constant 0 : index
      %142 = vector.load %arg1[%c15_85, %c2_86, %c0_87] : memref<28x28x128xf32, #tpu.memory_space<vmem>>, vector<12x26x128xf32>
      %143 = vector.broadcast %141 : f32 to vector<12x26x128xf32>
      %144 = arith.mulf %143, %142 : vector<12x26x128xf32>
      %145 = arith.addf %137, %144 : vector<12x26x128xf32>
      %c9_i32_88 = arith.constant 9 : i32
      %146 = arith.muli %arg16, %c9_i32_88 : i32
      %c6_i32_89 = arith.constant 6 : i32
      %147 = arith.addi %146, %c6_i32_89 : i32
      %148 = arith.index_cast %147 : i32 to index
      %149 = memref.load %arg2[%148] : memref<90xf32, #tpu.memory_space<smem>>
      %c16 = arith.constant 16 : index
      %c0_90 = arith.constant 0 : index
      %c0_91 = arith.constant 0 : index
      %150 = vector.load %arg1[%c16, %c0_90, %c0_91] : memref<28x28x128xf32, #tpu.memory_space<vmem>>, vector<12x26x128xf32>
      %151 = vector.broadcast %149 : f32 to vector<12x26x128xf32>
      %152 = arith.mulf %151, %150 : vector<12x26x128xf32>
      %153 = arith.addf %145, %152 : vector<12x26x128xf32>
      %c9_i32_92 = arith.constant 9 : i32
      %154 = arith.muli %arg16, %c9_i32_92 : i32
      %c7_i32_93 = arith.constant 7 : i32
      %155 = arith.addi %154, %c7_i32_93 : i32
      %156 = arith.index_cast %155 : i32 to index
      %157 = memref.load %arg2[%156] : memref<90xf32, #tpu.memory_space<smem>>
      %c16_94 = arith.constant 16 : index
      %c1_95 = arith.constant 1 : index
      %c0_96 = arith.constant 0 : index
      %158 = vector.load %arg1[%c16_94, %c1_95, %c0_96] : memref<28x28x128xf32, #tpu.memory_space<vmem>>, vector<12x26x128xf32>
      %159 = vector.broadcast %157 : f32 to vector<12x26x128xf32>
      %160 = arith.mulf %159, %158 : vector<12x26x128xf32>
      %161 = arith.addf %153, %160 : vector<12x26x128xf32>
      %c9_i32_97 = arith.constant 9 : i32
      %162 = arith.muli %arg16, %c9_i32_97 : i32
      %c8_i32_98 = arith.constant 8 : i32
      %163 = arith.addi %162, %c8_i32_98 : i32
      %164 = arith.index_cast %163 : i32 to index
      %165 = memref.load %arg2[%164] : memref<90xf32, #tpu.memory_space<smem>>
      %c16_99 = arith.constant 16 : index
      %c2_100 = arith.constant 2 : index
      %c0_101 = arith.constant 0 : index
      %166 = vector.load %arg1[%c16_99, %c2_100, %c0_101] : memref<28x28x128xf32, #tpu.memory_space<vmem>>, vector<12x26x128xf32>
      %167 = vector.broadcast %165 : f32 to vector<12x26x128xf32>
      %168 = arith.mulf %167, %166 : vector<12x26x128xf32>
      %169 = arith.addf %161, %168 : vector<12x26x128xf32>
      %170 = vector.shape_cast %169 : vector<12x26x128xf32> to vector<6x2x26x128xf32>
      %171 = vector.extract_strided_slice %170 {offsets = [0, 0, 0, 0], sizes = [6, 1, 26, 128], strides = [1, 1, 1, 1]} : vector<6x2x26x128xf32> to vector<6x1x26x128xf32>
      %172 = vector.shape_cast %171 : vector<6x1x26x128xf32> to vector<6x26x128xf32>
      %173 = vector.extract_strided_slice %170 {offsets = [0, 1, 0, 0], sizes = [6, 1, 26, 128], strides = [1, 1, 1, 1]} : vector<6x2x26x128xf32> to vector<6x1x26x128xf32>
      %174 = vector.shape_cast %173 : vector<6x1x26x128xf32> to vector<6x26x128xf32>
      %175 = arith.maximumf %172, %174 : vector<6x26x128xf32>
      %c7 = arith.constant 7 : index
      %c0_102 = arith.constant 0 : index
      %c0_103 = arith.constant 0 : index
      %176 = vector.load %arg12[%c7, %c0_102, %c0_103] : memref<13x26x128xf32, #tpu.memory_space<vmem>>, vector<6x26x128xf32>
      tpu.vector_store %arg12[%c7, %c0_102, %c0_103], %175 {strides = array<i32>} : memref<13x26x128xf32, #tpu.memory_space<vmem>>, vector<6x26x128xf32>,
      %c0_104 = arith.constant 0 : index
      %c0_105 = arith.constant 0 : index
      %c0_106 = arith.constant 0 : index
      %177 = tpu.strided_load %arg12[%c0_104, %c0_105, %c0_106] {strides = array<i32: 1, 2, 1>} : memref<13x26x128xf32, #tpu.memory_space<vmem>>, vector<13x13x128xf32>
      %c0_107 = arith.constant 0 : index
      %c1_108 = arith.constant 1 : index
      %c0_109 = arith.constant 0 : index
      %178 = tpu.strided_load %arg12[%c0_107, %c1_108, %c0_109] {strides = array<i32: 1, 2, 1>} : memref<13x26x128xf32, #tpu.memory_space<vmem>>, vector<13x13x128xf32>
      %179 = arith.maximumf %177, %178 : vector<13x13x128xf32>
      %180 = arith.index_cast %arg16 : i32 to index
      %181 = memref.load %arg3[%180] : memref<10xf32, #tpu.memory_space<smem>>
      %182 = vector.broadcast %181 : f32 to vector<13x13x128xf32>
      %183 = arith.addf %179, %182 : vector<13x13x128xf32>
      %cst_110 = arith.constant 0.000000e+00 : f32
      %184 = vector.broadcast %cst_110 : f32 to vector<13x13x128xf32>
      %185 = arith.maximumf %183, %184 : vector<13x13x128xf32>
      %186 = arith.index_cast %arg16 : i32 to index
      %c0_111 = arith.constant 0 : index
      %c0_112 = arith.constant 0 : index
      %c0_113 = arith.constant 0 : index
      %187 = vector.load %arg13[%186, %c0_111, %c0_112, %c0_113] : memref<10x13x13x128xf32, #tpu.memory_space<vmem>>, vector<1x13x13x128xf32>
      %188 = vector.shape_cast %187 : vector<1x13x13x128xf32> to vector<13x13x128xf32>
      %189 = vector.shape_cast %185 : vector<13x13x128xf32> to vector<1x13x13x128xf32>
      tpu.vector_store %arg13[%186, %c0_111, %c0_112, %c0_113], %189 {strides = array<i32>} : memref<10x13x13x128xf32, #tpu.memory_space<vmem>>, vector<1x13x13x128xf32>,
    }
    %c10_i32_0 = arith.constant 10 : i32
    %c0_i32_1 = arith.constant 0 : i32
    %c10_i32_2 = arith.constant 10 : i32
    %1 = arith.addi %c0_i32_1, %c10_i32_2 : i32
    %c1_i32_3 = arith.constant 1 : i32
    scf.for %arg16 = %c0_i32_1 to %1 step %c1_i32_3  : i32 {
      %cst_20 = arith.constant 0.000000e+00 : f32
      %17 = vector.broadcast %cst_20 : f32 to vector<11x11x128xf32>
      %c0_i32_21 = arith.constant 0 : i32
      %c10_i32_22 = arith.constant 10 : i32
      %18 = arith.addi %c0_i32_21, %c10_i32_22 : i32
      %c1_i32_23 = arith.constant 1 : i32
      %19 = scf.for %arg17 = %c0_i32_21 to %18 step %c1_i32_23 iter_args(%arg18 = %17) -> (vector<11x11x128xf32>)  : i32 {
        %c90_i32 = arith.constant 90 : i32
        %67 = arith.muli %arg16, %c90_i32 : i32
        %c9_i32 = arith.constant 9 : i32
        %68 = arith.muli %arg17, %c9_i32 : i32
        %69 = arith.addi %67, %68 : i32
        %c0_i32_45 = arith.constant 0 : i32
        %70 = arith.addi %69, %c0_i32_45 : i32
        %71 = arith.index_cast %70 : i32 to index
        %72 = memref.load %arg4[%71] : memref<900xf32, #tpu.memory_space<smem>>
        %73 = arith.index_cast %arg17 : i32 to index
        %c0_46 = arith.constant 0 : index
        %c0_47 = arith.constant 0 : index
        %c0_48 = arith.constant 0 : index
        %74 = vector.load %arg13[%73, %c0_46, %c0_47, %c0_48] : memref<10x13x13x128xf32, #tpu.memory_space<vmem>>, vector<1x11x11x128xf32>
        %75 = vector.shape_cast %74 : vector<1x11x11x128xf32> to vector<11x11x128xf32>
        %76 = vector.broadcast %72 : f32 to vector<11x11x128xf32>
        %77 = arith.mulf %76, %75 : vector<11x11x128xf32>
        %78 = arith.addf %arg18, %77 : vector<11x11x128xf32>
        %c1_i32_49 = arith.constant 1 : i32
        %79 = arith.addi %69, %c1_i32_49 : i32
        %80 = arith.index_cast %79 : i32 to index
        %81 = memref.load %arg4[%80] : memref<900xf32, #tpu.memory_space<smem>>
        %82 = arith.index_cast %arg17 : i32 to index
        %c0_50 = arith.constant 0 : index
        %c1_51 = arith.constant 1 : index
        %c0_52 = arith.constant 0 : index
        %83 = vector.load %arg13[%82, %c0_50, %c1_51, %c0_52] : memref<10x13x13x128xf32, #tpu.memory_space<vmem>>, vector<1x11x11x128xf32>
        %84 = vector.shape_cast %83 : vector<1x11x11x128xf32> to vector<11x11x128xf32>
        %85 = vector.broadcast %81 : f32 to vector<11x11x128xf32>
        %86 = arith.mulf %85, %84 : vector<11x11x128xf32>
        %87 = arith.addf %78, %86 : vector<11x11x128xf32>
        %c2_i32 = arith.constant 2 : i32
        %88 = arith.addi %69, %c2_i32 : i32
        %89 = arith.index_cast %88 : i32 to index
        %90 = memref.load %arg4[%89] : memref<900xf32, #tpu.memory_space<smem>>
        %91 = arith.index_cast %arg17 : i32 to index
        %c0_53 = arith.constant 0 : index
        %c2 = arith.constant 2 : index
        %c0_54 = arith.constant 0 : index
        %92 = vector.load %arg13[%91, %c0_53, %c2, %c0_54] : memref<10x13x13x128xf32, #tpu.memory_space<vmem>>, vector<1x11x11x128xf32>
        %93 = vector.shape_cast %92 : vector<1x11x11x128xf32> to vector<11x11x128xf32>
        %94 = vector.broadcast %90 : f32 to vector<11x11x128xf32>
        %95 = arith.mulf %94, %93 : vector<11x11x128xf32>
        %96 = arith.addf %87, %95 : vector<11x11x128xf32>
        %c3_i32 = arith.constant 3 : i32
        %97 = arith.addi %69, %c3_i32 : i32
        %98 = arith.index_cast %97 : i32 to index
        %99 = memref.load %arg4[%98] : memref<900xf32, #tpu.memory_space<smem>>
        %100 = arith.index_cast %arg17 : i32 to index
        %c1_55 = arith.constant 1 : index
        %c0_56 = arith.constant 0 : index
        %c0_57 = arith.constant 0 : index
        %101 = vector.load %arg13[%100, %c1_55, %c0_56, %c0_57] : memref<10x13x13x128xf32, #tpu.memory_space<vmem>>, vector<1x11x11x128xf32>
        %102 = vector.shape_cast %101 : vector<1x11x11x128xf32> to vector<11x11x128xf32>
        %103 = vector.broadcast %99 : f32 to vector<11x11x128xf32>
        %104 = arith.mulf %103, %102 : vector<11x11x128xf32>
        %105 = arith.addf %96, %104 : vector<11x11x128xf32>
        %c4_i32 = arith.constant 4 : i32
        %106 = arith.addi %69, %c4_i32 : i32
        %107 = arith.index_cast %106 : i32 to index
        %108 = memref.load %arg4[%107] : memref<900xf32, #tpu.memory_space<smem>>
        %109 = arith.index_cast %arg17 : i32 to index
        %c1_58 = arith.constant 1 : index
        %c1_59 = arith.constant 1 : index
        %c0_60 = arith.constant 0 : index
        %110 = vector.load %arg13[%109, %c1_58, %c1_59, %c0_60] : memref<10x13x13x128xf32, #tpu.memory_space<vmem>>, vector<1x11x11x128xf32>
        %111 = vector.shape_cast %110 : vector<1x11x11x128xf32> to vector<11x11x128xf32>
        %112 = vector.broadcast %108 : f32 to vector<11x11x128xf32>
        %113 = arith.mulf %112, %111 : vector<11x11x128xf32>
        %114 = arith.addf %105, %113 : vector<11x11x128xf32>
        %c5_i32_61 = arith.constant 5 : i32
        %115 = arith.addi %69, %c5_i32_61 : i32
        %116 = arith.index_cast %115 : i32 to index
        %117 = memref.load %arg4[%116] : memref<900xf32, #tpu.memory_space<smem>>
        %118 = arith.index_cast %arg17 : i32 to index
        %c1_62 = arith.constant 1 : index
        %c2_63 = arith.constant 2 : index
        %c0_64 = arith.constant 0 : index
        %119 = vector.load %arg13[%118, %c1_62, %c2_63, %c0_64] : memref<10x13x13x128xf32, #tpu.memory_space<vmem>>, vector<1x11x11x128xf32>
        %120 = vector.shape_cast %119 : vector<1x11x11x128xf32> to vector<11x11x128xf32>
        %121 = vector.broadcast %117 : f32 to vector<11x11x128xf32>
        %122 = arith.mulf %121, %120 : vector<11x11x128xf32>
        %123 = arith.addf %114, %122 : vector<11x11x128xf32>
        %c6_i32 = arith.constant 6 : i32
        %124 = arith.addi %69, %c6_i32 : i32
        %125 = arith.index_cast %124 : i32 to index
        %126 = memref.load %arg4[%125] : memref<900xf32, #tpu.memory_space<smem>>
        %127 = arith.index_cast %arg17 : i32 to index
        %c2_65 = arith.constant 2 : index
        %c0_66 = arith.constant 0 : index
        %c0_67 = arith.constant 0 : index
        %128 = vector.load %arg13[%127, %c2_65, %c0_66, %c0_67] : memref<10x13x13x128xf32, #tpu.memory_space<vmem>>, vector<1x11x11x128xf32>
        %129 = vector.shape_cast %128 : vector<1x11x11x128xf32> to vector<11x11x128xf32>
        %130 = vector.broadcast %126 : f32 to vector<11x11x128xf32>
        %131 = arith.mulf %130, %129 : vector<11x11x128xf32>
        %132 = arith.addf %123, %131 : vector<11x11x128xf32>
        %c7_i32 = arith.constant 7 : i32
        %133 = arith.addi %69, %c7_i32 : i32
        %134 = arith.index_cast %133 : i32 to index
        %135 = memref.load %arg4[%134] : memref<900xf32, #tpu.memory_space<smem>>
        %136 = arith.index_cast %arg17 : i32 to index
        %c2_68 = arith.constant 2 : index
        %c1_69 = arith.constant 1 : index
        %c0_70 = arith.constant 0 : index
        %137 = vector.load %arg13[%136, %c2_68, %c1_69, %c0_70] : memref<10x13x13x128xf32, #tpu.memory_space<vmem>>, vector<1x11x11x128xf32>
        %138 = vector.shape_cast %137 : vector<1x11x11x128xf32> to vector<11x11x128xf32>
        %139 = vector.broadcast %135 : f32 to vector<11x11x128xf32>
        %140 = arith.mulf %139, %138 : vector<11x11x128xf32>
        %141 = arith.addf %132, %140 : vector<11x11x128xf32>
        %c8_i32 = arith.constant 8 : i32
        %142 = arith.addi %69, %c8_i32 : i32
        %143 = arith.index_cast %142 : i32 to index
        %144 = memref.load %arg4[%143] : memref<900xf32, #tpu.memory_space<smem>>
        %145 = arith.index_cast %arg17 : i32 to index
        %c2_71 = arith.constant 2 : index
        %c2_72 = arith.constant 2 : index
        %c0_73 = arith.constant 0 : index
        %146 = vector.load %arg13[%145, %c2_71, %c2_72, %c0_73] : memref<10x13x13x128xf32, #tpu.memory_space<vmem>>, vector<1x11x11x128xf32>
        %147 = vector.shape_cast %146 : vector<1x11x11x128xf32> to vector<11x11x128xf32>
        %148 = vector.broadcast %144 : f32 to vector<11x11x128xf32>
        %149 = arith.mulf %148, %147 : vector<11x11x128xf32>
        %150 = arith.addf %141, %149 : vector<11x11x128xf32>
        scf.yield %150 : vector<11x11x128xf32>
      }
      %c10_i32_24 = arith.constant 10 : i32
      %20 = vector.extract_strided_slice %19 {offsets = [0, 0, 0], sizes = [10, 11, 128], strides = [1, 1, 1]} : vector<11x11x128xf32> to vector<10x11x128xf32>
      %21 = vector.shape_cast %20 : vector<10x11x128xf32> to vector<5x2x11x128xf32>
      %22 = vector.extract_strided_slice %21 {offsets = [0, 0, 0, 0], sizes = [5, 1, 11, 128], strides = [1, 1, 1, 1]} : vector<5x2x11x128xf32> to vector<5x1x11x128xf32>
      %23 = vector.shape_cast %22 : vector<5x1x11x128xf32> to vector<5x11x128xf32>
      %24 = vector.extract_strided_slice %21 {offsets = [0, 1, 0, 0], sizes = [5, 1, 11, 128], strides = [1, 1, 1, 1]} : vector<5x2x11x128xf32> to vector<5x1x11x128xf32>
      %25 = vector.shape_cast %24 : vector<5x1x11x128xf32> to vector<5x11x128xf32>
      %26 = arith.maximumf %23, %25 : vector<5x11x128xf32>
      %c0_25 = arith.constant 0 : index
      %c0_26 = arith.constant 0 : index
      %c0_27 = arith.constant 0 : index
      %27 = vector.load %arg14[%c0_25, %c0_26, %c0_27] : memref<5x11x128xf32, #tpu.memory_space<vmem>>, vector<5x11x128xf32>
      tpu.vector_store %arg14[%c0_25, %c0_26, %c0_27], %26 {strides = array<i32>} : memref<5x11x128xf32, #tpu.memory_space<vmem>>, vector<5x11x128xf32>,
      %c0_28 = arith.constant 0 : index
      %c0_29 = arith.constant 0 : index
      %c0_30 = arith.constant 0 : index
      %28 = tpu.strided_load %arg14[%c0_28, %c0_29, %c0_30] {strides = array<i32: 1, 2, 1>} : memref<5x11x128xf32, #tpu.memory_space<vmem>>, vector<5x5x128xf32>
      %c0_31 = arith.constant 0 : index
      %c1 = arith.constant 1 : index
      %c0_32 = arith.constant 0 : index
      %29 = tpu.strided_load %arg14[%c0_31, %c1, %c0_32] {strides = array<i32: 1, 2, 1>} : memref<5x11x128xf32, #tpu.memory_space<vmem>>, vector<5x5x128xf32>
      %30 = arith.maximumf %28, %29 : vector<5x5x128xf32>
      %31 = arith.index_cast %arg16 : i32 to index
      %32 = memref.load %arg5[%31] : memref<10xf32, #tpu.memory_space<smem>>
      %33 = vector.broadcast %32 : f32 to vector<5x5x128xf32>
      %34 = arith.addf %30, %33 : vector<5x5x128xf32>
      %cst_33 = arith.constant 0.000000e+00 : f32
      %35 = vector.broadcast %cst_33 : f32 to vector<5x5x128xf32>
      %36 = arith.maximumf %34, %35 : vector<5x5x128xf32>
      %37 = vector.extract_strided_slice %36 {offsets = [0, 0, 0], sizes = [1, 5, 128], strides = [1, 1, 1]} : vector<5x5x128xf32> to vector<1x5x128xf32>
      %38 = vector.shape_cast %37 : vector<1x5x128xf32> to vector<5x128xf32>
      %c25_i32 = arith.constant 25 : i32
      %39 = arith.muli %arg16, %c25_i32 : i32
      %c0_i32_34 = arith.constant 0 : i32
      %40 = arith.addi %39, %c0_i32_34 : i32
      %41 = arith.index_cast %40 : i32 to index
      %c0_35 = arith.constant 0 : index
      %42 = vector.load %arg15[%41, %c0_35] : memref<250x128xf32, #tpu.memory_space<vmem>>, vector<5x128xf32>
      tpu.vector_store %arg15[%41, %c0_35], %38 {strides = array<i32>} : memref<250x128xf32, #tpu.memory_space<vmem>>, vector<5x128xf32>,
      %43 = vector.extract_strided_slice %36 {offsets = [1, 0, 0], sizes = [1, 5, 128], strides = [1, 1, 1]} : vector<5x5x128xf32> to vector<1x5x128xf32>
      %44 = vector.shape_cast %43 : vector<1x5x128xf32> to vector<5x128xf32>
      %c25_i32_36 = arith.constant 25 : i32
      %45 = arith.muli %arg16, %c25_i32_36 : i32
      %c5_i32 = arith.constant 5 : i32
      %46 = arith.addi %45, %c5_i32 : i32
      %47 = arith.index_cast %46 : i32 to index
      %c0_37 = arith.constant 0 : index
      %48 = vector.load %arg15[%47, %c0_37] : memref<250x128xf32, #tpu.memory_space<vmem>>, vector<5x128xf32>
      tpu.vector_store %arg15[%47, %c0_37], %44 {strides = array<i32>} : memref<250x128xf32, #tpu.memory_space<vmem>>, vector<5x128xf32>,
      %49 = vector.extract_strided_slice %36 {offsets = [2, 0, 0], sizes = [1, 5, 128], strides = [1, 1, 1]} : vector<5x5x128xf32> to vector<1x5x128xf32>
      %50 = vector.shape_cast %49 : vector<1x5x128xf32> to vector<5x128xf32>
      %c25_i32_38 = arith.constant 25 : i32
      %51 = arith.muli %arg16, %c25_i32_38 : i32
      %c10_i32_39 = arith.constant 10 : i32
      %52 = arith.addi %51, %c10_i32_39 : i32
      %53 = arith.index_cast %52 : i32 to index
      %c0_40 = arith.constant 0 : index
      %54 = vector.load %arg15[%53, %c0_40] : memref<250x128xf32, #tpu.memory_space<vmem>>, vector<5x128xf32>
      tpu.vector_store %arg15[%53, %c0_40], %50 {strides = array<i32>} : memref<250x128xf32, #tpu.memory_space<vmem>>, vector<5x128xf32>,
      %55 = vector.extract_strided_slice %36 {offsets = [3, 0, 0], sizes = [1, 5, 128], strides = [1, 1, 1]} : vector<5x5x128xf32> to vector<1x5x128xf32>
      %56 = vector.shape_cast %55 : vector<1x5x128xf32> to vector<5x128xf32>
      %c25_i32_41 = arith.constant 25 : i32
      %57 = arith.muli %arg16, %c25_i32_41 : i32
      %c15_i32 = arith.constant 15 : i32
      %58 = arith.addi %57, %c15_i32 : i32
      %59 = arith.index_cast %58 : i32 to index
      %c0_42 = arith.constant 0 : index
      %60 = vector.load %arg15[%59, %c0_42] : memref<250x128xf32, #tpu.memory_space<vmem>>, vector<5x128xf32>
      tpu.vector_store %arg15[%59, %c0_42], %56 {strides = array<i32>} : memref<250x128xf32, #tpu.memory_space<vmem>>, vector<5x128xf32>,
      %61 = vector.extract_strided_slice %36 {offsets = [4, 0, 0], sizes = [1, 5, 128], strides = [1, 1, 1]} : vector<5x5x128xf32> to vector<1x5x128xf32>
      %62 = vector.shape_cast %61 : vector<1x5x128xf32> to vector<5x128xf32>
      %c25_i32_43 = arith.constant 25 : i32
      %63 = arith.muli %arg16, %c25_i32_43 : i32
      %c20_i32 = arith.constant 20 : i32
      %64 = arith.addi %63, %c20_i32 : i32
      %65 = arith.index_cast %64 : i32 to index
      %c0_44 = arith.constant 0 : index
      %66 = vector.load %arg15[%65, %c0_44] : memref<250x128xf32, #tpu.memory_space<vmem>>, vector<5x128xf32>
      tpu.vector_store %arg15[%65, %c0_44], %62 {strides = array<i32>} : memref<250x128xf32, #tpu.memory_space<vmem>>, vector<5x128xf32>,
    }
    %c10_i32_4 = arith.constant 10 : i32
    %c0 = arith.constant 0 : index
    %c0_5 = arith.constant 0 : index
    %2 = vector.load %arg6[%c0, %c0_5] : memref<50x250xf32, #tpu.memory_space<vmem>>, vector<50x250xf32>
    %c0_6 = arith.constant 0 : index
    %c0_7 = arith.constant 0 : index
    %3 = vector.load %arg15[%c0_6, %c0_7] : memref<250x128xf32, #tpu.memory_space<vmem>>, vector<250x128xf32>
    %cst = arith.constant dense<0.000000e+00> : vector<50x128xf32>
    %4 = tpu.matmul %2, %3, %cst {dimension_numbers = #tpu.dot_dimension_numbers<[1], [0], [0], [1], [0, 0, 1, 1], [], []>} : vector<50x250xf32>, vector<250x128xf32>, vector<50x128xf32> -> vector<50x128xf32>
    %c0_8 = arith.constant 0 : index
    %c0_9 = arith.constant 0 : index
    %5 = vector.load %arg7[%c0_8, %c0_9] : memref<50x1xf32, #tpu.memory_space<vmem>>, vector<50x1xf32>
    %6 = vector.broadcast %5 : vector<50x1xf32> to vector<50x128xf32>
    %7 = arith.addf %4, %6 : vector<50x128xf32>
    %cst_10 = arith.constant 0.000000e+00 : f32
    %8 = vector.broadcast %cst_10 : f32 to vector<50x128xf32>
    %9 = arith.maximumf %7, %8 : vector<50x128xf32>
    %c0_11 = arith.constant 0 : index
    %c0_12 = arith.constant 0 : index
    %10 = vector.load %arg11[%c0_11, %c0_12] : memref<50x128xf32, #tpu.memory_space<vmem>>, vector<50x128xf32>
    tpu.vector_store %arg11[%c0_11, %c0_12], %9 {strides = array<i32>} : memref<50x128xf32, #tpu.memory_space<vmem>>, vector<50x128xf32>,
    %c0_13 = arith.constant 0 : index
    %c0_14 = arith.constant 0 : index
    %11 = vector.load %arg8[%c0_13, %c0_14] : memref<10x50xf32, #tpu.memory_space<vmem>>, vector<10x50xf32>
    %cst_15 = arith.constant dense<0.000000e+00> : vector<10x128xf32>
    %12 = tpu.matmul %11, %9, %cst_15 {dimension_numbers = #tpu.dot_dimension_numbers<[1], [0], [0], [1], [0, 0, 1, 1], [], []>} : vector<10x50xf32>, vector<50x128xf32>, vector<10x128xf32> -> vector<10x128xf32>
    %c0_16 = arith.constant 0 : index
    %c0_17 = arith.constant 0 : index
    %13 = vector.load %arg9[%c0_16, %c0_17] : memref<10x1xf32, #tpu.memory_space<vmem>>, vector<10x1xf32>
    %14 = vector.broadcast %13 : vector<10x1xf32> to vector<10x128xf32>
    %15 = arith.addf %12, %14 : vector<10x128xf32>
    %c0_18 = arith.constant 0 : index
    %c0_19 = arith.constant 0 : index
    %16 = vector.load %arg10[%c0_18, %c0_19] : memref<10x128xf32, #tpu.memory_space<vmem>>, vector<10x128xf32>
    tpu.vector_store %arg10[%c0_18, %c0_19], %15 {strides = array<i32>} : memref<10x128xf32, #tpu.memory_space<vmem>>, vector<10x128xf32>,
    return
  }
  func.func @transform_0(%arg0: i32) -> (i32, i32, i32) {
    %c0_i32 = arith.constant 0 : i32
    %c0_i32_0 = arith.constant 0 : i32
    %c0_i32_1 = arith.constant 0 : i32
    return %c0_i32, %c0_i32_0, %arg0 : i32, i32, i32
  }
  func.func @transform_1(%arg0: i32) -> i32 {
    %c0_i32 = arith.constant 0 : i32
    %c0_i32_0 = arith.constant 0 : i32
    return %c0_i32 : i32
  }
  func.func @transform_2(%arg0: i32) -> i32 {
    %c0_i32 = arith.constant 0 : i32
    %c0_i32_0 = arith.constant 0 : i32
    return %c0_i32 : i32
  }
  func.func @transform_3(%arg0: i32) -> i32 {
    %c0_i32 = arith.constant 0 : i32
    %c0_i32_0 = arith.constant 0 : i32
    return %c0_i32 : i32
  }
  func.func @transform_4(%arg0: i32) -> i32 {
    %c0_i32 = arith.constant 0 : i32
    %c0_i32_0 = arith.constant 0 : i32
    return %c0_i32 : i32
  }
  func.func @transform_5(%arg0: i32) -> (i32, i32) {
    %c0_i32 = arith.constant 0 : i32
    %c0_i32_0 = arith.constant 0 : i32
    %c0_i32_1 = arith.constant 0 : i32
    return %c0_i32, %c0_i32_0 : i32, i32
  }
  func.func @transform_6(%arg0: i32) -> (i32, i32) {
    %c0_i32 = arith.constant 0 : i32
    %c0_i32_0 = arith.constant 0 : i32
    %c0_i32_1 = arith.constant 0 : i32
    return %c0_i32, %c0_i32_0 : i32, i32
  }
  func.func @transform_7(%arg0: i32) -> (i32, i32) {
    %c0_i32 = arith.constant 0 : i32
    %c0_i32_0 = arith.constant 0 : i32
    %c0_i32_1 = arith.constant 0 : i32
    return %c0_i32, %c0_i32_0 : i32, i32
  }
  func.func @transform_8(%arg0: i32) -> (i32, i32) {
    %c0_i32 = arith.constant 0 : i32
    %c0_i32_0 = arith.constant 0 : i32
    %c0_i32_1 = arith.constant 0 : i32
    return %c0_i32, %c0_i32_0 : i32, i32
  }
  func.func @transform_9(%arg0: i32) -> (i32, i32) {
    %c0_i32 = arith.constant 0 : i32
    %c0_i32_0 = arith.constant 0 : i32
    return %c0_i32, %arg0 : i32, i32
  }
  func.func @transform_10(%arg0: i32) -> (i32, i32) {
    %c0_i32 = arith.constant 0 : i32
    %c0_i32_0 = arith.constant 0 : i32
    return %c0_i32, %arg0 : i32, i32
  }
}

</mosaic_0001>

<bundles_post_ra>
// kernel: tpu_custom_call.1
= control target key start
LH: loop header
LB: loop body
LE: loop exit
PB: predicated region body
PF: predicated region fallthrough
CT: control target
= control target key end

     0   :  { %16 = vsyncpa [#allocation7], 0  ;;  %s8265_s0 = inlined_call_operand.hbm [shape: f32[28,28,128], index: 0, kind: input, shape index: {}]   ;;  %s8266_s1 = inlined_call_operand.vmem [shape: f32[90], index: 1, kind: input, shape index: {}]   ;;  %s8267_s2 = inlined_call_operand.vmem [shape: f32[10], index: 2, kind: input, shape index: {}]   ;;  %s8268_s3 = inlined_call_operand.vmem [shape: f32[900], index: 3, kind: input, shape index: {}]   ;;  %s8269_s4 = inlined_call_operand.vmem [shape: f32[10], index: 4, kind: input, shape index: {}]   ;;  %s8270_s5 = inlined_call_operand.hbm [shape: f32[50,250], index: 5, kind: input, shape index: {}]   ;;  %s8271_s6 = inlined_call_operand.vmem [shape: f32[50,1], index: 6, kind: input, shape index: {}]   ;;  %s8272_s7 = inlined_call_operand.vmem [shape: f32[10,50], index: 7, kind: input, shape index: {}]   ;;  %s8273_s8 = inlined_call_operand.vmem [shape: f32[10,1], index: 8, kind: input, shape index: {}]   ;;  %s8274_s9 = inlined_call_operand.hbm [shape: f32[10,128], index: 9, kind: output, shape index: {0}]   ;;  %s8275_s10 = inlined_call_operand.hbm [shape: f32[50,128], index: 10, kind: output, shape index: {1}]  }
   0x1   :  { %17 = vsyncpa [#allocation9], 0 }
   0x2   :  { %18 = vsyncpa [#allocation12], 0 }
   0x3   :  { %19 = vsyncpa [#allocation15], 0 }
   0x4   :  { %20 = vsyncpa [#allocation17], 0 }
   0x5   :  { %21 = vsyncpa [#allocation8], 0  ;;  %s51_s15 = sshll.u32 %s8267_s2, 4  ;;  %s52_s15 = int_to_ptr.vmem [resolvable:$true] %s51_s15 }
   0x6   :  { %22 = vsyncpa [#allocation20], 0  ;;  %s4904_s16 = scalar_lea.vmem %s52_s15, 16  ;;  %p4909_p1 = scmp.lt.s32.totalorder %s52_s15, %s52_s15 }
   0x7   :  { %p4905_p0 = scmp.ne.s32.totalorder %s52_s15, %s4904_s16  ;;  %p4910_p2 = scmp.lt.s32.totalorder %s4904_s16, %s4904_s16 }
   0x9   :  { %p4911_p3 = por %p4910_p2, %p4909_p1 }
   0xb   :  { %p4912_p4 = pnand %p4911_p3, %p4905_p0 }
   0xd   :  { %4915 = shalt.err (!%p4912_p4)
}
   0xe   :  { %s5230_s17 = smov [#allocation11]   ;;  %s5231_s18 = smov [#allocation6]  }
   0xf   :  { %54 = dma.vmem_to_smem %s52_s15, 16, %s5230_s17, [#allocation12]  }
  0x10   :  { %s28_s19 = sshll.u32 %s5231_s18, 4  ;;  %s29_s19 = int_to_ptr.vmem [resolvable:$true] %s28_s19 }
  0x11   :  { %s4924_s20 = scalar_lea.vmem %s29_s19, 14336  ;;  %p4929_p6 = scmp.lt.s32.totalorder %s29_s19, %s29_s19 }
  0x12   :  { %p4925_p5 = scmp.ne.s32.totalorder %s29_s19, %s4924_s20  ;;  %p4930_p7 = scmp.lt.s32.totalorder %s4924_s20, %s4924_s20 }
  0x14   :  { %p4931_p8 = por %p4930_p7, %p4929_p6 }
  0x16   :  { %p4932_p9 = pnand %p4931_p8, %p4925_p5 }
  0x18   :  { %4935 = shalt.err (!%p4932_p9)
}
  0x19   :  { %s5232_s2 = smov 128   ;;  %s5233_s21 = smov 8  }
  0x1a   :  { %34 = dma.hbm_to_vmem [thread:$0]  %s8265_s0, 14336, %s29_s19, [#allocation7], %s5232_s2, %s5232_s2, %s5233_s21  }
  0x1b   :  { %s41_s26 = sshll.u32 %s8266_s1, 4  ;;  %s61_s29 = sshll.u32 %s8268_s3, 4  ;;  %s42_s26 = int_to_ptr.vmem [resolvable:$true] %s41_s26  ;;  %s62_s29 = int_to_ptr.vmem [resolvable:$true] %s61_s29 }
  0x1c   :  { %s4936_s30 = scalar_lea.vmem %s42_s26, 16  ;;  %p4941_p11 = scmp.lt.s32.totalorder %s42_s26, %s42_s26 }
  0x1d   :  { %p4937_p10 = scmp.ne.s32.totalorder %s42_s26, %s4936_s30  ;;  %p4942_p12 = scmp.lt.s32.totalorder %s4936_s30, %s4936_s30 }
  0x1f   :  { %p4943_p13 = por %p4942_p12, %p4941_p11 }
  0x21   :  { %p4944_p0 = pnand %p4943_p13, %p4937_p10 }
  0x23   :  { %4947 = shalt.err (!%p4944_p0)
}
  0x24   :  { %s5234_s11 = smov [#allocation10]   ;;  %s4948_s0 = scalar_lea.vmem %s62_s29, 128 }
  0x25   :  { %44 = dma.vmem_to_smem %s42_s26, 16, %s5234_s11, [#allocation9]  }
  0x26   :  { %p4949_p1 = scmp.ne.s32.totalorder %s62_s29, %s4948_s0  ;;  %p4953_p2 = scmp.lt.s32.totalorder %s62_s29, %s62_s29 }
  0x27   :  { %p4954_p3 = scmp.lt.s32.totalorder %s4948_s0, %s4948_s0 }
  0x29   :  { %p4955_p4 = por %p4954_p3, %p4953_p2 }
  0x2b   :  { %p4956_p5 = pnand %p4955_p4, %p4949_p1 }
  0x2d   :  { %4959 = shalt.err (!%p4956_p5)
}
  0x2e   :  { %s5235_s1 = smov [#allocation13]   ;;  %s71_s13 = sshll.u32 %s8269_s4, 4  ;;  %s72_s13 = int_to_ptr.vmem [resolvable:$true] %s71_s13 }
  0x2f   :  { %64 = dma.vmem_to_smem %s62_s29, 128, %s5235_s1, [#allocation12]  }
  0x30   :  { %s4960_s14 = scalar_lea.vmem %s72_s13, 16  ;;  %p4965_p7 = scmp.lt.s32.totalorder %s72_s13, %s72_s13 }
  0x31   :  { %p4961_p6 = scmp.ne.s32.totalorder %s72_s13, %s4960_s14  ;;  %p4966_p8 = scmp.lt.s32.totalorder %s4960_s14, %s4960_s14 }
  0x33   :  { %p4967_p9 = por %p4966_p8, %p4965_p7 }
  0x35   :  { %p4968_p10 = pnand %p4967_p9, %p4961_p6 }
  0x37   :  { %4971 = shalt.err (!%p4968_p10)
}
  0x38   :  { %s5236_s15 = smov [#allocation14]   ;;  %s5237_s16 = smov [#allocation16]  }
  0x39   :  { %74 = dma.vmem_to_smem %s72_s13, 16, %s5236_s15, [#allocation15]  }
  0x3a   :  { %s80_s17 = sshll.u32 %s5237_s16, 4  ;;  %s81_s17 = int_to_ptr.vmem [resolvable:$true] %s80_s17 }
  0x3b   :  { %s4980_s18 = scalar_lea.vmem %s81_s17, 1792  ;;  %p4985_p12 = scmp.lt.s32.totalorder %s81_s17, %s81_s17 }
  0x3c   :  { %p4981_p11 = scmp.ne.s32.totalorder %s81_s17, %s4980_s18  ;;  %p4986_p13 = scmp.lt.s32.totalorder %s4980_s18, %s4980_s18 }
  0x3e   :  { %p4987_p0 = por %p4986_p13, %p4985_p12 }
  0x40   :  { %p4988_p1 = pnand %p4987_p0, %p4981_p11 }
  0x42   :  { %4991 = shalt.err (!%p4988_p1)
}
  0x43   :  { %s5238_s4 = smov 256   ;;  %s5239_s19 = smov 16  }
  0x44   :  { %86 = dma.hbm_to_vmem [thread:$0]  %s8270_s5, 1792, %s81_s17, [#allocation17], %s5238_s4, %s5238_s4, %s5239_s19  }
  0x45   :  { %5124 = dma.done.wait [#allocation7], 14336  }
  0x46   :  { %5125 = vsyncadd [#allocation7], 4294952960 }
  0x47   :  { %5126 = dma.done.wait [#allocation9], 16  }
  0x48   :  { %5127 = vsyncadd [#allocation9], 4294967280 }
  0x49   :  { %5128 = dma.done.wait [#allocation12], 144  }
  0x4a   :  { %5129 = vsyncadd [#allocation12], 4294967152 }
  0x4b   :  { %5130 = dma.done.wait [#allocation15], 16  }
  0x4c   :  { %5131 = vsyncadd [#allocation15], 4294967280 }
  0x4d   :  { %5132 = dma.done.wait [#allocation17], 1792  }
  0x4e   :  { %5133 = vsyncadd [#allocation17], 4294965504 }
  0x4f   :  { %111 = sfence }
  0x50   :  { %s5319_s23 = smov 0  }
  0x51 LB: > { %s5325_s5 = smul.u32 9, %s5140_s23  ;;  %v120_v0 = vld [vmem:[#allocation6] sm:$0xff]  ;;  %v121_v2 = vld [vmem:[#allocation6 + $0x8] sm:$0xff]  ;;  %s5140_s23 = sphi %s5319_s23, %s117_s23  }
  0x52   : > { %v124_v1 = vld [vmem:[#allocation6 + $0x20] sm:$0xff]  ;;  %v125_v5 = vld [vmem:[#allocation6 + $0x28] sm:$0xff] }
  0x53   : > { %s119_s24 = sld [smem:[#allocation10 + %s5325_s5]]  ;;  %s289_s25 = sadd.s32 1, %s5325_s5  ;;  %v291_v3 = vld [vmem:[#allocation6 + $0x1] sm:$0xff]  ;;  %v292_v9 = vld [vmem:[#allocation6 + $0x9] sm:$0xff] }
  0x54   : > { %s290_s26 = sld [smem:[#allocation10 + %s289_s25]]  ;;  %s460_s27 = sadd.s32 2, %s5325_s5  ;;  %v295_v4 = vld [vmem:[#allocation6 + $0x21] sm:$0xff]  ;;  %v296_v18 = vld [vmem:[#allocation6 + $0x29] sm:$0xff] }
  0x55   : > { %s461_s28 = sld [smem:[#allocation10 + %s460_s27]]  ;;  %s631_s29 = sadd.s32 3, %s5325_s5  ;;  %v462_v7 = vld [vmem:[#allocation6 + $0x2] sm:$0xff]  ;;  %v463_v48 = vld [vmem:[#allocation6 + $0xa] sm:$0xff] }
  0x56   : > { %s5337_s30 = sld [smem:[#allocation10 + %s631_s29]]  ;;  %s803_s11 = sadd.s32 4, %s5325_s5  ;;  %v466_v8 = vld [vmem:[#allocation6 + $0x22] sm:$0xff]  ;;  %v467_v49 = vld [vmem:[#allocation6 + $0x2a] sm:$0xff] }
  0x57   : > { %s5342_s0 = sld [smem:[#allocation10 + %s803_s11]]  ;;  %s974_s1 = sadd.s32 5, %s5325_s5  ;;  %v5378_v21 = vld [vmem:[#allocation6 + $0x40] sm:$0xff]  ;;  %v5431_v59 = vld [vmem:[#allocation6 + $0x48] sm:$0xff] }
  0x58   : > { %s5347_s3 = sld [smem:[#allocation10 + %s974_s1]]  ;;  %s1145_s12 = sadd.s32 6, %s5325_s5  ;;  %v5387_v28 = vld [vmem:[#allocation6 + $0x41] sm:$0xff] }
  0x59   : > { %v5350_v6 = vstv %s119_s24  ;;  %s5354_s13 = sld [smem:[#allocation10 + %s1145_s12]]  ;;  %s1317_s14 = sadd.s32 7, %s5325_s5  ;;  %v5399_v37 = vld [vmem:[#allocation6 + $0x42] sm:$0xff] }
  0x5a   : > { %v177_v10 = vmul.f32 %v5350_v6, %v120_v0  ;;  %v181_v11 = vmul.f32 %v5350_v6, %v124_v1  ;;  %v5359_v12 = vstv %s290_s26  ;;  %s5363_s15 = sld [smem:[#allocation10 + %s1317_s14]]  ;;  %s1488_s16 = sadd.s32 8, %s5325_s5  ;;  %v178_v13 = vmul.f32 %v5350_v6, %v121_v2  ;;  %v5404_v40 = vld [vmem:[#allocation6 + $0x60] sm:$0xff]  ;;  %v5438_v0 = vld [vmem:[#allocation6 + $0x49] sm:$0xff] }
  0x5b   : > { %v348_v14 = vmul.f32 %v5359_v12, %v291_v3  ;;  %v352_v15 = vmul.f32 %v5359_v12, %v295_v4  ;;  %v5369_v16 = vstv %s461_s28  ;;  %s5373_s17 = sld [smem:[#allocation10 + %s1488_s16]]  ;;  %v182_v17 = vmul.f32 %v5350_v6, %v125_v5  ;;  %v5416_v47 = vld [vmem:[#allocation6 + $0x61] sm:$0xff]  ;;  %s3264_s28 = smul.u32 208, %s5140_s23 }
  0x5c   : > { %v519_v19 = vmul.f32 %v5369_v16, %v462_v7  ;;  %v523_v20 = vmul.f32 %v5369_v16, %v466_v8  ;;  %v5381_v22 = vstv %s5337_s30  ;;  %v349_v23 = vmul.f32 %v5359_v12, %v292_v9  ;;  %v5422_v52 = vld [vmem:[#allocation6 + $0x62] sm:$0xff]  ;;  %v5443_v7 = vld [vmem:[#allocation6 + $0x4a] sm:$0xff]  ;;  %s6479_s18 = sld [smem:[#allocation10 + %s5325_s5]] }
  0x5d   : > { %v404_v24 = vadd.f32 %v348_v14, %v177_v10  ;;  %v408_v25 = vadd.f32 %v352_v15, %v181_v11  ;;  %v691_v26 = vmul.f32 %v5381_v22, %v124_v1  ;;  %v695_v27 = vmul.f32 %v5381_v22, %v5378_v21  ;;  %v5448_v11 = vld [vmem:[#allocation6 + $0x68] sm:$0xff]  ;;  %s6487_s4 = sld [smem:[#allocation10 + %s289_s25]] }
  0x5e   : > { %v5390_v29 = vstv %s5342_s0  ;;  %v5393_v30 = vstv %s5347_s3  ;;  %v353_v31 = vmul.f32 %v5359_v12, %v296_v18  ;;  %v405_v32 = vadd.f32 %v349_v23, %v178_v13  ;;  %s6494_s19 = sld [smem:[#allocation10 + %s460_s27]] }
  0x5f   : > { %v575_v33 = vadd.f32 %v519_v19, %v404_v24  ;;  %v579_v34 = vadd.f32 %v523_v20, %v408_v25  ;;  %v862_v35 = vmul.f32 %v5390_v29, %v295_v4  ;;  %v866_v36 = vmul.f32 %v5390_v29, %v5387_v28  ;;  %v122_v19 = vld [vmem:[#allocation6 + $0x10] sm:$0xff]  ;;  %s6500_s20 = sld [smem:[#allocation10 + %s631_s29]]  ;;  %s7487_s29 = scalar_lea.vmem [#allocation3], %s3264_s28 }
  0x60   : > { %v1033_v38 = vmul.f32 %v5393_v30, %v466_v8  ;;  %v1037_v39 = vmul.f32 %v5393_v30, %v5399_v37  ;;  %v5407_v41 = vstv %s5354_s13  ;;  %v5410_v42 = vstv %s5363_s15  ;;  %v126_v20 = vld [vmem:[#allocation6 + $0x30] sm:$0xff]  ;;  %s6506_s22 = sld [smem:[#allocation10 + %s803_s11]] }
  0x61   : > { %v747_v43 = vadd.f32 %v691_v26, %v575_v33  ;;  %v751_v44 = vadd.f32 %v695_v27, %v579_v34  ;;  %v1205_v45 = vmul.f32 %v5407_v41, %v5378_v21  ;;  %v1209_v46 = vmul.f32 %v5407_v41, %v5404_v40  ;;  %v5460_v27 = vld [vmem:[#allocation6 + $0x6a] sm:$0xff]  ;;  %s6512_s24 = sld [smem:[#allocation10 + %s974_s1]] }
  0x62   : > { %v1376_v50 = vmul.f32 %v5410_v42, %v5387_v28  ;;  %v1380_v51 = vmul.f32 %v5410_v42, %v5416_v47  ;;  %v5425_v53 = vstv %s5373_s17  ;;  %v409_v54 = vadd.f32 %v353_v31, %v182_v17  ;;  %v293_v31 = vld [vmem:[#allocation6 + $0x11] sm:$0xff]  ;;  %s6526_s25 = sld [smem:[#allocation10 + %s1145_s12]] }
  0x63   : > { %v918_v55 = vadd.f32 %v862_v35, %v747_v43  ;;  %v922_v56 = vadd.f32 %v866_v36, %v751_v44  ;;  %v1547_v57 = vmul.f32 %v5425_v53, %v5399_v37  ;;  %v1551_v58 = vmul.f32 %v5425_v53, %v5422_v52  ;;  %s6536_s26 = sld [smem:[#allocation10 + %s1317_s14]] }
  0x64   : > { %v520_v60 = vmul.f32 %v5369_v16, %v463_v48  ;;  %v524_v61 = vmul.f32 %v5369_v16, %v467_v49  ;;  %v692_v62 = vmul.f32 %v5381_v22, %v125_v5  ;;  %v696_v63 = vmul.f32 %v5381_v22, %v5431_v59  ;;  %s6552_s27 = sld [smem:[#allocation10 + %s1488_s16]] }
  0x65   : > { %v1089_v1 = vadd.f32 %v1033_v38, %v918_v55  ;;  %v1093_v2 = vadd.f32 %v1037_v39, %v922_v56  ;;  %v863_v3 = vmul.f32 %v5390_v29, %v296_v18  ;;  %v867_v4 = vmul.f32 %v5390_v29, %v5438_v0  ;;  %v5454_v18 = vld [vmem:[#allocation6 + $0x69] sm:$0xff]  ;;  %v464_v38 = vld [vmem:[#allocation6 + $0x12] sm:$0xff]  ;;  %s7457_s5 = sld [smem:[#allocation11 + %s5140_s23]]  ;;  %s117_s23 = sadd.s32 1, %s5140_s23  }
  0x66   : > { %v576_v8 = vadd.f32 %v520_v60, %v405_v32  ;;  %v580_v9 = vadd.f32 %v524_v61, %v409_v54  ;;  %v1034_v10 = vmul.f32 %v5393_v30, %v467_v49  ;;  %v1038_v5 = vmul.f32 %v5393_v30, %v5443_v7  ;;  %v297_v32 = vld [vmem:[#allocation6 + $0x31] sm:$0xff]  ;;  %p114_p2 = scmp.ge.s32.totalorder %s117_s23, 10  }
  0x67   : > { %v1261_v13 = vadd.f32 %v1205_v45, %v1089_v1  ;;  %v1265_v14 = vadd.f32 %v1209_v46, %v1093_v2  ;;  %v1206_v15 = vmul.f32 %v5407_v41, %v5431_v59  ;;  %v1210_v17 = vmul.f32 %v5407_v41, %v5448_v11  ;;  %v468_v39 = vld [vmem:[#allocation6 + $0x32] sm:$0xff]  ;;  %s7541_s30 = smov (%p114_p2), 0  }
  0x68   : > { %v748_v23 = vadd.f32 %v692_v62, %v576_v8  ;;  %v752_v24 = vadd.f32 %v696_v63, %v580_v9  ;;  %v1377_v25 = vmul.f32 %v5410_v42, %v5438_v0  ;;  %v1381_v26 = vmul.f32 %v5410_v42, %v5454_v18  ;;  %v5472_v1 = vld [vmem:[#allocation6 + $0x50] sm:$0xff] }
  0x69   : > { %v1432_v33 = vadd.f32 %v1376_v50, %v1261_v13  ;;  %v1436_v34 = vadd.f32 %v1380_v51, %v1265_v14  ;;  %v1548_v35 = vmul.f32 %v5425_v53, %v5443_v7  ;;  %v1552_v36 = vmul.f32 %v5425_v53, %v5460_v27  ;;  %v5482_v13 = vld [vmem:[#allocation6 + $0x52] sm:$0xff] }
  0x6a   : > { %v919_v43 = vadd.f32 %v863_v3, %v748_v23  ;;  %v923_v44 = vadd.f32 %v867_v4, %v752_v24  ;;  %v179_v45 = vmul.f32 %v5350_v6, %v122_v19  ;;  %v183_v46 = vmul.f32 %v5350_v6, %v126_v20  ;;  %v5477_v4 = vld [vmem:[#allocation6 + $0x51] sm:$0xff] }
  0x6b   : > { %v1603_v48 = vadd.f32 %v1547_v57, %v1432_v33  ;;  %v1607_v49 = vadd.f32 %v1551_v58, %v1436_v34  ;;  %v350_v54 = vmul.f32 %v5359_v12, %v293_v31  ;;  %v354_v50 = vmul.f32 %v5359_v12, %v297_v32  ;;  %v5491_v24 = vld [vmem:[#allocation6 + $0x71] sm:$0xff] }
  0x6c   : > { %v1090_v51 = vadd.f32 %v1034_v10, %v919_v43  ;;  %v1094_v55 = vadd.f32 %v1038_v5, %v923_v44  ;;  %v521_v56 = vmul.f32 %v5369_v16, %v464_v38  ;;  %v525_v60 = vmul.f32 %v5369_v16, %v468_v39  ;;  %v123_v31 = vld [vmem:[#allocation6 + $0x18] sm:$0x3] }
  0x6d   : > { %v1659_v61 = vmax.f32 %v1603_v48, %v1607_v49  ;;  %v406_v62 = vadd.f32 %v350_v54, %v179_v45  ;;  %v410_v63 = vadd.f32 %v354_v50, %v183_v46  ;;  %v693_v2 = vmul.f32 %v5381_v22, %v126_v20  ;;  %v5487_v20 = vld [vmem:[#allocation6 + $0x70] sm:$0xff]  ;;  %v294_v38 = vld [vmem:[#allocation6 + $0x19] sm:$0x3] }
  0x6e   : > { %v1262_v3 = vadd.f32 %v1206_v15, %v1090_v51  ;;  %v1266_v57 = vadd.f32 %v1210_v17, %v1094_v55  ;;  %v697_v58 = vmul.f32 %v5381_v22, %v5472_v1  ;;  %v864_v8 = vmul.f32 %v5390_v29, %v297_v32  ;;  %v5499_v46 = vld [vmem:[#allocation6 + $0x72] sm:$0xff]  ;;  %v465_v49 = vld [vmem:[#allocation6 + $0x1a] sm:$0x3] }
  0x6f   : > { %1687 = vst [vmem:[#allocation2] sm:$0xff] %v1659_v61  ;;  %v577_v9 = vadd.f32 %v521_v56, %v406_v62  ;;  %v581_v10 = vadd.f32 %v525_v60, %v410_v63  ;;  %v868_v5 = vmul.f32 %v5390_v29, %v5477_v4  ;;  %v1035_v14 = vmul.f32 %v5393_v30, %v468_v39  ;;  %v298_v39 = vld [vmem:[#allocation6 + $0x39] sm:$0x3] }
  0x70   : > { %v1433_v19 = vadd.f32 %v1377_v25, %v1262_v3  ;;  %v1437_v15 = vadd.f32 %v1381_v26, %v1266_v57  ;;  %v1039_v17 = vmul.f32 %v5393_v30, %v5482_v13  ;;  %v1207_v23 = vmul.f32 %v5407_v41, %v5472_v1  ;;  %v127_v26 = vld [vmem:[#allocation6 + $0x38] sm:$0x3]  ;;  %v469_v54 = vld [vmem:[#allocation6 + $0x3a] sm:$0x3] }
  0x71   : > { %v749_v32 = vadd.f32 %v693_v2, %v577_v9  ;;  %v753_v33 = vadd.f32 %v697_v58, %v581_v10  ;;  %v1211_v34 = vmul.f32 %v5407_v41, %v5487_v20  ;;  %v1378_v25 = vmul.f32 %v5410_v42, %v5477_v4  ;;  %v637_v60 = vld [vmem:[#allocation6 + $0x38] sm:$0x3]  ;;  %v979_v10 = vld [vmem:[#allocation6 + $0x3a] sm:$0x3] }
  0x72   : > { %v1604_v43 = vadd.f32 %v1548_v35, %v1433_v19  ;;  %v1608_v44 = vadd.f32 %v1552_v36, %v1437_v15  ;;  %v1382_v45 = vmul.f32 %v5410_v42, %v5491_v24  ;;  %v1549_v48 = vmul.f32 %v5425_v53, %v5482_v13  ;;  %v641_v35 = vld [vmem:[#allocation6 + $0x58] sm:$0x3] }
  0x73   : > { %v920_v50 = vadd.f32 %v864_v8, %v749_v32  ;;  %v924_v51 = vadd.f32 %v868_v5, %v753_v33  ;;  %v1553_v55 = vmul.f32 %v5425_v53, %v5499_v46  ;;  %v180_v56 = vmul.f32 %v5350_v6, %v123_v31  ;;  %v808_v2 = vld [vmem:[#allocation6 + $0x39] sm:$0x3] }
  0x74   : > { %v1660_v36 = vmax.f32 %v1604_v43, %v1608_v44  ;;  %v184_v61 = vmul.f32 %v5350_v6, %v127_v26  ;;  %v351_v62 = vmul.f32 %v5359_v12, %v294_v38  ;;  %v355_v63 = vmul.f32 %v5359_v12, %v298_v39  ;;  %v812_v3 = vld [vmem:[#allocation6 + $0x59] sm:$0x3] }
  0x75   : > { %v1091_v57 = vadd.f32 %v1035_v14, %v920_v50  ;;  %v1095_v58 = vadd.f32 %v1039_v17, %v924_v51  ;;  %v522_v8 = vmul.f32 %v5369_v16, %v465_v49  ;;  %v526_v9 = vmul.f32 %v5369_v16, %v469_v54  ;;  %v983_v5 = vld [vmem:[#allocation6 + $0x5a] sm:$0x3]  ;;  %v1151_v33 = vld [vmem:[#allocation6 + $0x58] sm:$0x3] }
  0x76   : > { %1688 = vst [vmem:[#allocation2 + $0x8] sm:$0xff] %v1660_v36  ;;  %v407_v19 = vadd.f32 %v351_v62, %v180_v56  ;;  %v411_v15 = vadd.f32 %v355_v63, %v184_v61  ;;  %v694_v31 = vmul.f32 %v5381_v22, %v637_v60  ;;  %v698_v32 = vmul.f32 %v5381_v22, %v641_v35  ;;  %v1155_v26 = vld [vmem:[#allocation6 + $0x78] sm:$0x3]  ;;  %v1493_v56 = vld [vmem:[#allocation6 + $0x5a] sm:$0x3] }
  0x77   : > { %v1263_v38 = vadd.f32 %v1207_v23, %v1091_v57  ;;  %v1267_v39 = vadd.f32 %v1211_v34, %v1095_v58  ;;  %v865_v14 = vmul.f32 %v5390_v29, %v808_v2  ;;  %v869_v17 = vmul.f32 %v5390_v29, %v812_v3  ;;  %v1322_v43 = vld [vmem:[#allocation6 + $0x59] sm:$0x3] }
  0x78   : > { %v1326_v44 = vld [vmem:[#allocation6 + $0x79] sm:$0x3]  ;;  %v578_v49 = vadd.f32 %v522_v8, %v407_v19  ;;  %v582_v54 = vadd.f32 %v526_v9, %v411_v15  ;;  %v1036_v50 = vmul.f32 %v5393_v30, %v979_v10  ;;  %v1040_v51 = vmul.f32 %v5393_v30, %v983_v5 }
  0x79   : > { %v1497_v60 = vld [vmem:[#allocation6 + $0x7a] sm:$0x3]  ;;  %v1434_v36 = vadd.f32 %v1378_v25, %v1263_v38  ;;  %v1438_v35 = vadd.f32 %v1382_v45, %v1267_v39  ;;  %v1208_v61 = vmul.f32 %v5407_v41, %v1151_v33  ;;  %v1212_v23 = vmul.f32 %v5407_v41, %v1155_v26  ;;  %v5535_v33 = vld [vmem:[#allocation6 + $0x80] sm:$0xff] }
  0x7a   : > { %v750_v34 = vadd.f32 %v694_v31, %v578_v49  ;;  %v754_v62 = vadd.f32 %v698_v32, %v582_v54  ;;  %v1379_v63 = vmul.f32 %v5410_v42, %v1322_v43  ;;  %v1383_v2 = vmul.f32 %v5410_v42, %v1326_v44  ;;  %v5541_v39 = vld [vmem:[#allocation6 + $0x81] sm:$0xff] }
  0x7b   : > { %v1605_v3 = vadd.f32 %v1549_v48, %v1434_v36  ;;  %v1609_v57 = vadd.f32 %v1553_v55, %v1438_v35  ;;  %v1550_v58 = vmul.f32 %v5425_v53, %v1493_v56  ;;  %v1554_v8 = vmul.f32 %v5425_v53, %v1497_v60  ;;  %v5547_v44 = vld [vmem:[#allocation6 + $0x82] sm:$0xff] }
  0x7c   : > { %v921_v9 = vadd.f32 %v865_v14, %v750_v34  ;;  %v925_v10 = vadd.f32 %v869_v17, %v754_v62  ;;  %v185_v25 = vmul.f32 %v5378_v21, %v5350_v6  ;;  %v189_v45 = vmul.f32 %v5404_v40, %v5350_v6  ;;  %v5559_v35 = vld [vmem:[#allocation6 + $0xa1] sm:$0xff] }
  0x7d   : > { %v1661_v5 = vmax.f32 %v1605_v3, %v1609_v57  ;;  %v356_v19 = vmul.f32 %v5387_v28, %v5359_v12  ;;  %v360_v48 = vmul.f32 %v5416_v47, %v5359_v12  ;;  %v527_v55 = vmul.f32 %v5399_v37, %v5369_v16  ;;  %v5565_v62 = vld [vmem:[#allocation6 + $0xa2] sm:$0xff] }
  0x7e   : > { %v1092_v15 = vadd.f32 %v1036_v50, %v921_v9  ;;  %v1096_v31 = vadd.f32 %v1040_v51, %v925_v10  ;;  %v531_v32 = vmul.f32 %v5422_v52, %v5369_v16  ;;  %v699_v21 = vmul.f32 %v5404_v40, %v5381_v22  ;;  %v5553_v51 = vld [vmem:[#allocation6 + $0xa0] sm:$0xff] }
  0x7f   : > { %1689 = vst [vmem:[#allocation2 + $0x10] sm:$0xff] %v1661_v5  ;;  %v412_v26 = vadd.f32 %v356_v19, %v185_v25  ;;  %v416_v38 = vadd.f32 %v360_v48, %v189_v45  ;;  %v703_v28 = vmul.f32 %v5381_v22, %v5535_v33  ;;  %v870_v37 = vmul.f32 %v5416_v47, %v5390_v29 }
  0x80   : > { %v1264_v14 = vadd.f32 %v1208_v61, %v1092_v15  ;;  %v1268_v17 = vadd.f32 %v1212_v23, %v1096_v31  ;;  %v874_v43 = vmul.f32 %v5390_v29, %v5541_v39  ;;  %v1041_v40 = vmul.f32 %v5422_v52, %v5393_v30  ;;  %v5583_v31 = vld [vmem:[#allocation6 + $0x88] sm:$0xff] }
  0x81   : > { %v583_v49 = vadd.f32 %v527_v55, %v412_v26  ;;  %v587_v54 = vadd.f32 %v531_v32, %v416_v38  ;;  %v1045_v50 = vmul.f32 %v5393_v30, %v5547_v44  ;;  %v1213_v47 = vmul.f32 %v5407_v41, %v5535_v33 }
  0x82   : > { %v1435_v56 = vadd.f32 %v1379_v63, %v1264_v14  ;;  %v1439_v60 = vadd.f32 %v1383_v2, %v1268_v17  ;;  %v1217_v36 = vmul.f32 %v5407_v41, %v5553_v51  ;;  %v1384_v52 = vmul.f32 %v5410_v42, %v5541_v39  ;;  %v5595_v17 = vld [vmem:[#allocation6 + $0x8a] sm:$0xff] }
  0x83   : > { %v755_v61 = vadd.f32 %v699_v21, %v583_v49  ;;  %v759_v23 = vadd.f32 %v703_v28, %v587_v54  ;;  %v1388_v34 = vmul.f32 %v5410_v42, %v5559_v35  ;;  %v1555_v3 = vmul.f32 %v5425_v53, %v5547_v44  ;;  %v5587_v21 = vld [vmem:[#allocation6 + $0x89] sm:$0xff] }
  0x84   : > { %v1606_v63 = vadd.f32 %v1550_v58, %v1435_v56  ;;  %v1610_v2 = vadd.f32 %v1554_v8, %v1439_v60  ;;  %v1559_v57 = vmul.f32 %v5425_v53, %v5565_v62  ;;  %v186_v9 = vmul.f32 %v5431_v59, %v5350_v6  ;;  %v5607_v60 = vld [vmem:[#allocation6 + $0xa9] sm:$0xff] }
  0x85   : > { %v926_v10 = vadd.f32 %v870_v37, %v755_v61  ;;  %v930_v25 = vadd.f32 %v874_v43, %v759_v23  ;;  %v190_v45 = vmul.f32 %v5448_v11, %v5350_v6  ;;  %v357_v5 = vmul.f32 %v5438_v0, %v5359_v12  ;;  %v5599_v43 = vld [vmem:[#allocation6 + $0xa8] sm:$0xff] }
  0x86   : > { %v1662_v19 = vmax.f32 %v1606_v63, %v1610_v2  ;;  %v361_v48 = vmul.f32 %v5454_v18, %v5359_v12  ;;  %v528_v58 = vmul.f32 %v5443_v7, %v5369_v16  ;;  %v532_v8 = vmul.f32 %v5460_v27, %v5369_v16 }
  0x87   : > { %v1097_v55 = vadd.f32 %v1041_v40, %v926_v10  ;;  %v1101_v59 = vadd.f32 %v1045_v50, %v930_v25  ;;  %v413_v15 = vadd.f32 %v357_v5, %v186_v9  ;;  %v700_v32 = vmul.f32 %v5448_v11, %v5381_v22 }
  0x88   : > { %1690 = vst [vmem:[#allocation2 + $0x18] sm:$0x3] %v1662_v19  ;;  %v417_v0 = vadd.f32 %v361_v48, %v190_v45  ;;  %v704_v26 = vmul.f32 %v5381_v22, %v5583_v31  ;;  %v871_v7 = vmul.f32 %v5454_v18, %v5390_v29  ;;  %v875_v38 = vmul.f32 %v5390_v29, %v5587_v21 }
  0x89   : > { %v1269_v28 = vadd.f32 %v1213_v47, %v1097_v55  ;;  %v1273_v37 = vadd.f32 %v1217_v36, %v1101_v59  ;;  %v584_v14 = vadd.f32 %v528_v58, %v413_v15  ;;  %v1042_v11 = vmul.f32 %v5460_v27, %v5393_v30  ;;  %v5611_v36 = vld [vmem:[#allocation6 + $0xaa] sm:$0xff] }
  0x8a   : > { %v588_v40 = vadd.f32 %v532_v8, %v417_v0  ;;  %v1046_v49 = vmul.f32 %v5393_v30, %v5595_v17  ;;  %v1214_v18 = vmul.f32 %v5407_v41, %v5583_v31  ;;  %v1218_v54 = vmul.f32 %v5407_v41, %v5599_v43  ;;  %v5631_v59 = vld [vmem:[#allocation6 + $0x90] sm:$0xff] }
  0x8b   : > { %v1440_v50 = vadd.f32 %v1384_v52, %v1269_v28  ;;  %v1444_v47 = vadd.f32 %v1388_v34, %v1273_v37  ;;  %v756_v56 = vadd.f32 %v700_v32, %v584_v14  ;;  %v1385_v27 = vmul.f32 %v5410_v42, %v5587_v21  ;;  %v5643_v37 = vld [vmem:[#allocation6 + $0x92] sm:$0xff] }
  0x8c   : > { %v760_v61 = vadd.f32 %v704_v26, %v588_v40  ;;  %v1389_v23 = vmul.f32 %v5410_v42, %v5607_v60  ;;  %v1556_v63 = vmul.f32 %v5425_v53, %v5595_v17  ;;  %v1560_v2 = vmul.f32 %v5425_v53, %v5611_v36  ;;  %v5647_v14 = vld [vmem:[#allocation6 + $0xb0] sm:$0xff] }
  0x8d   : > { %v1611_v52 = vadd.f32 %v1555_v3, %v1440_v50  ;;  %v1615_v34 = vadd.f32 %v1559_v57, %v1444_v47  ;;  %v927_v9 = vadd.f32 %v871_v7, %v756_v56  ;;  %v187_v10 = vmul.f32 %v5472_v1, %v5350_v6  ;;  %v131_v50 = vld [vmem:[#allocation6 + $0x58] sm:$0x3] }
  0x8e   : > { %v931_v25 = vadd.f32 %v875_v38, %v760_v61  ;;  %v191_v45 = vmul.f32 %v5487_v20, %v5350_v6  ;;  %v358_v5 = vmul.f32 %v5477_v4, %v5359_v12  ;;  %v362_v19 = vmul.f32 %v5491_v24, %v5359_v12  ;;  %v5635_v4 = vld [vmem:[#allocation6 + $0x91] sm:$0xff] }
  0x8f   : > { %v1663_v48 = vmax.f32 %v1611_v52, %v1615_v34  ;;  %v1098_v58 = vadd.f32 %v1042_v11, %v927_v9  ;;  %v529_v3 = vmul.f32 %v5482_v13, %v5369_v16  ;;  %v533_v57 = vmul.f32 %v5499_v46, %v5369_v16  ;;  %v5649_v11 = vld [vmem:[#allocation6 + $0xb1] sm:$0xff]  ;;  %v306_v34 = vld [vmem:[#allocation6 + $0x79] sm:$0x3] }
  0x90   : > { %v1102_v8 = vadd.f32 %v1046_v49, %v931_v25  ;;  %v414_v1 = vadd.f32 %v358_v5, %v187_v10  ;;  %v418_v55 = vadd.f32 %v362_v19, %v191_v45  ;;  %v701_v15 = vmul.f32 %v5487_v20, %v5381_v22  ;;  %v135_v47 = vld [vmem:[#allocation6 + $0x78] sm:$0x3]  ;;  %v473_v9 = vld [vmem:[#allocation6 + $0x5a] sm:$0x3] }
  0x91   : > { %1691 = vst [vmem:[#allocation2 + $0x20] sm:$0xff] %v1663_v48  ;;  %v1270_v32 = vadd.f32 %v1214_v18, %v1098_v58  ;;  %v705_v0 = vmul.f32 %v5381_v22, %v5631_v59  ;;  %v872_v13 = vmul.f32 %v5491_v24, %v5390_v29  ;;  %v876_v26 = vmul.f32 %v5390_v29, %v5635_v4  ;;  %v477_v19 = vld [vmem:[#allocation6 + $0x7a] sm:$0x3] }
  0x92   : > { %v1274_v7 = vadd.f32 %v1218_v54, %v1102_v8  ;;  %v585_v38 = vadd.f32 %v529_v3, %v414_v1  ;;  %v589_v28 = vadd.f32 %v533_v57, %v418_v55  ;;  %v1043_v20 = vmul.f32 %v5499_v46, %v5393_v30  ;;  %v5657_v54 = vld [vmem:[#allocation6 + $0xb2] sm:$0xff] }
  0x93   : > { %v1441_v40 = vadd.f32 %v1385_v27, %v1270_v32  ;;  %v1047_v49 = vmul.f32 %v5393_v30, %v5643_v37  ;;  %v1215_v24 = vmul.f32 %v5407_v41, %v5631_v59  ;;  %v1219_v18 = vmul.f32 %v5407_v41, %v5647_v14  ;;  %v302_v27 = vld [vmem:[#allocation6 + $0x59] sm:$0x3] }
  0x94   : > { %v1445_v56 = vadd.f32 %v1389_v23, %v1274_v7  ;;  %v757_v46 = vadd.f32 %v701_v15, %v585_v38  ;;  %v761_v61 = vadd.f32 %v705_v0, %v589_v28  ;;  %v1386_v52 = vmul.f32 %v5410_v42, %v5635_v4  ;;  %v645_v57 = vld [vmem:[#allocation6 + $0x78] sm:$0x3] }
  0x95   : > { %v1612_v10 = vadd.f32 %v1556_v63, %v1441_v40  ;;  %v1390_v25 = vmul.f32 %v5410_v42, %v5649_v11  ;;  %v1557_v45 = vmul.f32 %v5425_v53, %v5643_v37  ;;  %v1561_v5 = vmul.f32 %v5425_v53, %v5657_v54  ;;  %v649_v8 = vld [vmem:[#allocation6 + $0x98] sm:$0x3] }
  0x96   : > { %v1616_v23 = vadd.f32 %v1560_v2, %v1445_v56  ;;  %v928_v48 = vadd.f32 %v872_v13, %v757_v46  ;;  %v932_v58 = vadd.f32 %v876_v26, %v761_v61  ;;  %v188_v3 = vmul.f32 %v5350_v6, %v131_v50  ;;  %v816_v32 = vld [vmem:[#allocation6 + $0x79] sm:$0x3] }
  0x97   : > { %v192_v1 = vmul.f32 %v5350_v6, %v135_v47  ;;  %v359_v63 = vmul.f32 %v5359_v12, %v302_v27  ;;  %v363_v55 = vmul.f32 %v5359_v12, %v306_v34  ;;  %v530_v15 = vmul.f32 %v5369_v16, %v473_v9  ;;  %v820_v0 = vld [vmem:[#allocation6 + $0x99] sm:$0x3] }
  0x98   : > { %v1664_v7 = vmax.f32 %v1612_v10, %v1616_v23  ;;  %v1099_v38 = vadd.f32 %v1043_v20, %v928_v48  ;;  %v1103_v28 = vadd.f32 %v1047_v49, %v932_v58  ;;  %v534_v2 = vmul.f32 %v5369_v16, %v477_v19  ;;  %v987_v13 = vld [vmem:[#allocation6 + $0x7a] sm:$0x3]  ;;  %v1159_v46 = vld [vmem:[#allocation6 + $0x98] sm:$0x3] }
  0x99   : > { %v991_v26 = vld [vmem:[#allocation6 + $0x9a] sm:$0x3]  ;;  %v415_v40 = vadd.f32 %v359_v63, %v188_v3  ;;  %v419_v50 = vadd.f32 %v363_v55, %v192_v1  ;;  %v702_v56 = vmul.f32 %v5381_v22, %v645_v57  ;;  %v706_v47 = vmul.f32 %v5381_v22, %v649_v8  ;;  %v1163_v61 = vld [vmem:[#allocation6 + $0xb8] sm:$0x3] }
  0x9a   : > { %1692 = vst [vmem:[#allocation2 + $0x28] sm:$0xff] %v1664_v7  ;;  %v1271_v27 = vadd.f32 %v1215_v24, %v1099_v38  ;;  %v1275_v34 = vadd.f32 %v1219_v18, %v1103_v28  ;;  %v873_v9 = vmul.f32 %v5390_v29, %v816_v32  ;;  %v877_v20 = vmul.f32 %v5390_v29, %v820_v0  ;;  %v1330_v49 = vld [vmem:[#allocation6 + $0x99] sm:$0x3] }
  0x9b   : > { %v1334_v10 = vld [vmem:[#allocation6 + $0xb9] sm:$0x3]  ;;  %v586_v19 = vadd.f32 %v530_v15, %v415_v40  ;;  %v590_v23 = vadd.f32 %v534_v2, %v419_v50  ;;  %v1044_v48 = vmul.f32 %v5393_v30, %v987_v13  ;;  %v1048_v58 = vmul.f32 %v5393_v30, %v991_v26 }
  0x9c   : > { %v1501_v3 = vld [vmem:[#allocation6 + $0x9a] sm:$0x3]  ;;  %v1442_v8 = vadd.f32 %v1386_v52, %v1271_v27  ;;  %v1446_v1 = vadd.f32 %v1390_v25, %v1275_v34  ;;  %v1216_v63 = vmul.f32 %v5407_v41, %v1159_v46  ;;  %v1220_v24 = vmul.f32 %v5407_v41, %v1163_v61  ;;  %v5697_v46 = vld [vmem:[#allocation6 + $0xc0] sm:$0xff] }
  0x9d   : > { %v1505_v57 = vld [vmem:[#allocation6 + $0xba] sm:$0x3]  ;;  %v758_v18 = vadd.f32 %v702_v56, %v586_v19  ;;  %v762_v55 = vadd.f32 %v706_v47, %v590_v23  ;;  %v1387_v32 = vmul.f32 %v5410_v42, %v1330_v49  ;;  %v1391_v0 = vmul.f32 %v5410_v42, %v1334_v10  ;;  %v5703_v34 = vld [vmem:[#allocation6 + $0xc1] sm:$0xff] }
  0x9e   : > { %v1613_v15 = vadd.f32 %v1557_v45, %v1442_v8  ;;  %v1617_v7 = vadd.f32 %v1561_v5, %v1446_v1  ;;  %v1558_v38 = vmul.f32 %v5425_v53, %v1501_v3  ;;  %v1562_v28 = vmul.f32 %v5425_v53, %v1505_v57  ;;  %v5709_v10 = vld [vmem:[#allocation6 + $0xc2] sm:$0xff] }
  0x9f   : > { %v929_v2 = vadd.f32 %v873_v9, %v758_v18  ;;  %v933_v13 = vadd.f32 %v877_v20, %v762_v55  ;;  %v193_v52 = vmul.f32 %v5535_v33, %v5350_v6  ;;  %v197_v25 = vmul.f32 %v5553_v51, %v5350_v6  ;;  %v5721_v1 = vld [vmem:[#allocation6 + $0xe1] sm:$0xff] }
  0xa0   : > { %v1665_v26 = vmax.f32 %v1613_v15, %v1617_v7  ;;  %v364_v40 = vmul.f32 %v5541_v39, %v5359_v12  ;;  %v368_v45 = vmul.f32 %v5559_v35, %v5359_v12  ;;  %v535_v5 = vmul.f32 %v5547_v44, %v5369_v16  ;;  %v5727_v55 = vld [vmem:[#allocation6 + $0xe2] sm:$0xff] }
  0xa1   : > { %v1100_v50 = vadd.f32 %v1044_v48, %v929_v2  ;;  %v1104_v56 = vadd.f32 %v1048_v58, %v933_v13  ;;  %v539_v47 = vmul.f32 %v5565_v62, %v5369_v16  ;;  %v707_v33 = vmul.f32 %v5553_v51, %v5381_v22  ;;  %v5715_v58 = vld [vmem:[#allocation6 + $0xe0] sm:$0xff] }
  0xa2   : > { %1693 = vst [vmem:[#allocation2 + $0x30] sm:$0xff] %v1665_v26  ;;  %v420_v61 = vadd.f32 %v364_v40, %v193_v52  ;;  %v424_v27 = vadd.f32 %v368_v45, %v197_v25  ;;  %v711_v39 = vmul.f32 %v5381_v22, %v5697_v46  ;;  %v878_v44 = vmul.f32 %v5559_v35, %v5390_v29 }
  0xa3   : > { %v1272_v9 = vadd.f32 %v1216_v63, %v1100_v50  ;;  %v1276_v20 = vadd.f32 %v1220_v24, %v1104_v56  ;;  %v882_v49 = vmul.f32 %v5390_v29, %v5703_v34  ;;  %v1049_v51 = vmul.f32 %v5565_v62, %v5393_v30  ;;  %v5745_v56 = vld [vmem:[#allocation6 + $0xc8] sm:$0xff] }
  0xa4   : > { %v591_v19 = vadd.f32 %v535_v5, %v420_v61  ;;  %v595_v23 = vadd.f32 %v539_v47, %v424_v27  ;;  %v1053_v48 = vmul.f32 %v5393_v30, %v5709_v10  ;;  %v1221_v35 = vmul.f32 %v5407_v41, %v5697_v46 }
  0xa5   : > { %v1443_v3 = vadd.f32 %v1387_v32, %v1272_v9  ;;  %v1447_v57 = vadd.f32 %v1391_v0, %v1276_v20  ;;  %v1225_v8 = vmul.f32 %v5407_v41, %v5715_v58  ;;  %v1392_v62 = vmul.f32 %v5410_v42, %v5703_v34  ;;  %v5757_v20 = vld [vmem:[#allocation6 + $0xca] sm:$0xff] }
  0xa6   : > { %v763_v63 = vadd.f32 %v707_v33, %v591_v19  ;;  %v767_v24 = vadd.f32 %v711_v39, %v595_v23  ;;  %v1396_v18 = vmul.f32 %v5410_v42, %v5721_v1  ;;  %v1563_v15 = vmul.f32 %v5425_v53, %v5709_v10  ;;  %v5749_v33 = vld [vmem:[#allocation6 + $0xc9] sm:$0xff] }
  0xa7   : > { %v1614_v32 = vadd.f32 %v1558_v38, %v1443_v3  ;;  %v1618_v0 = vadd.f32 %v1562_v28, %v1447_v57  ;;  %v1567_v7 = vmul.f32 %v5425_v53, %v5727_v55  ;;  %v194_v2 = vmul.f32 %v5583_v31, %v5350_v6  ;;  %v5769_v57 = vld [vmem:[#allocation6 + $0xe9] sm:$0xff] }
  0xa8   : > { %v934_v13 = vadd.f32 %v878_v44, %v763_v63  ;;  %v938_v52 = vadd.f32 %v882_v49, %v767_v24  ;;  %v198_v25 = vmul.f32 %v5599_v43, %v5350_v6  ;;  %v365_v26 = vmul.f32 %v5587_v21, %v5359_v12  ;;  %v5761_v49 = vld [vmem:[#allocation6 + $0xe8] sm:$0xff] }
  0xa9   : > { %v1666_v40 = vmax.f32 %v1614_v32, %v1618_v0  ;;  %v369_v45 = vmul.f32 %v5607_v60, %v5359_v12  ;;  %v536_v38 = vmul.f32 %v5595_v17, %v5369_v16  ;;  %v540_v28 = vmul.f32 %v5611_v36, %v5369_v16 }
  0xaa   : > { %v1105_v5 = vadd.f32 %v1049_v51, %v934_v13  ;;  %v1109_v31 = vadd.f32 %v1053_v48, %v938_v52  ;;  %v421_v50 = vadd.f32 %v365_v26, %v194_v2  ;;  %v708_v47 = vmul.f32 %v5599_v43, %v5381_v22 }
  0xab   : > { %1694 = vst [vmem:[#allocation2 + $0x38] sm:$0x3] %v1666_v40  ;;  %v425_v21 = vadd.f32 %v369_v45, %v198_v25  ;;  %v712_v61 = vmul.f32 %v5381_v22, %v5745_v56  ;;  %v879_v17 = vmul.f32 %v5607_v60, %v5390_v29  ;;  %v883_v27 = vmul.f32 %v5390_v29, %v5749_v33 }
  0xac   : > { %v1277_v39 = vadd.f32 %v1221_v35, %v1105_v5  ;;  %v1281_v44 = vadd.f32 %v1225_v8, %v1109_v31  ;;  %v592_v9 = vadd.f32 %v536_v38, %v421_v50  ;;  %v1050_v43 = vmul.f32 %v5611_v36, %v5393_v30  ;;  %v5773_v8 = vld [vmem:[#allocation6 + $0xea] sm:$0xff] }
  0xad   : > { %v596_v51 = vadd.f32 %v540_v28, %v425_v21  ;;  %v1054_v19 = vmul.f32 %v5393_v30, %v5757_v20  ;;  %v1222_v60 = vmul.f32 %v5407_v41, %v5745_v56  ;;  %v1226_v23 = vmul.f32 %v5407_v41, %v5761_v49  ;;  %v5793_v31 = vld [vmem:[#allocation6 + $0xd0] sm:$0xff] }
  0xae   : > { %v1448_v48 = vadd.f32 %v1392_v62, %v1277_v39  ;;  %v1452_v35 = vadd.f32 %v1396_v18, %v1281_v44  ;;  %v764_v3 = vadd.f32 %v708_v47, %v592_v9  ;;  %v1393_v36 = vmul.f32 %v5410_v42, %v5749_v33  ;;  %v5805_v44 = vld [vmem:[#allocation6 + $0xd2] sm:$0xff] }
  0xaf   : > { %v768_v63 = vadd.f32 %v712_v61, %v596_v51  ;;  %v1397_v24 = vmul.f32 %v5410_v42, %v5769_v57  ;;  %v1564_v32 = vmul.f32 %v5425_v53, %v5757_v20  ;;  %v1568_v0 = vmul.f32 %v5425_v53, %v5773_v8  ;;  %v5809_v9 = vld [vmem:[#allocation6 + $0xf0] sm:$0xff] }
  0xb0   : > { %v1619_v62 = vadd.f32 %v1563_v15, %v1448_v48  ;;  %v1623_v18 = vadd.f32 %v1567_v7, %v1452_v35  ;;  %v935_v2 = vadd.f32 %v879_v17, %v764_v3  ;;  %v195_v13 = vmul.f32 %v5631_v59, %v5350_v6  ;;  %v139_v48 = vld [vmem:[#allocation6 + $0x98] sm:$0x3] }
  0xb1   : > { %v939_v52 = vadd.f32 %v883_v27, %v768_v63  ;;  %v199_v25 = vmul.f32 %v5647_v14, %v5350_v6  ;;  %v366_v26 = vmul.f32 %v5635_v4, %v5359_v12  ;;  %v370_v40 = vmul.f32 %v5649_v11, %v5359_v12  ;;  %v5797_v4 = vld [vmem:[#allocation6 + $0xd1] sm:$0xff] }
  0xb2   : > { %v1667_v45 = vmax.f32 %v1619_v62, %v1623_v18  ;;  %v1106_v38 = vadd.f32 %v1050_v43, %v935_v2  ;;  %v537_v15 = vmul.f32 %v5643_v37, %v5369_v16  ;;  %v541_v7 = vmul.f32 %v5657_v54, %v5369_v16  ;;  %v5811_v43 = vld [vmem:[#allocation6 + $0xf1] sm:$0xff]  ;;  %v314_v18 = vld [vmem:[#allocation6 + $0xb9] sm:$0x3] }
  0xb3   : > { %v1110_v28 = vadd.f32 %v1054_v19, %v939_v52  ;;  %v422_v59 = vadd.f32 %v366_v26, %v195_v13  ;;  %v426_v5 = vadd.f32 %v370_v40, %v199_v25  ;;  %v709_v50 = vmul.f32 %v5647_v14, %v5381_v22  ;;  %v143_v35 = vld [vmem:[#allocation6 + $0xb8] sm:$0x3]  ;;  %v481_v2 = vld [vmem:[#allocation6 + $0x9a] sm:$0x3] }
  0xb4   : > { %1695 = vst [vmem:[#allocation2 + $0x40] sm:$0xff] %v1667_v45  ;;  %v1278_v47 = vadd.f32 %v1222_v60, %v1106_v38  ;;  %v713_v21 = vmul.f32 %v5381_v22, %v5793_v31  ;;  %v880_v37 = vmul.f32 %v5649_v11, %v5390_v29  ;;  %v884_v61 = vmul.f32 %v5390_v29, %v5797_v4  ;;  %v485_v40 = vld [vmem:[#allocation6 + $0xba] sm:$0x3] }
  0xb5   : > { %v1282_v17 = vadd.f32 %v1226_v23, %v1110_v28  ;;  %v593_v27 = vadd.f32 %v537_v15, %v422_v59  ;;  %v597_v39 = vadd.f32 %v541_v7, %v426_v5  ;;  %v1051_v14 = vmul.f32 %v5657_v54, %v5393_v30  ;;  %v5819_v23 = vld [vmem:[#allocation6 + $0xf2] sm:$0xff] }
  0xb6   : > { %v1449_v51 = vadd.f32 %v1393_v36, %v1278_v47  ;;  %v1055_v19 = vmul.f32 %v5393_v30, %v5805_v44  ;;  %v1223_v11 = vmul.f32 %v5407_v41, %v5793_v31  ;;  %v1227_v60 = vmul.f32 %v5407_v41, %v5809_v9  ;;  %v310_v36 = vld [vmem:[#allocation6 + $0x99] sm:$0x3] }
  0xb7   : > { %v1453_v3 = vadd.f32 %v1397_v24, %v1282_v17  ;;  %v765_v54 = vadd.f32 %v709_v50, %v593_v27  ;;  %v769_v63 = vadd.f32 %v713_v21, %v597_v39  ;;  %v1394_v62 = vmul.f32 %v5410_v42, %v5797_v4  ;;  %v653_v7 = vld [vmem:[#allocation6 + $0xb8] sm:$0x3] }
  0xb8   : > { %v1620_v13 = vadd.f32 %v1564_v32, %v1449_v51  ;;  %v1398_v52 = vmul.f32 %v5410_v42, %v5811_v43  ;;  %v1565_v25 = vmul.f32 %v5425_v53, %v5805_v44  ;;  %v1569_v26 = vmul.f32 %v5425_v53, %v5819_v23  ;;  %v657_v28 = vld [vmem:[#allocation6 + $0xd8] sm:$0x3] }
  0xb9   : > { %v1624_v24 = vadd.f32 %v1568_v0, %v1453_v3  ;;  %v936_v45 = vadd.f32 %v880_v37, %v765_v54  ;;  %v940_v38 = vadd.f32 %v884_v61, %v769_v63  ;;  %v196_v15 = vmul.f32 %v5350_v6, %v139_v48  ;;  %v824_v47 = vld [vmem:[#allocation6 + $0xb9] sm:$0x3] }
  0xba   : > { %v200_v59 = vmul.f32 %v5350_v6, %v143_v35  ;;  %v367_v32 = vmul.f32 %v5359_v12, %v310_v36  ;;  %v371_v5 = vmul.f32 %v5359_v12, %v314_v18  ;;  %v538_v50 = vmul.f32 %v5369_v16, %v481_v2  ;;  %v828_v21 = vld [vmem:[#allocation6 + $0xd9] sm:$0x3] }
  0xbb   : > { %v1668_v17 = vmax.f32 %v1620_v13, %v1624_v24  ;;  %v1107_v27 = vadd.f32 %v1051_v14, %v936_v45  ;;  %v1111_v39 = vadd.f32 %v1055_v19, %v940_v38  ;;  %v542_v0 = vmul.f32 %v5369_v16, %v485_v40  ;;  %v995_v37 = vld [vmem:[#allocation6 + $0xba] sm:$0x3]  ;;  %v1167_v54 = vld [vmem:[#allocation6 + $0xd8] sm:$0x3] }
  0xbc   : > { %v999_v61 = vld [vmem:[#allocation6 + $0xda] sm:$0x3]  ;;  %v423_v51 = vadd.f32 %v367_v32, %v196_v15  ;;  %v427_v48 = vadd.f32 %v371_v5, %v200_v59  ;;  %v710_v3 = vmul.f32 %v5381_v22, %v653_v7  ;;  %v714_v35 = vmul.f32 %v5381_v22, %v657_v28  ;;  %v1171_v63 = vld [vmem:[#allocation6 + $0xf8] sm:$0x3] }
  0xbd   : > { %1696 = vst [vmem:[#allocation2 + $0x48] sm:$0xff] %v1668_v17  ;;  %v1279_v36 = vadd.f32 %v1223_v11, %v1107_v27  ;;  %v1283_v18 = vadd.f32 %v1227_v60, %v1111_v39  ;;  %v881_v2 = vmul.f32 %v5390_v29, %v824_v47  ;;  %v885_v14 = vmul.f32 %v5390_v29, %v828_v21  ;;  %v1338_v19 = vld [vmem:[#allocation6 + $0xd9] sm:$0x3] }
  0xbe   : > { %v1342_v13 = vld [vmem:[#allocation6 + $0xf9] sm:$0x3]  ;;  %v594_v40 = vadd.f32 %v538_v50, %v423_v51  ;;  %v598_v24 = vadd.f32 %v542_v0, %v427_v48  ;;  %v1052_v45 = vmul.f32 %v5393_v30, %v995_v37  ;;  %v1056_v38 = vmul.f32 %v5393_v30, %v999_v61 }
  0xbf   : > { %v1509_v15 = vld [vmem:[#allocation6 + $0xda] sm:$0x3]  ;;  %v1450_v28 = vadd.f32 %v1394_v62, %v1279_v36  ;;  %v1454_v59 = vadd.f32 %v1398_v52, %v1283_v18  ;;  %v1224_v32 = vmul.f32 %v5407_v41, %v1167_v54  ;;  %v1228_v11 = vmul.f32 %v5407_v41, %v1171_v63  ;;  %v5859_v54 = vld [vmem:[#allocation6 + $0x100] sm:$0xff] }
  0xc0   : > { %v1513_v7 = vld [vmem:[#allocation6 + $0xfa] sm:$0x3]  ;;  %v766_v60 = vadd.f32 %v710_v3, %v594_v40  ;;  %v770_v5 = vadd.f32 %v714_v35, %v598_v24  ;;  %v1395_v47 = vmul.f32 %v5410_v42, %v1338_v19  ;;  %v1399_v21 = vmul.f32 %v5410_v42, %v1342_v13  ;;  %v5865_v18 = vld [vmem:[#allocation6 + $0x101] sm:$0xff] }
  0xc1   : > { %v1621_v50 = vadd.f32 %v1565_v25, %v1450_v28  ;;  %v1625_v17 = vadd.f32 %v1569_v26, %v1454_v59  ;;  %v1566_v27 = vmul.f32 %v5425_v53, %v1509_v15  ;;  %v1570_v39 = vmul.f32 %v5425_v53, %v1513_v7  ;;  %v5871_v13 = vld [vmem:[#allocation6 + $0x102] sm:$0xff] }
  0xc2   : > { %v937_v0 = vadd.f32 %v881_v2, %v766_v60  ;;  %v941_v37 = vadd.f32 %v885_v14, %v770_v5  ;;  %v201_v62 = vmul.f32 %v5697_v46, %v5350_v6  ;;  %v205_v52 = vmul.f32 %v5715_v58, %v5350_v6  ;;  %v5883_v59 = vld [vmem:[#allocation6 + $0x121] sm:$0xff] }
  0xc3   : > { %v1669_v61 = vmax.f32 %v1621_v50, %v1625_v17  ;;  %v372_v51 = vmul.f32 %v5703_v34, %v5359_v12  ;;  %v376_v25 = vmul.f32 %v5721_v1, %v5359_v12  ;;  %v543_v26 = vmul.f32 %v5709_v10, %v5369_v16  ;;  %v5889_v5 = vld [vmem:[#allocation6 + $0x122] sm:$0xff] }
  0xc4   : > { %v1108_v48 = vadd.f32 %v1052_v45, %v937_v0  ;;  %v1112_v3 = vadd.f32 %v1056_v38, %v941_v37  ;;  %v547_v35 = vmul.f32 %v5727_v55, %v5369_v16  ;;  %v715_v46 = vmul.f32 %v5715_v58, %v5381_v22  ;;  %v5877_v38 = vld [vmem:[#allocation6 + $0x120] sm:$0xff] }
  0xc5   : > { %1697 = vst [vmem:[#allocation2 + $0x50] sm:$0xff] %v1669_v61  ;;  %v428_v63 = vadd.f32 %v372_v51, %v201_v62  ;;  %v432_v36 = vadd.f32 %v376_v25, %v205_v52  ;;  %v719_v34 = vmul.f32 %v5381_v22, %v5859_v54  ;;  %v886_v10 = vmul.f32 %v5721_v1, %v5390_v29 }
  0xc6   : > { %v1280_v2 = vadd.f32 %v1224_v32, %v1108_v48  ;;  %v1284_v14 = vadd.f32 %v1228_v11, %v1112_v3  ;;  %v890_v19 = vmul.f32 %v5390_v29, %v5865_v18  ;;  %v1057_v58 = vmul.f32 %v5727_v55, %v5393_v30  ;;  %v5907_v3 = vld [vmem:[#allocation6 + $0x108] sm:$0xff] }
  0xc7   : > { %v599_v40 = vadd.f32 %v543_v26, %v428_v63  ;;  %v603_v24 = vadd.f32 %v547_v35, %v432_v36  ;;  %v1061_v45 = vmul.f32 %v5393_v30, %v5871_v13  ;;  %v1229_v1 = vmul.f32 %v5407_v41, %v5859_v54 }
  0xc8   : > { %v1451_v15 = vadd.f32 %v1395_v47, %v1280_v2  ;;  %v1455_v7 = vadd.f32 %v1399_v21, %v1284_v14  ;;  %v1233_v28 = vmul.f32 %v5407_v41, %v5877_v38  ;;  %v1400_v55 = vmul.f32 %v5410_v42, %v5865_v18  ;;  %v5919_v14 = vld [vmem:[#allocation6 + $0x10a] sm:$0xff] }
  0xc9   : > { %v771_v32 = vadd.f32 %v715_v46, %v599_v40  ;;  %v775_v11 = vadd.f32 %v719_v34, %v603_v24  ;;  %v1404_v60 = vmul.f32 %v5410_v42, %v5883_v59  ;;  %v1571_v50 = vmul.f32 %v5425_v53, %v5871_v13  ;;  %v5911_v46 = vld [vmem:[#allocation6 + $0x109] sm:$0xff] }
  0xca   : > { %v1622_v47 = vadd.f32 %v1566_v27, %v1451_v15  ;;  %v1626_v21 = vadd.f32 %v1570_v39, %v1455_v7  ;;  %v1575_v17 = vmul.f32 %v5425_v53, %v5889_v5  ;;  %v202_v0 = vmul.f32 %v5745_v56, %v5350_v6  ;;  %v5931_v7 = vld [vmem:[#allocation6 + $0x129] sm:$0xff] }
  0xcb   : > { %v942_v37 = vadd.f32 %v886_v10, %v771_v32  ;;  %v946_v62 = vadd.f32 %v890_v19, %v775_v11  ;;  %v206_v52 = vmul.f32 %v5761_v49, %v5350_v6  ;;  %v373_v61 = vmul.f32 %v5749_v33, %v5359_v12  ;;  %v5923_v19 = vld [vmem:[#allocation6 + $0x128] sm:$0xff] }
  0xcc   : > { %v1670_v51 = vmax.f32 %v1622_v47, %v1626_v21  ;;  %v377_v25 = vmul.f32 %v5769_v57, %v5359_v12  ;;  %v544_v27 = vmul.f32 %v5757_v20, %v5369_v16  ;;  %v548_v39 = vmul.f32 %v5773_v8, %v5369_v16 }
  0xcd   : > { %v1113_v26 = vadd.f32 %v1057_v58, %v942_v37  ;;  %v1117_v56 = vadd.f32 %v1061_v45, %v946_v62  ;;  %v429_v48 = vadd.f32 %v373_v61, %v202_v0  ;;  %v716_v35 = vmul.f32 %v5761_v49, %v5381_v22 }
  0xce   : > { %1698 = vst [vmem:[#allocation2 + $0x58] sm:$0x3] %v1670_v51  ;;  %v433_v33 = vadd.f32 %v377_v25, %v206_v52  ;;  %v720_v63 = vmul.f32 %v5381_v22, %v5907_v3  ;;  %v887_v20 = vmul.f32 %v5769_v57, %v5390_v29  ;;  %v891_v36 = vmul.f32 %v5390_v29, %v5911_v46 }
  0xcf   : > { %v1285_v34 = vadd.f32 %v1229_v1, %v1113_v26  ;;  %v1289_v10 = vadd.f32 %v1233_v28, %v1117_v56  ;;  %v600_v2 = vadd.f32 %v544_v27, %v429_v48  ;;  %v1058_v49 = vmul.f32 %v5773_v8, %v5393_v30  ;;  %v5935_v28 = vld [vmem:[#allocation6 + $0x12a] sm:$0xff] }
  0xd0   : > { %v604_v58 = vadd.f32 %v548_v39, %v433_v33  ;;  %v1062_v40 = vmul.f32 %v5393_v30, %v5919_v14  ;;  %v1230_v57 = vmul.f32 %v5407_v41, %v5907_v3  ;;  %v1234_v24 = vmul.f32 %v5407_v41, %v5923_v19  ;;  %v5955_v56 = vld [vmem:[#allocation6 + $0x110] sm:$0xff] }
  0xd1   : > { %v1456_v45 = vadd.f32 %v1400_v55, %v1285_v34  ;;  %v1460_v1 = vadd.f32 %v1404_v60, %v1289_v10  ;;  %v772_v15 = vadd.f32 %v716_v35, %v600_v2  ;;  %v1401_v8 = vmul.f32 %v5410_v42, %v5911_v46  ;;  %v5967_v10 = vld [vmem:[#allocation6 + $0x112] sm:$0xff] }
  0xd2   : > { %v776_v32 = vadd.f32 %v720_v63, %v604_v58  ;;  %v1405_v11 = vmul.f32 %v5410_v42, %v5931_v7  ;;  %v1572_v47 = vmul.f32 %v5425_v53, %v5919_v14  ;;  %v1576_v21 = vmul.f32 %v5425_v53, %v5935_v28  ;;  %v5971_v2 = vld [vmem:[#allocation6 + $0x130] sm:$0xff] }
  0xd3   : > { %v1627_v55 = vadd.f32 %v1571_v50, %v1456_v45  ;;  %v1631_v60 = vadd.f32 %v1575_v17, %v1460_v1  ;;  %v943_v0 = vadd.f32 %v887_v20, %v772_v15  ;;  %v203_v37 = vmul.f32 %v5793_v31, %v5350_v6  ;;  %v147_v45 = vld [vmem:[#allocation6 + $0xd8] sm:$0x3] }
  0xd4   : > { %v947_v62 = vadd.f32 %v891_v36, %v776_v32  ;;  %v207_v52 = vmul.f32 %v5809_v9, %v5350_v6  ;;  %v374_v61 = vmul.f32 %v5797_v4, %v5359_v12  ;;  %v378_v51 = vmul.f32 %v5811_v43, %v5359_v12  ;;  %v5959_v4 = vld [vmem:[#allocation6 + $0x111] sm:$0xff] }
  0xd5   : > { %v1671_v25 = vmax.f32 %v1627_v55, %v1631_v60  ;;  %v1114_v27 = vadd.f32 %v1058_v49, %v943_v0  ;;  %v545_v50 = vmul.f32 %v5805_v44, %v5369_v16  ;;  %v549_v17 = vmul.f32 %v5819_v23, %v5369_v16  ;;  %v5973_v49 = vld [vmem:[#allocation6 + $0x131] sm:$0xff]  ;;  %v322_v60 = vld [vmem:[#allocation6 + $0xf9] sm:$0x3] }
  0xd6   : > { %v1118_v39 = vadd.f32 %v1062_v40, %v947_v62  ;;  %v430_v31 = vadd.f32 %v374_v61, %v203_v37  ;;  %v434_v26 = vadd.f32 %v378_v51, %v207_v52  ;;  %v717_v48 = vmul.f32 %v5809_v9, %v5381_v22  ;;  %v151_v1 = vld [vmem:[#allocation6 + $0xf8] sm:$0x3]  ;;  %v489_v0 = vld [vmem:[#allocation6 + $0xda] sm:$0x3] }
  0xd7   : > { %1699 = vst [vmem:[#allocation2 + $0x60] sm:$0xff] %v1671_v25  ;;  %v1286_v35 = vadd.f32 %v1230_v57, %v1114_v27  ;;  %v721_v33 = vmul.f32 %v5381_v22, %v5955_v56  ;;  %v888_v44 = vmul.f32 %v5811_v43, %v5390_v29  ;;  %v892_v63 = vmul.f32 %v5390_v29, %v5959_v4  ;;  %v493_v51 = vld [vmem:[#allocation6 + $0xfa] sm:$0x3] }
  0xd8   : > { %v1290_v20 = vadd.f32 %v1234_v24, %v1118_v39  ;;  %v601_v36 = vadd.f32 %v545_v50, %v430_v31  ;;  %v605_v34 = vadd.f32 %v549_v17, %v434_v26  ;;  %v1059_v9 = vmul.f32 %v5819_v23, %v5393_v30  ;;  %v5981_v24 = vld [vmem:[#allocation6 + $0x132] sm:$0xff] }
  0xd9   : > { %v1457_v58 = vadd.f32 %v1401_v8, %v1286_v35  ;;  %v1063_v40 = vmul.f32 %v5393_v30, %v5967_v10  ;;  %v1231_v43 = vmul.f32 %v5407_v41, %v5955_v56  ;;  %v1235_v57 = vmul.f32 %v5407_v41, %v5971_v2  ;;  %v318_v8 = vld [vmem:[#allocation6 + $0xd9] sm:$0x3] }
  0xda   : > { %v1461_v15 = vadd.f32 %v1405_v11, %v1290_v20  ;;  %v773_v23 = vadd.f32 %v717_v48, %v601_v36  ;;  %v777_v32 = vadd.f32 %v721_v33, %v605_v34  ;;  %v1402_v55 = vmul.f32 %v5410_v42, %v5959_v4  ;;  %v661_v17 = vld [vmem:[#allocation6 + $0xf8] sm:$0x3] }
  0xdb   : > { %v1628_v37 = vadd.f32 %v1572_v47, %v1457_v58  ;;  %v1406_v62 = vmul.f32 %v5410_v42, %v5973_v49  ;;  %v1573_v52 = vmul.f32 %v5425_v53, %v5967_v10  ;;  %v1577_v61 = vmul.f32 %v5425_v53, %v5981_v24  ;;  %v665_v39 = vld [vmem:[#allocation6 + $0x118] sm:$0x3] }
  0xdc   : > { %v1632_v11 = vadd.f32 %v1576_v21, %v1461_v15  ;;  %v944_v25 = vadd.f32 %v888_v44, %v773_v23  ;;  %v948_v27 = vadd.f32 %v892_v63, %v777_v32  ;;  %v204_v50 = vmul.f32 %v5350_v6, %v147_v45  ;;  %v832_v35 = vld [vmem:[#allocation6 + $0xf9] sm:$0x3] }
  0xdd   : > { %v208_v31 = vmul.f32 %v5350_v6, %v151_v1  ;;  %v375_v47 = vmul.f32 %v5359_v12, %v318_v8  ;;  %v379_v26 = vmul.f32 %v5359_v12, %v322_v60  ;;  %v546_v48 = vmul.f32 %v5369_v16, %v489_v0  ;;  %v836_v33 = vld [vmem:[#allocation6 + $0x119] sm:$0x3] }
  0xde   : > { %v1672_v20 = vmax.f32 %v1628_v37, %v1632_v11  ;;  %v1115_v36 = vadd.f32 %v1059_v9, %v944_v25  ;;  %v1119_v34 = vadd.f32 %v1063_v40, %v948_v27  ;;  %v550_v21 = vmul.f32 %v5369_v16, %v493_v51  ;;  %v1003_v44 = vld [vmem:[#allocation6 + $0xfa] sm:$0x3]  ;;  %v1175_v23 = vld [vmem:[#allocation6 + $0x118] sm:$0x3] }
  0xdf   : > { %v1007_v63 = vld [vmem:[#allocation6 + $0x11a] sm:$0x3]  ;;  %v431_v58 = vadd.f32 %v375_v47, %v204_v50  ;;  %v435_v45 = vadd.f32 %v379_v26, %v208_v31  ;;  %v718_v15 = vmul.f32 %v5381_v22, %v661_v17  ;;  %v722_v1 = vmul.f32 %v5381_v22, %v665_v39  ;;  %v1179_v32 = vld [vmem:[#allocation6 + $0x138] sm:$0x3] }
  0xe0   : > { %1700 = vst [vmem:[#allocation2 + $0x68] sm:$0xff] %v1672_v20  ;;  %v1287_v8 = vadd.f32 %v1231_v43, %v1115_v36  ;;  %v1291_v60 = vadd.f32 %v1235_v57, %v1119_v34  ;;  %v889_v0 = vmul.f32 %v5390_v29, %v832_v35  ;;  %v893_v9 = vmul.f32 %v5390_v29, %v836_v33  ;;  %v1346_v40 = vld [vmem:[#allocation6 + $0x119] sm:$0x3] }
  0xe1   : > { %v1350_v37 = vld [vmem:[#allocation6 + $0x139] sm:$0x3]  ;;  %v602_v51 = vadd.f32 %v546_v48, %v431_v58  ;;  %v606_v11 = vadd.f32 %v550_v21, %v435_v45  ;;  %v1060_v25 = vmul.f32 %v5393_v30, %v1003_v44  ;;  %v1064_v27 = vmul.f32 %v5393_v30, %v1007_v63 }
  0xe2   : > { %v1517_v50 = vld [vmem:[#allocation6 + $0x11a] sm:$0x3]  ;;  %v1458_v39 = vadd.f32 %v1402_v55, %v1287_v8  ;;  %v1462_v31 = vadd.f32 %v1406_v62, %v1291_v60  ;;  %v1232_v47 = vmul.f32 %v5407_v41, %v1175_v23  ;;  %v1236_v43 = vmul.f32 %v5407_v41, %v1179_v32  ;;  %v6021_v23 = vld [vmem:[#allocation6 + $0x140] sm:$0xff] }
  0xe3   : > { %v1521_v17 = vld [vmem:[#allocation6 + $0x13a] sm:$0x3]  ;;  %v774_v57 = vadd.f32 %v718_v15, %v602_v51  ;;  %v778_v26 = vadd.f32 %v722_v1, %v606_v11  ;;  %v1403_v35 = vmul.f32 %v5410_v42, %v1346_v40  ;;  %v1407_v33 = vmul.f32 %v5410_v42, %v1350_v37  ;;  %v6027_v60 = vld [vmem:[#allocation6 + $0x141] sm:$0xff] }
  0xe4   : > { %v1629_v48 = vadd.f32 %v1573_v52, %v1458_v39  ;;  %v1633_v20 = vadd.f32 %v1577_v61, %v1462_v31  ;;  %v1574_v36 = vmul.f32 %v5425_v53, %v1517_v50  ;;  %v1578_v34 = vmul.f32 %v5425_v53, %v1521_v17  ;;  %v6033_v37 = vld [vmem:[#allocation6 + $0x142] sm:$0xff] }
  0xe5   : > { %v945_v21 = vadd.f32 %v889_v0, %v774_v57  ;;  %v949_v44 = vadd.f32 %v893_v9, %v778_v26  ;;  %v209_v55 = vmul.f32 %v5859_v54, %v5350_v6  ;;  %v213_v62 = vmul.f32 %v5877_v38, %v5350_v6  ;;  %v6045_v31 = vld [vmem:[#allocation6 + $0x161] sm:$0xff] }
  0xe6   : > { %v1673_v63 = vmax.f32 %v1629_v48, %v1633_v20  ;;  %v380_v58 = vmul.f32 %v5865_v18, %v5359_v12  ;;  %v384_v52 = vmul.f32 %v5883_v59, %v5359_v12  ;;  %v551_v61 = vmul.f32 %v5871_v13, %v5369_v16  ;;  %v6051_v26 = vld [vmem:[#allocation6 + $0x162] sm:$0xff] }
  0xe7   : > { %v1116_v45 = vadd.f32 %v1060_v25, %v945_v21  ;;  %v1120_v15 = vadd.f32 %v1064_v27, %v949_v44  ;;  %v555_v1 = vmul.f32 %v5889_v5, %v5369_v16  ;;  %v723_v54 = vmul.f32 %v5877_v38, %v5381_v22  ;;  %v6039_v27 = vld [vmem:[#allocation6 + $0x160] sm:$0xff] }
  0xe8   : > { %1701 = vst [vmem:[#allocation2 + $0x70] sm:$0xff] %v1673_v63  ;;  %v436_v32 = vadd.f32 %v380_v58, %v209_v55  ;;  %v440_v8 = vadd.f32 %v384_v52, %v213_v62  ;;  %v727_v18 = vmul.f32 %v5381_v22, %v6021_v23  ;;  %v894_v13 = vmul.f32 %v5883_v59, %v5390_v29 }
  0xe9   : > { %v1288_v0 = vadd.f32 %v1232_v47, %v1116_v45  ;;  %v1292_v9 = vadd.f32 %v1236_v43, %v1120_v15  ;;  %v898_v40 = vmul.f32 %v5390_v29, %v6027_v60  ;;  %v1065_v38 = vmul.f32 %v5889_v5, %v5393_v30  ;;  %v6069_v15 = vld [vmem:[#allocation6 + $0x148] sm:$0xff] }
  0xea   : > { %v607_v51 = vadd.f32 %v551_v61, %v436_v32  ;;  %v611_v11 = vadd.f32 %v555_v1, %v440_v8  ;;  %v1069_v25 = vmul.f32 %v5393_v30, %v6033_v37  ;;  %v1237_v59 = vmul.f32 %v5407_v41, %v6021_v23 }
  0xeb   : > { %v1459_v50 = vadd.f32 %v1403_v35, %v1288_v0  ;;  %v1463_v17 = vadd.f32 %v1407_v33, %v1292_v9  ;;  %v1241_v39 = vmul.f32 %v5407_v41, %v6039_v27  ;;  %v1408_v5 = vmul.f32 %v5410_v42, %v6027_v60  ;;  %v6081_v9 = vld [vmem:[#allocation6 + $0x14a] sm:$0xff] }
  0xec   : > { %v779_v47 = vadd.f32 %v723_v54, %v607_v51  ;;  %v783_v43 = vadd.f32 %v727_v18, %v611_v11  ;;  %v1412_v57 = vmul.f32 %v5410_v42, %v6045_v31  ;;  %v1579_v48 = vmul.f32 %v5425_v53, %v6033_v37  ;;  %v6073_v54 = vld [vmem:[#allocation6 + $0x149] sm:$0xff] }
  0xed   : > { %v1630_v35 = vadd.f32 %v1574_v36, %v1459_v50  ;;  %v1634_v33 = vadd.f32 %v1578_v34, %v1463_v17  ;;  %v1583_v20 = vmul.f32 %v5425_v53, %v6051_v26  ;;  %v210_v21 = vmul.f32 %v5907_v3, %v5350_v6  ;;  %v6093_v17 = vld [vmem:[#allocation6 + $0x169] sm:$0xff] }
  0xee   : > { %v950_v44 = vadd.f32 %v894_v13, %v779_v47  ;;  %v954_v55 = vadd.f32 %v898_v40, %v783_v43  ;;  %v214_v62 = vmul.f32 %v5923_v19, %v5350_v6  ;;  %v381_v63 = vmul.f32 %v5911_v46, %v5359_v12  ;;  %v6085_v40 = vld [vmem:[#allocation6 + $0x168] sm:$0xff] }
  0xef   : > { %v1674_v58 = vmax.f32 %v1630_v35, %v1634_v33  ;;  %v385_v52 = vmul.f32 %v5931_v7, %v5359_v12  ;;  %v552_v36 = vmul.f32 %v5919_v14, %v5369_v16  ;;  %v556_v34 = vmul.f32 %v5935_v28, %v5369_v16 }
  0xf0   : > { %v1121_v61 = vadd.f32 %v1065_v38, %v950_v44  ;;  %v1125_v3 = vadd.f32 %v1069_v25, %v954_v55  ;;  %v437_v45 = vadd.f32 %v381_v63, %v210_v21  ;;  %v724_v1 = vmul.f32 %v5923_v19, %v5381_v22 }
  0xf1   : > { %1702 = vst [vmem:[#allocation2 + $0x78] sm:$0x3] %v1674_v58  ;;  %v441_v46 = vadd.f32 %v385_v52, %v214_v62  ;;  %v728_v32 = vmul.f32 %v5381_v22, %v6069_v15  ;;  %v895_v14 = vmul.f32 %v5931_v7, %v5390_v29  ;;  %v899_v8 = vmul.f32 %v5390_v29, %v6073_v54 }
  0xf2   : > { %v1293_v18 = vadd.f32 %v1237_v59, %v1121_v61  ;;  %v1297_v13 = vadd.f32 %v1241_v39, %v1125_v3  ;;  %v608_v0 = vadd.f32 %v552_v36, %v437_v45  ;;  %v1066_v19 = vmul.f32 %v5935_v28, %v5393_v30  ;;  %v6097_v39 = vld [vmem:[#allocation6 + $0x16a] sm:$0xff] }
  0xf3   : > { %v612_v38 = vadd.f32 %v556_v34, %v441_v46  ;;  %v1070_v51 = vmul.f32 %v5393_v30, %v6081_v9  ;;  %v1238_v7 = vmul.f32 %v5407_v41, %v6069_v15  ;;  %v1242_v11 = vmul.f32 %v5407_v41, %v6085_v40  ;;  %v6117_v3 = vld [vmem:[#allocation6 + $0x150] sm:$0xff] }
  0xf4   : > { %v1464_v25 = vadd.f32 %v1408_v5, %v1293_v18  ;;  %v1468_v59 = vadd.f32 %v1412_v57, %v1297_v13  ;;  %v780_v50 = vadd.f32 %v724_v1, %v608_v0  ;;  %v1409_v28 = vmul.f32 %v5410_v42, %v6073_v54  ;;  %v6129_v13 = vld [vmem:[#allocation6 + $0x152] sm:$0xff] }
  0xf5   : > { %v784_v47 = vadd.f32 %v728_v32, %v612_v38  ;;  %v1413_v43 = vmul.f32 %v5410_v42, %v6093_v17  ;;  %v1580_v35 = vmul.f32 %v5425_v53, %v6081_v9  ;;  %v1584_v33 = vmul.f32 %v5425_v53, %v6097_v39  ;;  %v6133_v0 = vld [vmem:[#allocation6 + $0x170] sm:$0xff] }
  0xf6   : > { %v1635_v5 = vadd.f32 %v1579_v48, %v1464_v25  ;;  %v1639_v57 = vadd.f32 %v1583_v20, %v1468_v59  ;;  %v951_v21 = vadd.f32 %v895_v14, %v780_v50  ;;  %v211_v44 = vmul.f32 %v5955_v56, %v5350_v6  ;;  %v155_v25 = vld [vmem:[#allocation6 + $0x118] sm:$0x3] }
  0xf7   : > { %v955_v55 = vadd.f32 %v899_v8, %v784_v47  ;;  %v215_v62 = vmul.f32 %v5971_v2, %v5350_v6  ;;  %v382_v63 = vmul.f32 %v5959_v4, %v5359_v12  ;;  %v386_v58 = vmul.f32 %v5973_v49, %v5359_v12  ;;  %v6121_v4 = vld [vmem:[#allocation6 + $0x151] sm:$0xff] }
  0xf8   : > { %v1675_v52 = vmax.f32 %v1635_v5, %v1639_v57  ;;  %v1122_v36 = vadd.f32 %v1066_v19, %v951_v21  ;;  %v553_v48 = vmul.f32 %v5967_v10, %v5369_v16  ;;  %v557_v20 = vmul.f32 %v5981_v24, %v5369_v16  ;;  %v6135_v19 = vld [vmem:[#allocation6 + $0x171] sm:$0xff]  ;;  %v330_v57 = vld [vmem:[#allocation6 + $0x139] sm:$0x3] }
  0xf9   : > { %v1126_v34 = vadd.f32 %v1070_v51, %v955_v55  ;;  %v438_v56 = vadd.f32 %v382_v63, %v211_v44  ;;  %v442_v61 = vadd.f32 %v386_v58, %v215_v62  ;;  %v725_v45 = vmul.f32 %v5971_v2, %v5381_v22  ;;  %v159_v59 = vld [vmem:[#allocation6 + $0x138] sm:$0x3]  ;;  %v497_v21 = vld [vmem:[#allocation6 + $0x11a] sm:$0x3] }
  0xfa   : > { %1703 = vst [vmem:[#allocation2 + $0x80] sm:$0xff] %v1675_v52  ;;  %v1294_v1 = vadd.f32 %v1238_v7, %v1122_v36  ;;  %v729_v46 = vmul.f32 %v5381_v22, %v6117_v3  ;;  %v896_v10 = vmul.f32 %v5973_v49, %v5390_v29  ;;  %v900_v32 = vmul.f32 %v5390_v29, %v6121_v4  ;;  %v501_v58 = vld [vmem:[#allocation6 + $0x13a] sm:$0x3] }
  0xfb   : > { %v1298_v14 = vadd.f32 %v1242_v11, %v1126_v34  ;;  %v609_v8 = vadd.f32 %v553_v48, %v438_v56  ;;  %v613_v18 = vadd.f32 %v557_v20, %v442_v61  ;;  %v1067_v2 = vmul.f32 %v5981_v24, %v5393_v30  ;;  %v6143_v11 = vld [vmem:[#allocation6 + $0x172] sm:$0xff] }
  0xfc   : > { %v1465_v38 = vadd.f32 %v1409_v28, %v1294_v1  ;;  %v1071_v51 = vmul.f32 %v5393_v30, %v6129_v13  ;;  %v1239_v49 = vmul.f32 %v5407_v41, %v6117_v3  ;;  %v1243_v7 = vmul.f32 %v5407_v41, %v6133_v0  ;;  %v326_v28 = vld [vmem:[#allocation6 + $0x119] sm:$0x3] }
  0xfd   : > { %v1469_v50 = vadd.f32 %v1413_v43, %v1298_v14  ;;  %v781_v24 = vadd.f32 %v725_v45, %v609_v8  ;;  %v785_v47 = vadd.f32 %v729_v46, %v613_v18  ;;  %v1410_v5 = vmul.f32 %v5410_v42, %v6121_v4  ;;  %v669_v20 = vld [vmem:[#allocation6 + $0x138] sm:$0x3] }
  0xfe   : > { %v1636_v44 = vadd.f32 %v1580_v35, %v1465_v38  ;;  %v1414_v55 = vmul.f32 %v5410_v42, %v6135_v19  ;;  %v1581_v62 = vmul.f32 %v5425_v53, %v6129_v13  ;;  %v1585_v63 = vmul.f32 %v5425_v53, %v6143_v11  ;;  %v673_v34 = vld [vmem:[#allocation6 + $0x158] sm:$0x3] }
  0xff   : > { %v1640_v43 = vadd.f32 %v1584_v33, %v1469_v50  ;;  %v952_v52 = vadd.f32 %v896_v10, %v781_v24  ;;  %v956_v36 = vadd.f32 %v900_v32, %v785_v47  ;;  %v212_v48 = vmul.f32 %v5350_v6, %v155_v25  ;;  %v840_v1 = vld [vmem:[#allocation6 + $0x139] sm:$0x3] }
 0x100   : > { %v216_v56 = vmul.f32 %v5350_v6, %v159_v59  ;;  %v383_v35 = vmul.f32 %v5359_v12, %v326_v28  ;;  %v387_v61 = vmul.f32 %v5359_v12, %v330_v57  ;;  %v554_v45 = vmul.f32 %v5369_v16, %v497_v21  ;;  %v844_v46 = vld [vmem:[#allocation6 + $0x159] sm:$0x3] }
 0x101   : > { %v1676_v14 = vmax.f32 %v1636_v44, %v1640_v43  ;;  %v1123_v8 = vadd.f32 %v1067_v2, %v952_v52  ;;  %v1127_v18 = vadd.f32 %v1071_v51, %v956_v36  ;;  %v558_v33 = vmul.f32 %v5369_v16, %v501_v58  ;;  %v1011_v10 = vld [vmem:[#allocation6 + $0x13a] sm:$0x3]  ;;  %v1183_v24 = vld [vmem:[#allocation6 + $0x158] sm:$0x3] }
 0x102   : > { %v1015_v32 = vld [vmem:[#allocation6 + $0x15a] sm:$0x3]  ;;  %v439_v38 = vadd.f32 %v383_v35, %v212_v48  ;;  %v443_v25 = vadd.f32 %v387_v61, %v216_v56  ;;  %v726_v50 = vmul.f32 %v5381_v22, %v669_v20  ;;  %v730_v59 = vmul.f32 %v5381_v22, %v673_v34  ;;  %v1187_v47 = vld [vmem:[#allocation6 + $0x178] sm:$0x3] }
 0x103   : > { %1704 = vst [vmem:[#allocation2 + $0x88] sm:$0xff] %v1676_v14  ;;  %v1295_v28 = vadd.f32 %v1239_v49, %v1123_v8  ;;  %v1299_v57 = vadd.f32 %v1243_v7, %v1127_v18  ;;  %v897_v21 = vmul.f32 %v5390_v29, %v840_v1  ;;  %v901_v2 = vmul.f32 %v5390_v29, %v844_v46  ;;  %v1354_v51 = vld [vmem:[#allocation6 + $0x159] sm:$0x3] }
 0x104   : > { %v1358_v44 = vld [vmem:[#allocation6 + $0x179] sm:$0x3]  ;;  %v610_v58 = vadd.f32 %v554_v45, %v439_v38  ;;  %v614_v43 = vadd.f32 %v558_v33, %v443_v25  ;;  %v1068_v52 = vmul.f32 %v5393_v30, %v1011_v10  ;;  %v1072_v36 = vmul.f32 %v5393_v30, %v1015_v32 }
 0x105   : > { %v1525_v48 = vld [vmem:[#allocation6 + $0x15a] sm:$0x3]  ;;  %v1466_v34 = vadd.f32 %v1410_v5, %v1295_v28  ;;  %v1470_v56 = vadd.f32 %v1414_v55, %v1299_v57  ;;  %v1240_v35 = vmul.f32 %v5407_v41, %v1183_v24  ;;  %v1244_v49 = vmul.f32 %v5407_v41, %v1187_v47  ;;  %v6183_v24 = vld [vmem:[#allocation6 + $0x180] sm:$0xff] }
 0x106   : > { %v1529_v20 = vld [vmem:[#allocation6 + $0x17a] sm:$0x3]  ;;  %v782_v7 = vadd.f32 %v726_v50, %v610_v58  ;;  %v786_v61 = vadd.f32 %v730_v59, %v614_v43  ;;  %v1411_v1 = vmul.f32 %v5410_v42, %v1354_v51  ;;  %v1415_v46 = vmul.f32 %v5410_v42, %v1358_v44  ;;  %v6189_v57 = vld [vmem:[#allocation6 + $0x181] sm:$0xff] }
 0x107   : > { %v1637_v45 = vadd.f32 %v1581_v62, %v1466_v34  ;;  %v1641_v14 = vadd.f32 %v1585_v63, %v1470_v56  ;;  %v1582_v8 = vmul.f32 %v5425_v53, %v1525_v48  ;;  %v1586_v18 = vmul.f32 %v5425_v53, %v1529_v20  ;;  %v6195_v44 = vld [vmem:[#allocation6 + $0x182] sm:$0xff] }
 0x108   : > { %v953_v33 = vadd.f32 %v897_v21, %v782_v7  ;;  %v957_v10 = vadd.f32 %v901_v2, %v786_v61  ;;  %v217_v5 = vmul.f32 %v6021_v23, %v5350_v6  ;;  %v221_v55 = vmul.f32 %v6039_v27, %v5350_v6  ;;  %v6207_v56 = vld [vmem:[#allocation6 + $0x1a1] sm:$0xff] }
 0x109   : > { %v1677_v32 = vmax.f32 %v1637_v45, %v1641_v14  ;;  %v388_v38 = vmul.f32 %v6027_v60, %v5359_v12  ;;  %v392_v62 = vmul.f32 %v6045_v31, %v5359_v12  ;;  %v559_v63 = vmul.f32 %v6033_v37, %v5369_v16  ;;  %v6213_v61 = vld [vmem:[#allocation6 + $0x1a2] sm:$0xff] }
 0x10a   : > { %v1124_v25 = vadd.f32 %v1068_v52, %v953_v33  ;;  %v1128_v50 = vadd.f32 %v1072_v36, %v957_v10  ;;  %v563_v59 = vmul.f32 %v6051_v26, %v5369_v16  ;;  %v731_v23 = vmul.f32 %v6039_v27, %v5381_v22  ;;  %v6201_v36 = vld [vmem:[#allocation6 + $0x1a0] sm:$0xff] }
 0x10b   : > { %1705 = vst [vmem:[#allocation2 + $0x90] sm:$0xff] %v1677_v32  ;;  %v444_v47 = vadd.f32 %v388_v38, %v217_v5  ;;  %v448_v28 = vadd.f32 %v392_v62, %v221_v55  ;;  %v735_v60 = vmul.f32 %v5381_v22, %v6183_v24  ;;  %v902_v37 = vmul.f32 %v6045_v31, %v5390_v29 }
 0x10c   : > { %v1296_v21 = vadd.f32 %v1240_v35, %v1124_v25  ;;  %v1300_v2 = vadd.f32 %v1244_v49, %v1128_v50  ;;  %v906_v51 = vmul.f32 %v5390_v29, %v6189_v57  ;;  %v1073_v27 = vmul.f32 %v6051_v26, %v5393_v30  ;;  %v6231_v50 = vld [vmem:[#allocation6 + $0x188] sm:$0xff] }
 0x10d   : > { %v615_v58 = vadd.f32 %v559_v63, %v444_v47  ;;  %v619_v43 = vadd.f32 %v563_v59, %v448_v28  ;;  %v1077_v52 = vmul.f32 %v5393_v30, %v6195_v44  ;;  %v1245_v31 = vmul.f32 %v5407_v41, %v6183_v24 }
 0x10e   : > { %v1467_v48 = vadd.f32 %v1411_v1, %v1296_v21  ;;  %v1471_v20 = vadd.f32 %v1415_v46, %v1300_v2  ;;  %v1249_v34 = vmul.f32 %v5407_v41, %v6201_v36  ;;  %v1416_v26 = vmul.f32 %v5410_v42, %v6189_v57  ;;  %v6243_v2 = vld [vmem:[#allocation6 + $0x18a] sm:$0xff] }
 0x10f   : > { %v787_v35 = vadd.f32 %v731_v23, %v615_v58  ;;  %v791_v49 = vadd.f32 %v735_v60, %v619_v43  ;;  %v1420_v7 = vmul.f32 %v5410_v42, %v6207_v56  ;;  %v1587_v45 = vmul.f32 %v5425_v53, %v6195_v44  ;;  %v6235_v23 = vld [vmem:[#allocation6 + $0x189] sm:$0xff] }
 0x110   : > { %v1638_v1 = vadd.f32 %v1582_v8, %v1467_v48  ;;  %v1642_v46 = vadd.f32 %v1586_v18, %v1471_v20  ;;  %v1591_v14 = vmul.f32 %v5425_v53, %v6213_v61  ;;  %v218_v33 = vmul.f32 %v6069_v15, %v5350_v6  ;;  %v6255_v20 = vld [vmem:[#allocation6 + $0x1a9] sm:$0xff] }
 0x111   : > { %v958_v10 = vadd.f32 %v902_v37, %v787_v35  ;;  %v962_v5 = vadd.f32 %v906_v51, %v791_v49  ;;  %v222_v55 = vmul.f32 %v6085_v40, %v5350_v6  ;;  %v389_v32 = vmul.f32 %v6073_v54, %v5359_v12  ;;  %v6247_v51 = vld [vmem:[#allocation6 + $0x1a8] sm:$0xff] }
 0x112   : > { %v1678_v38 = vmax.f32 %v1638_v1, %v1642_v46  ;;  %v393_v62 = vmul.f32 %v6093_v17, %v5359_v12  ;;  %v560_v8 = vmul.f32 %v6081_v9, %v5369_v16  ;;  %v564_v18 = vmul.f32 %v6097_v39, %v5369_v16 }
 0x113   : > { %v1129_v63 = vadd.f32 %v1073_v27, %v958_v10  ;;  %v1133_v15 = vadd.f32 %v1077_v52, %v962_v5  ;;  %v445_v25 = vadd.f32 %v389_v32, %v218_v33  ;;  %v732_v59 = vmul.f32 %v6085_v40, %v5381_v22 }
 0x114   : > { %1706 = vst [vmem:[#allocation2 + $0x98] sm:$0x3] %v1678_v38  ;;  %v449_v54 = vadd.f32 %v393_v62, %v222_v55  ;;  %v736_v47 = vmul.f32 %v5381_v22, %v6231_v50  ;;  %v903_v9 = vmul.f32 %v6093_v17, %v5390_v29  ;;  %v907_v28 = vmul.f32 %v5390_v29, %v6235_v23 }
 0x115   : > { %v1301_v60 = vadd.f32 %v1245_v31, %v1129_v63  ;;  %v1305_v37 = vadd.f32 %v1249_v34, %v1133_v15  ;;  %v616_v21 = vadd.f32 %v560_v8, %v445_v25  ;;  %v1074_v40 = vmul.f32 %v6097_v39, %v5393_v30  ;;  %v6259_v34 = vld [vmem:[#allocation6 + $0x1aa] sm:$0xff] }
 0x116   : > { %v620_v27 = vadd.f32 %v564_v18, %v449_v54  ;;  %v1078_v58 = vmul.f32 %v5393_v30, %v6243_v2  ;;  %v1246_v17 = vmul.f32 %v5407_v41, %v6231_v50  ;;  %v1250_v43 = vmul.f32 %v5407_v41, %v6247_v51  ;;  %v6279_v15 = vld [vmem:[#allocation6 + $0x190] sm:$0xff] }
 0x117   : > { %v1472_v52 = vadd.f32 %v1416_v26, %v1301_v60  ;;  %v1476_v31 = vadd.f32 %v1420_v7, %v1305_v37  ;;  %v788_v48 = vadd.f32 %v732_v59, %v616_v21  ;;  %v1417_v39 = vmul.f32 %v5410_v42, %v6235_v23  ;;  %v6291_v37 = vld [vmem:[#allocation6 + $0x192] sm:$0xff] }
 0x118   : > { %v792_v35 = vadd.f32 %v736_v47, %v620_v27  ;;  %v1421_v49 = vmul.f32 %v5410_v42, %v6255_v20  ;;  %v1588_v1 = vmul.f32 %v5425_v53, %v6243_v2  ;;  %v1592_v46 = vmul.f32 %v5425_v53, %v6259_v34  ;;  %v6295_v21 = vld [vmem:[#allocation6 + $0x1b0] sm:$0xff] }
 0x119   : > { %v1643_v26 = vadd.f32 %v1587_v45, %v1472_v52  ;;  %v1647_v7 = vadd.f32 %v1591_v14, %v1476_v31  ;;  %v959_v33 = vadd.f32 %v903_v9, %v788_v48  ;;  %v219_v10 = vmul.f32 %v6117_v3, %v5350_v6  ;;  %v163_v52 = vld [vmem:[#allocation6 + $0x158] sm:$0x3] }
 0x11a   : > { %v963_v5 = vadd.f32 %v907_v28, %v792_v35  ;;  %v223_v55 = vmul.f32 %v6133_v0, %v5350_v6  ;;  %v390_v32 = vmul.f32 %v6121_v4, %v5359_v12  ;;  %v394_v38 = vmul.f32 %v6135_v19, %v5359_v12  ;;  %v6283_v4 = vld [vmem:[#allocation6 + $0x191] sm:$0xff] }
 0x11b   : > { %v1679_v62 = vmax.f32 %v1643_v26, %v1647_v7  ;;  %v1130_v8 = vadd.f32 %v1074_v40, %v959_v33  ;;  %v561_v45 = vmul.f32 %v6129_v13, %v5369_v16  ;;  %v565_v14 = vmul.f32 %v6143_v11, %v5369_v16  ;;  %v6297_v40 = vld [vmem:[#allocation6 + $0x1b1] sm:$0xff]  ;;  %v338_v7 = vld [vmem:[#allocation6 + $0x179] sm:$0x3] }
 0x11c   : > { %v1134_v18 = vadd.f32 %v1078_v58, %v963_v5  ;;  %v446_v3 = vadd.f32 %v390_v32, %v219_v10  ;;  %v450_v63 = vadd.f32 %v394_v38, %v223_v55  ;;  %v733_v25 = vmul.f32 %v6133_v0, %v5381_v22  ;;  %v167_v31 = vld [vmem:[#allocation6 + $0x178] sm:$0x3]  ;;  %v505_v33 = vld [vmem:[#allocation6 + $0x15a] sm:$0x3] }
 0x11d   : > { %1707 = vst [vmem:[#allocation2 + $0xa0] sm:$0xff] %v1679_v62  ;;  %v1302_v59 = vadd.f32 %v1246_v17, %v1130_v8  ;;  %v737_v54 = vmul.f32 %v5381_v22, %v6279_v15  ;;  %v904_v13 = vmul.f32 %v6135_v19, %v5390_v29  ;;  %v908_v47 = vmul.f32 %v5390_v29, %v6283_v4  ;;  %v509_v38 = vld [vmem:[#allocation6 + $0x17a] sm:$0x3] }
 0x11e   : > { %v1306_v9 = vadd.f32 %v1250_v43, %v1134_v18  ;;  %v617_v28 = vadd.f32 %v561_v45, %v446_v3  ;;  %v621_v60 = vadd.f32 %v565_v14, %v450_v63  ;;  %v1075_v0 = vmul.f32 %v6143_v11, %v5393_v30  ;;  %v6305_v43 = vld [vmem:[#allocation6 + $0x1b2] sm:$0xff] }
 0x11f   : > { %v1473_v27 = vadd.f32 %v1417_v39, %v1302_v59  ;;  %v1079_v58 = vmul.f32 %v5393_v30, %v6291_v37  ;;  %v1247_v19 = vmul.f32 %v5407_v41, %v6279_v15  ;;  %v1251_v17 = vmul.f32 %v5407_v41, %v6295_v21  ;;  %v334_v39 = vld [vmem:[#allocation6 + $0x159] sm:$0x3] }
 0x120   : > { %v1477_v48 = vadd.f32 %v1421_v49, %v1306_v9  ;;  %v789_v11 = vadd.f32 %v733_v25, %v617_v28  ;;  %v793_v35 = vadd.f32 %v737_v54, %v621_v60  ;;  %v1418_v26 = vmul.f32 %v5410_v42, %v6283_v4  ;;  %v677_v14 = vld [vmem:[#allocation6 + $0x178] sm:$0x3] }
 0x121   : > { %v1644_v10 = vadd.f32 %v1588_v1, %v1473_v27  ;;  %v1422_v5 = vmul.f32 %v5410_v42, %v6297_v40  ;;  %v1589_v55 = vmul.f32 %v5425_v53, %v6291_v37  ;;  %v1593_v32 = vmul.f32 %v5425_v53, %v6305_v43  ;;  %v681_v18 = vld [vmem:[#allocation6 + $0x198] sm:$0x3] }
 0x122   : > { %v1648_v49 = vadd.f32 %v1592_v46, %v1477_v48  ;;  %v960_v62 = vadd.f32 %v904_v13, %v789_v11  ;;  %v964_v8 = vadd.f32 %v908_v47, %v793_v35  ;;  %v220_v45 = vmul.f32 %v5350_v6, %v163_v52  ;;  %v848_v59 = vld [vmem:[#allocation6 + $0x179] sm:$0x3] }
 0x123   : > { %v224_v3 = vmul.f32 %v5350_v6, %v167_v31  ;;  %v391_v1 = vmul.f32 %v5359_v12, %v334_v39  ;;  %v395_v63 = vmul.f32 %v5359_v12, %v338_v7  ;;  %v562_v25 = vmul.f32 %v5369_v16, %v505_v33  ;;  %v852_v54 = vld [vmem:[#allocation6 + $0x199] sm:$0x3] }
 0x124   : > { %v1680_v9 = vmax.f32 %v1644_v10, %v1648_v49  ;;  %v1131_v28 = vadd.f32 %v1075_v0, %v960_v62  ;;  %v1135_v60 = vadd.f32 %v1079_v58, %v964_v8  ;;  %v566_v46 = vmul.f32 %v5369_v16, %v509_v38  ;;  %v1019_v13 = vld [vmem:[#allocation6 + $0x17a] sm:$0x3]  ;;  %v1191_v11 = vld [vmem:[#allocation6 + $0x198] sm:$0x3] }
 0x125   : > { %v1023_v47 = vld [vmem:[#allocation6 + $0x19a] sm:$0x3]  ;;  %v447_v27 = vadd.f32 %v391_v1, %v220_v45  ;;  %v451_v52 = vadd.f32 %v395_v63, %v224_v3  ;;  %v734_v48 = vmul.f32 %v5381_v22, %v677_v14  ;;  %v738_v31 = vmul.f32 %v5381_v22, %v681_v18  ;;  %v1195_v35 = vld [vmem:[#allocation6 + $0x1b8] sm:$0x3] }
 0x126   : > { %1708 = vst [vmem:[#allocation2 + $0xa8] sm:$0xff] %v1680_v9  ;;  %v1303_v39 = vadd.f32 %v1247_v19, %v1131_v28  ;;  %v1307_v7 = vadd.f32 %v1251_v17, %v1135_v60  ;;  %v905_v33 = vmul.f32 %v5390_v29, %v848_v59  ;;  %v909_v0 = vmul.f32 %v5390_v29, %v852_v54  ;;  %v1362_v58 = vld [vmem:[#allocation6 + $0x199] sm:$0x3] }
 0x127   : > { %v1366_v10 = vld [vmem:[#allocation6 + $0x1b9] sm:$0x3]  ;;  %v618_v38 = vadd.f32 %v562_v25, %v447_v27  ;;  %v622_v49 = vadd.f32 %v566_v46, %v451_v52  ;;  %v1076_v62 = vmul.f32 %v5393_v30, %v1019_v13  ;;  %v1080_v8 = vmul.f32 %v5393_v30, %v1023_v47 }
 0x128   : > { %v1533_v45 = vld [vmem:[#allocation6 + $0x19a] sm:$0x3]  ;;  %v1474_v18 = vadd.f32 %v1418_v26, %v1303_v39  ;;  %v1478_v3 = vadd.f32 %v1422_v5, %v1307_v7  ;;  %v1248_v1 = vmul.f32 %v5407_v41, %v1191_v11  ;;  %v1252_v19 = vmul.f32 %v5407_v41, %v1195_v35  ;;  %v6345_v11 = vld [vmem:[#allocation6 + $0x1c0] sm:$0xff] }
 0x129   : > { %v1537_v14 = vld [vmem:[#allocation6 + $0x1ba] sm:$0x3]  ;;  %v790_v17 = vadd.f32 %v734_v48, %v618_v38  ;;  %v794_v63 = vadd.f32 %v738_v31, %v622_v49  ;;  %v1419_v59 = vmul.f32 %v5410_v42, %v1362_v58  ;;  %v1423_v54 = vmul.f32 %v5410_v42, %v1366_v10  ;;  %v6351_v7 = vld [vmem:[#allocation6 + $0x1c1] sm:$0xff] }
 0x12a   : > { %v1645_v25 = vadd.f32 %v1589_v55, %v1474_v18  ;;  %v1649_v9 = vadd.f32 %v1593_v32, %v1478_v3  ;;  %v1590_v28 = vmul.f32 %v5425_v53, %v1533_v45  ;;  %v1594_v60 = vmul.f32 %v5425_v53, %v1537_v14  ;;  %v6357_v10 = vld [vmem:[#allocation6 + $0x1c2] sm:$0xff] }
 0x12b   : > { %v961_v46 = vadd.f32 %v905_v33, %v790_v17  ;;  %v965_v13 = vadd.f32 %v909_v0, %v794_v63  ;;  %v225_v26 = vmul.f32 %v6183_v24, %v5350_v6  ;;  %v229_v5 = vmul.f32 %v6201_v36, %v5350_v6  ;;  %v6369_v3 = vld [vmem:[#allocation6 + $0x1e1] sm:$0xff] }
 0x12c   : > { %v1681_v47 = vmax.f32 %v1645_v25, %v1649_v9  ;;  %v396_v27 = vmul.f32 %v6189_v57, %v5359_v12  ;;  %v400_v55 = vmul.f32 %v6207_v56, %v5359_v12  ;;  %v567_v32 = vmul.f32 %v6195_v44, %v5369_v16  ;;  %v6375_v63 = vld [vmem:[#allocation6 + $0x1e2] sm:$0xff] }
 0x12d   : > { %v1132_v52 = vadd.f32 %v1076_v62, %v961_v46  ;;  %v1136_v48 = vadd.f32 %v1080_v8, %v965_v13  ;;  %v571_v31 = vmul.f32 %v6213_v61, %v5369_v16  ;;  %v739_v24 = vmul.f32 %v6201_v36, %v5381_v22  ;;  %v6363_v8 = vld [vmem:[#allocation6 + $0x1e0] sm:$0xff] }
 0x12e   : > { %1709 = vst [vmem:[#allocation2 + $0xb0] sm:$0xff] %v1681_v47  ;;  %v452_v35 = vadd.f32 %v396_v27, %v225_v26  ;;  %v456_v39 = vadd.f32 %v400_v55, %v229_v5  ;;  %v743_v57 = vmul.f32 %v5381_v22, %v6345_v11  ;;  %v910_v44 = vmul.f32 %v6207_v56, %v5390_v29 }
 0x12f   : > { %v1304_v33 = vadd.f32 %v1248_v1, %v1132_v52  ;;  %v1308_v0 = vadd.f32 %v1252_v19, %v1136_v48  ;;  %v914_v58 = vmul.f32 %v5390_v29, %v6351_v7  ;;  %v1081_v36 = vmul.f32 %v6213_v61, %v5393_v30  ;;  %v6393_v48 = vld [vmem:[#allocation6 + $0x1c8] sm:$0xff] }
 0x130   : > { %v623_v38 = vadd.f32 %v567_v32, %v452_v35  ;;  %v627_v49 = vadd.f32 %v571_v31, %v456_v39  ;;  %v1085_v62 = vmul.f32 %v5393_v30, %v6357_v10  ;;  %v1253_v56 = vmul.f32 %v5407_v41, %v6345_v11 }
 0x131   : > { %v1475_v45 = vadd.f32 %v1419_v59, %v1304_v33  ;;  %v1479_v14 = vadd.f32 %v1423_v54, %v1308_v0  ;;  %v1257_v18 = vmul.f32 %v5407_v41, %v6363_v8  ;;  %v1424_v61 = vmul.f32 %v5410_v42, %v6351_v7  ;;  %v6405_v0 = vld [vmem:[#allocation6 + $0x1ca] sm:$0xff] }
 0x132   : > { %v795_v1 = vadd.f32 %v739_v24, %v623_v38  ;;  %v799_v19 = vadd.f32 %v743_v57, %v627_v49  ;;  %v1428_v17 = vmul.f32 %v5410_v42, %v6369_v3  ;;  %v1595_v25 = vmul.f32 %v5425_v53, %v6357_v10  ;;  %v6397_v24 = vld [vmem:[#allocation6 + $0x1c9] sm:$0xff] }
 0x133   : > { %v1646_v59 = vadd.f32 %v1590_v28, %v1475_v45  ;;  %v1650_v54 = vadd.f32 %v1594_v60, %v1479_v14  ;;  %v1599_v9 = vmul.f32 %v5425_v53, %v6375_v63  ;;  %v226_v46 = vmul.f32 %v6231_v50, %v5350_v6  ;;  %v6417_v14 = vld [vmem:[#allocation6 + $0x1e9] sm:$0xff] }
 0x134   : > { %v966_v13 = vadd.f32 %v910_v44, %v795_v1  ;;  %v970_v26 = vadd.f32 %v914_v58, %v799_v19  ;;  %v230_v5 = vmul.f32 %v6247_v51, %v5350_v6  ;;  %v397_v47 = vmul.f32 %v6235_v23, %v5359_v12  ;;  %v6409_v58 = vld [vmem:[#allocation6 + $0x1e8] sm:$0xff] }
 0x135   : > { %v1682_v27 = vmax.f32 %v1646_v59, %v1650_v54  ;;  %v401_v55 = vmul.f32 %v6255_v20, %v5359_v12  ;;  %v568_v28 = vmul.f32 %v6243_v2, %v5369_v16  ;;  %v572_v60 = vmul.f32 %v6259_v34, %v5369_v16 }
 0x136   : > { %v1137_v32 = vadd.f32 %v1081_v36, %v966_v13  ;;  %v1141_v50 = vadd.f32 %v1085_v62, %v970_v26  ;;  %v453_v52 = vadd.f32 %v397_v47, %v226_v46  ;;  %v740_v31 = vmul.f32 %v6247_v51, %v5381_v22 }
 0x137   : > { %1710 = vst [vmem:[#allocation2 + $0xb8] sm:$0x3] %v1682_v27  ;;  %v457_v23 = vadd.f32 %v401_v55, %v230_v5  ;;  %v744_v35 = vmul.f32 %v5381_v22, %v6393_v48  ;;  %v911_v2 = vmul.f32 %v6255_v20, %v5390_v29  ;;  %v915_v39 = vmul.f32 %v5390_v29, %v6397_v24 }
 0x138   : > { %v1309_v57 = vadd.f32 %v1253_v56, %v1137_v32  ;;  %v1313_v44 = vadd.f32 %v1257_v18, %v1141_v50  ;;  %v624_v33 = vadd.f32 %v568_v28, %v453_v52  ;;  %v1082_v51 = vmul.f32 %v6259_v34, %v5393_v30  ;;  %v6421_v18 = vld [vmem:[#allocation6 + $0x1ea] sm:$0xff] }
 0x139   : > { %v628_v36 = vadd.f32 %v572_v60, %v457_v23  ;;  %v1086_v38 = vmul.f32 %v5393_v30, %v6405_v0  ;;  %v1254_v20 = vmul.f32 %v5407_v41, %v6393_v48  ;;  %v1258_v49 = vmul.f32 %v5407_v41, %v6409_v58  ;;  %v6441_v50 = vld [vmem:[#allocation6 + $0x1d0] sm:$0xff] }
 0x13a   : > { %v1480_v62 = vadd.f32 %v1424_v61, %v1309_v57  ;;  %v1484_v56 = vadd.f32 %v1428_v17, %v1313_v44  ;;  %v796_v45 = vadd.f32 %v740_v31, %v624_v33  ;;  %v1425_v34 = vmul.f32 %v5410_v42, %v6397_v24  ;;  %v6453_v44 = vld [vmem:[#allocation6 + $0x1d2] sm:$0xff] }
 0x13b   : > { %v800_v1 = vadd.f32 %v744_v35, %v628_v36  ;;  %v1429_v19 = vmul.f32 %v5410_v42, %v6417_v14  ;;  %v1596_v59 = vmul.f32 %v5425_v53, %v6405_v0  ;;  %v1600_v54 = vmul.f32 %v5425_v53, %v6421_v18  ;;  %v6457_v33 = vld [vmem:[#allocation6 + $0x1f0] sm:$0xff] }
 0x13c   : > { %v1651_v61 = vadd.f32 %v1595_v25, %v1480_v62  ;;  %v1655_v17 = vadd.f32 %v1599_v9, %v1484_v56  ;;  %v967_v46 = vadd.f32 %v911_v2, %v796_v45  ;;  %v227_v13 = vmul.f32 %v6279_v15, %v5350_v6  ;;  %v171_v62 = vld [vmem:[#allocation6 + $0x198] sm:$0x3] }
 0x13d   : > { %v971_v26 = vadd.f32 %v915_v39, %v800_v1  ;;  %v231_v5 = vmul.f32 %v6295_v21, %v5350_v6  ;;  %v398_v47 = vmul.f32 %v6283_v4, %v5359_v12  ;;  %v402_v27 = vmul.f32 %v6297_v40, %v5359_v12  ;;  %v6445_v4 = vld [vmem:[#allocation6 + $0x1d1] sm:$0xff] }
 0x13e   : > { %v1683_v55 = vmax.f32 %v1651_v61, %v1655_v17  ;;  %v1138_v28 = vadd.f32 %v1082_v51, %v967_v46  ;;  %v569_v25 = vmul.f32 %v6291_v37, %v5369_v16  ;;  %v573_v9 = vmul.f32 %v6305_v43, %v5369_v16  ;;  %v6459_v51 = vld [vmem:[#allocation6 + $0x1f1] sm:$0xff]  ;;  %v342_v61 = vld [vmem:[#allocation6 + $0x199] sm:$0x3] }
 0x13f   : > { %v1142_v60 = vadd.f32 %v1086_v38, %v971_v26  ;;  %v454_v15 = vadd.f32 %v398_v47, %v227_v13  ;;  %v458_v32 = vadd.f32 %v402_v27, %v231_v5  ;;  %v741_v52 = vmul.f32 %v6295_v21, %v5381_v22  ;;  %v175_v56 = vld [vmem:[#allocation6 + $0x1b8] sm:$0x3]  ;;  %v513_v46 = vld [vmem:[#allocation6 + $0x19a] sm:$0x3] }
 0x140   : > { %1711 = vst [vmem:[#allocation2 + $0xc0] sm:$0xff] %v1683_v55  ;;  %v1310_v31 = vadd.f32 %v1254_v20, %v1138_v28  ;;  %v745_v23 = vmul.f32 %v5381_v22, %v6441_v50  ;;  %v912_v37 = vmul.f32 %v6297_v40, %v5390_v29  ;;  %v916_v35 = vmul.f32 %v5390_v29, %v6445_v4  ;;  %v346_v17 = vld [vmem:[#allocation6 + $0x1b9] sm:$0x3] }
 0x141   : > { %v1314_v2 = vadd.f32 %v1258_v49, %v1142_v60  ;;  %v625_v39 = vadd.f32 %v569_v25, %v454_v15  ;;  %v629_v57 = vadd.f32 %v573_v9, %v458_v32  ;;  %v1083_v21 = vmul.f32 %v6305_v43, %v5393_v30  ;;  %v6467_v49 = vld [vmem:[#allocation6 + $0x1f2] sm:$0xff]  ;;  %v517_v47 = vld [vmem:[#allocation6 + $0x1ba] sm:$0x3] }
 0x142   : > { %v1481_v36 = vadd.f32 %v1425_v34, %v1310_v31  ;;  %v1087_v38 = vmul.f32 %v5393_v30, %v6453_v44  ;;  %v1255_v40 = vmul.f32 %v5407_v41, %v6441_v50  ;;  %v1259_v20 = vmul.f32 %v5407_v41, %v6457_v33  ;;  %v685_v9 = vld [vmem:[#allocation6 + $0x1b8] sm:$0x3] }
 0x143   : > { %v1485_v45 = vadd.f32 %v1429_v19, %v1314_v2  ;;  %v797_v43 = vadd.f32 %v741_v52, %v625_v39  ;;  %v801_v1 = vadd.f32 %v745_v23, %v629_v57  ;;  %v1426_v34 = vmul.f32 %v5410_v42, %v6445_v4  ;;  %v689_v60 = vld [vmem:[#allocation6 + $0x1d8] sm:$0x3]  ;;  %v1027_v39 = vld [vmem:[#allocation6 + $0x1ba] sm:$0x3] }
 0x144   : > { %v1652_v13 = vadd.f32 %v1596_v59, %v1481_v36  ;;  %v1430_v26 = vmul.f32 %v5410_v42, %v6459_v51  ;;  %v1597_v5 = vmul.f32 %v5425_v53, %v6453_v44  ;;  %v1601_v19 = vmul.f32 %v5425_v53, %v6467_v49  ;;  %v856_v31 = vld [vmem:[#allocation6 + $0x1b9] sm:$0x3] }
 0x145   : > { %v1656_v27 = vadd.f32 %v1600_v54, %v1485_v45  ;;  %v968_v55 = vadd.f32 %v912_v37, %v797_v43  ;;  %v972_v28 = vadd.f32 %v916_v35, %v801_v1  ;;  %v228_v25 = vmul.f32 %v5350_v6, %v171_v62  ;;  %v860_v23 = vld [vmem:[#allocation6 + $0x1d9] sm:$0x3] }
 0x146   : > { %v232_v59 = vmul.f32 %v5350_v6, %v175_v56  ;;  %v399_v15 = vmul.f32 %v5359_v12, %v342_v61  ;;  %v403_v32 = vmul.f32 %v5359_v12, %v346_v17  ;;  %v570_v52 = vmul.f32 %v5369_v16, %v513_v46  ;;  %v1031_v6 = vld [vmem:[#allocation6 + $0x1da] sm:$0x3]  ;;  %v1199_v56 = vld [vmem:[#allocation6 + $0x1d8] sm:$0x3] }
 0x147   : > { %v1684_v54 = vmax.f32 %v1652_v13, %v1656_v27  ;;  %v1139_v37 = vadd.f32 %v1083_v21, %v968_v55  ;;  %v1143_v35 = vadd.f32 %v1087_v38, %v972_v28  ;;  %v574_v2 = vmul.f32 %v5369_v16, %v517_v47  ;;  %v1203_v45 = vld [vmem:[#allocation6 + $0x1f8] sm:$0x3]  ;;  %v1541_v47 = vld [vmem:[#allocation6 + $0x1da] sm:$0x3] }
 0x148   : > { %v455_v57 = vadd.f32 %v399_v15, %v228_v25  ;;  %v459_v36 = vadd.f32 %v403_v32, %v232_v59  ;;  %v742_v12 = vmul.f32 %v5381_v22, %v685_v9  ;;  %v746_v62 = vmul.f32 %v5381_v22, %v689_v60  ;;  %v1370_v1 = vld [vmem:[#allocation6 + $0x1d9] sm:$0x3] }
 0x149   : > { %1712 = vst [vmem:[#allocation2 + $0xc8] sm:$0xff] %v1684_v54  ;;  %v1311_v21 = vadd.f32 %v1255_v40, %v1139_v37  ;;  %v1315_v38 = vadd.f32 %v1259_v20, %v1143_v35  ;;  %v913_v16 = vmul.f32 %v5390_v29, %v856_v31  ;;  %v917_v43 = vmul.f32 %v5390_v29, %v860_v23  ;;  %v1374_v61 = vld [vmem:[#allocation6 + $0x1f9] sm:$0x3] }
 0x14a   : > { %v626_v22 = vadd.f32 %v570_v52, %v455_v57  ;;  %v630_v17 = vadd.f32 %v574_v2, %v459_v36  ;;  %v1084_v46 = vmul.f32 %v5393_v30, %v1027_v39  ;;  %v1088_v13 = vmul.f32 %v5393_v30, %v1031_v6  ;;  %v1545_v27 = vld [vmem:[#allocation6 + $0x1fa] sm:$0x3]  ;;  %v6554_v36 = vld [vmem:[#allocation6 + $0x200] sm:$0xff] }
 0x14b   : > { %v1482_v40 = vadd.f32 %v1426_v34, %v1311_v21  ;;  %v1486_v29 = vadd.f32 %v1430_v26, %v1315_v38  ;;  %v1256_v20 = vmul.f32 %v5407_v41, %v1199_v56  ;;  %v1260_v55 = vmul.f32 %v5407_v41, %v1203_v45 }
 0x14c   : > { %v798_v28 = vadd.f32 %v742_v12, %v626_v22  ;;  %v802_v25 = vadd.f32 %v746_v62, %v630_v17  ;;  %v1427_v30 = vmul.f32 %v5410_v42, %v1370_v1  ;;  %v1431_v9 = vmul.f32 %v5410_v42, %v1374_v61  ;;  %v6570_v61 = vld [vmem:[#allocation6 + $0x202] sm:$0xff] }
 0x14d   : > { %v1653_v60 = vadd.f32 %v1597_v5, %v1482_v40  ;;  %v1657_v59 = vadd.f32 %v1601_v19, %v1486_v29  ;;  %v1598_v34 = vmul.f32 %v5425_v53, %v1541_v47  ;;  %v1602_v26 = vmul.f32 %v5425_v53, %v1545_v27  ;;  %v6578_v40 = vld [vmem:[#allocation6 + $0x220] sm:$0xff] }
 0x14e   : > { %v969_v15 = vadd.f32 %v913_v16, %v798_v28  ;;  %v973_v32 = vadd.f32 %v917_v43, %v802_v25  ;;  %v6519_v41 = vstv %s6479_s18  ;;  %v6522_v52 = vstv %s6487_s4  ;;  %v6566_v43 = vld [vmem:[#allocation6 + $0x201] sm:$0xff] }
 0x14f   : > { %v1685_v31 = vmax.f32 %v1653_v60, %v1657_v59  ;;  %v1766_v42 = vmul.f32 %v6519_v41, %v6345_v11  ;;  %v1770_v5 = vmul.f32 %v6519_v41, %v6363_v8  ;;  %v1912_v53 = vmul.f32 %v6522_v52, %v6351_v7  ;;  %v6587_v28 = vld [vmem:[#allocation6 + $0x221] sm:$0xff] }
 0x150   : > { %v1140_v19 = vadd.f32 %v1084_v46, %v969_v15  ;;  %v1144_v23 = vadd.f32 %v1088_v13, %v973_v32  ;;  %v1916_v54 = vmul.f32 %v6522_v52, %v6369_v3  ;;  %v6541_v37 = vstv %s6494_s19 }
 0x151   : > { %1713 = vst [vmem:[#allocation2 + $0xd0] sm:$0xff] %v1685_v31  ;;  %v1960_v11 = vadd.f32 %v1912_v53, %v1766_v42  ;;  %v2058_v35 = vmul.f32 %v6541_v37, %v6357_v10  ;;  %v2062_v7 = vmul.f32 %v6541_v37, %v6375_v63  ;;  %v6548_v2 = vstv %s6500_s20 }
 0x152   : > { %v1312_v39 = vadd.f32 %v1256_v20, %v1140_v19  ;;  %v1316_v6 = vadd.f32 %v1260_v55, %v1144_v23  ;;  %v1964_v57 = vadd.f32 %v1916_v54, %v1770_v5  ;;  %v2205_v12 = vmul.f32 %v6548_v2, %v6363_v8 }
 0x153   : > { %v2106_v62 = vadd.f32 %v2058_v35, %v1960_v11  ;;  %v2209_v10 = vmul.f32 %v6548_v2, %v6554_v36  ;;  %v6561_v56 = vstv %s6506_s22  ;;  %v6564_v45 = vstv %s6512_s24  ;;  %v6617_v11 = vld [vmem:[#allocation6 + $0x208] sm:$0xff] }
 0x154   : > { %v1483_v21 = vadd.f32 %v1427_v30, %v1312_v39  ;;  %v1487_v38 = vadd.f32 %v1431_v9, %v1316_v6  ;;  %v2110_v16 = vadd.f32 %v2062_v7, %v1964_v57  ;;  %v2351_v1 = vmul.f32 %v6561_v56, %v6369_v3  ;;  %v6623_v6 = vld [vmem:[#allocation6 + $0x209] sm:$0xff] }
 0x155   : > { %v2253_v8 = vadd.f32 %v2205_v12, %v2106_v62  ;;  %v2355_v22 = vmul.f32 %v6561_v56, %v6566_v43  ;;  %v2497_v17 = vmul.f32 %v6564_v45, %v6375_v63  ;;  %v2501_v46 = vmul.f32 %v6564_v45, %v6570_v61 }
 0x156   : > { %v1654_v13 = vadd.f32 %v1598_v34, %v1483_v21  ;;  %v1658_v47 = vadd.f32 %v1602_v26, %v1487_v38  ;;  %v2257_v27 = vadd.f32 %v2209_v10, %v2110_v16  ;;  %v6581_v29 = vstv %s6526_s25  ;;  %v6596_v34 = vld [vmem:[#allocation6 + $0x222] sm:$0xff]  ;;  %v6629_v10 = vld [vmem:[#allocation6 + $0x20a] sm:$0xff] }
 0x157   : > { %v2399_v3 = vadd.f32 %v2351_v1, %v2253_v8  ;;  %v2644_v20 = vmul.f32 %v6581_v29, %v6554_v36  ;;  %v2648_v55 = vmul.f32 %v6581_v29, %v6578_v40  ;;  %v6590_v63 = vstv %s6536_s26  ;;  %v6635_v1 = vld [vmem:[#allocation6 + $0x228] sm:$0xff] }
 0x158   : > { %v1686_v25 = vmax.f32 %v1654_v13, %v1658_v47  ;;  %v2403_v30 = vadd.f32 %v2355_v22, %v2257_v27  ;;  %v2790_v9 = vmul.f32 %v6590_v63, %v6566_v43  ;;  %v2794_v60 = vmul.f32 %v6590_v63, %v6587_v28 }
 0x159   : > { %v2545_v59 = vadd.f32 %v2497_v17, %v2399_v3  ;;  %v6599_v26 = vstv %s6552_s27  ;;  %v1767_v15 = vmul.f32 %v6519_v41, %v6393_v48  ;;  %v1771_v32 = vmul.f32 %v6519_v41, %v6409_v58  ;;  %v6647_v3 = vld [vmem:[#allocation6 + $0x22a] sm:$0xff] }
 0x15a   : > { %1714 = vst [vmem:[#allocation2 + $0xd8] sm:$0x3] %v1686_v25  ;;  %v2549_v31 = vadd.f32 %v2501_v46, %v2403_v30  ;;  %v2936_v42 = vmul.f32 %v6599_v26, %v6570_v61  ;;  %v2940_v5 = vmul.f32 %v6599_v26, %v6596_v34  ;;  %v1913_v53 = vmul.f32 %v6522_v52, %v6397_v24  ;;  %v6641_v46 = vld [vmem:[#allocation6 + $0x229] sm:$0xff] }
 0x15b   : > { %v2692_v19 = vadd.f32 %v2644_v20, %v2545_v59  ;;  %v1917_v23 = vmul.f32 %v6522_v52, %v6417_v14  ;;  %v2059_v48 = vmul.f32 %v6541_v37, %v6405_v0  ;;  %v2063_v54 = vmul.f32 %v6541_v37, %v6421_v18 }
 0x15c   : > { %v2696_v35 = vadd.f32 %v2648_v55, %v2549_v31  ;;  %v1961_v7 = vadd.f32 %v1913_v53, %v1767_v15  ;;  %v2206_v39 = vmul.f32 %v6548_v2, %v6409_v58  ;;  %v2210_v24 = vmul.f32 %v6548_v2, %v6617_v11  ;;  %v6665_v53 = vld [vmem:[#allocation6 + $0x210] sm:$0xff] }
 0x15d   : > { %v2838_v57 = vadd.f32 %v2790_v9, %v2692_v19  ;;  %v1965_v12 = vadd.f32 %v1917_v23, %v1771_v32  ;;  %v2352_v0 = vmul.f32 %v6561_v56, %v6417_v14  ;;  %v2356_v62 = vmul.f32 %v6561_v56, %v6623_v6 }
 0x15e   : > { %v2842_v21 = vadd.f32 %v2794_v60, %v2696_v35  ;;  %v2107_v38 = vadd.f32 %v2059_v48, %v1961_v7  ;;  %v2498_v58 = vmul.f32 %v6564_v45, %v6421_v18  ;;  %v2502_v16 = vmul.f32 %v6564_v45, %v6629_v10  ;;  %v6671_v48 = vld [vmem:[#allocation6 + $0x211] sm:$0xff] }
 0x15f   : > { %v2984_v8 = vadd.f32 %v2936_v42, %v2838_v57  ;;  %v2111_v22 = vadd.f32 %v2063_v54, %v1965_v12  ;;  %v2645_v14 = vmul.f32 %v6581_v29, %v6617_v11  ;;  %v2649_v17 = vmul.f32 %v6581_v29, %v6635_v1 }
 0x160   : > { %v2988_v13 = vadd.f32 %v2940_v5, %v2842_v21  ;;  %v2254_v47 = vadd.f32 %v2206_v39, %v2107_v38  ;;  %v2791_v18 = vmul.f32 %v6590_v63, %v6623_v6  ;;  %v2795_v27 = vmul.f32 %v6590_v63, %v6641_v46  ;;  %v6677_v39 = vld [vmem:[#allocation6 + $0x212] sm:$0xff] }
 0x161   : > { %v2258_v20 = vadd.f32 %v2210_v24, %v2111_v22  ;;  %v2937_v55 = vmul.f32 %v6599_v26, %v6629_v10  ;;  %v2941_v25 = vmul.f32 %v6599_v26, %v6647_v3  ;;  %v1768_v30 = vmul.f32 %v6519_v41, %v6441_v50 }
 0x162   : > { %v3032_v9 = vmax.f32 %v2984_v8, %v2988_v13  ;;  %v2400_v60 = vadd.f32 %v2352_v0, %v2254_v47  ;;  %v1772_v59 = vmul.f32 %v6519_v41, %v6457_v33  ;;  %v1914_v15 = vmul.f32 %v6522_v52, %v6445_v4  ;;  %v6683_v0 = vld [vmem:[#allocation6 + $0x230] sm:$0xff]  ;;  %v1724_v8 = vld [vmem:[#allocation6 + $0x1f8] sm:$0x3] }
 0x163   : > { %v2404_v32 = vadd.f32 %v2356_v62, %v2258_v20  ;;  %v1918_v31 = vmul.f32 %v6522_v52, %v6459_v51  ;;  %v2060_v42 = vmul.f32 %v6541_v37, %v6453_v44  ;;  %v2064_v5 = vmul.f32 %v6541_v37, %v6467_v49  ;;  %v1866_v47 = vld [vmem:[#allocation6 + $0x1d9] sm:$0x3] }
 0x164   : > { %3057 = vst [vmem:[#allocation2 + $0xe0] sm:$0xff] %v3032_v9  ;;  %v2546_v50 = vadd.f32 %v2498_v58, %v2400_v60  ;;  %v1962_v19 = vadd.f32 %v1914_v15, %v1768_v30  ;;  %v2207_v23 = vmul.f32 %v6548_v2, %v6457_v33  ;;  %v2211_v4 = vmul.f32 %v6548_v2, %v6665_v53  ;;  %v6689_v58 = vld [vmem:[#allocation6 + $0x231] sm:$0xff]  ;;  %v1870_v20 = vld [vmem:[#allocation6 + $0x1f9] sm:$0x3] }
 0x165   : > { %v2550_v54 = vadd.f32 %v2502_v16, %v2404_v32  ;;  %v1966_v35 = vadd.f32 %v1918_v31, %v1772_v59  ;;  %v2353_v44 = vmul.f32 %v6561_v56, %v6459_v51  ;;  %v2357_v7 = vmul.f32 %v6561_v56, %v6671_v48  ;;  %v1720_v16 = vld [vmem:[#allocation6 + $0x1d8] sm:$0x3]  ;;  %v2016_v15 = vld [vmem:[#allocation6 + $0x1fa] sm:$0x3] }
 0x166   : > { %v2693_v24 = vadd.f32 %v2645_v14, %v2546_v50  ;;  %v2108_v57 = vadd.f32 %v2060_v42, %v1962_v19  ;;  %v2499_v33 = vmul.f32 %v6564_v45, %v6467_v49  ;;  %v2503_v12 = vmul.f32 %v6564_v45, %v6677_v39  ;;  %v2159_v32 = vld [vmem:[#allocation6 + $0x1f8] sm:$0x3] }
 0x167   : > { %v2697_v62 = vadd.f32 %v2649_v17, %v2550_v54  ;;  %v2112_v21 = vadd.f32 %v2064_v5, %v1966_v35  ;;  %v2646_v51 = vmul.f32 %v6581_v29, %v6665_v53  ;;  %v2650_v38 = vmul.f32 %v6581_v29, %v6683_v0  ;;  %v6695_v17 = vld [vmem:[#allocation6 + $0x232] sm:$0xff] }
 0x168   : > { %v2839_v22 = vadd.f32 %v2791_v18, %v2693_v24  ;;  %v2255_v14 = vadd.f32 %v2207_v23, %v2108_v57  ;;  %v2792_v49 = vmul.f32 %v6590_v63, %v6671_v48  ;;  %v2796_v13 = vmul.f32 %v6590_v63, %v6689_v58  ;;  %v2012_v18 = vld [vmem:[#allocation6 + $0x1da] sm:$0x3]  ;;  %v2163_v54 = vld [vmem:[#allocation6 + $0x218] sm:$0x3] }
 0x169   : > { %v2843_v30 = vadd.f32 %v2795_v27, %v2697_v62  ;;  %v2259_v9 = vadd.f32 %v2211_v4, %v2112_v21  ;;  %v2938_v60 = vmul.f32 %v6599_v26, %v6677_v39  ;;  %v2942_v59 = vmul.f32 %v6599_v26, %v6695_v17  ;;  %v2305_v35 = vld [vmem:[#allocation6 + $0x1f9] sm:$0x3] }
 0x16a   : > { %v2985_v31 = vadd.f32 %v2937_v55, %v2839_v22  ;;  %v2401_v42 = vadd.f32 %v2353_v44, %v2255_v14  ;;  %v1769_v5 = vmul.f32 %v6519_v41, %v1720_v16  ;;  %v1773_v50 = vmul.f32 %v6519_v41, %v1724_v8  ;;  %v2309_v24 = vld [vmem:[#allocation6 + $0x219] sm:$0x3] }
 0x16b   : > { %v2989_v19 = vadd.f32 %v2941_v25, %v2843_v30  ;;  %v2405_v23 = vadd.f32 %v2357_v7, %v2259_v9  ;;  %v1915_v27 = vmul.f32 %v6522_v52, %v1866_v47  ;;  %v1919_v4 = vmul.f32 %v6522_v52, %v1870_v20  ;;  %v2451_v44 = vld [vmem:[#allocation6 + $0x1fa] sm:$0x3]  ;;  %v2598_v14 = vld [vmem:[#allocation6 + $0x218] sm:$0x3] }
 0x16c   : > { %v2547_v57 = vadd.f32 %v2499_v33, %v2401_v42  ;;  %v2061_v62 = vmul.f32 %v6541_v37, %v2012_v18  ;;  %v2065_v21 = vmul.f32 %v6541_v37, %v2016_v15  ;;  %v2208_v55 = vmul.f32 %v6548_v2, %v2159_v32  ;;  %v2455_v7 = vld [vmem:[#allocation6 + $0x21a] sm:$0x3]  ;;  %v2602_v47 = vld [vmem:[#allocation6 + $0x238] sm:$0x3] }
 0x16d   : > { %v3033_v16 = vmax.f32 %v2985_v31, %v2989_v19  ;;  %v2551_v22 = vadd.f32 %v2503_v12, %v2405_v23  ;;  %v1963_v8 = vadd.f32 %v1915_v27, %v1769_v5  ;;  %v1967_v25 = vadd.f32 %v1919_v4, %v1773_v50  ;;  %v2744_v18 = vld [vmem:[#allocation6 + $0x219] sm:$0x3] }
 0x16e   : > { %v2694_v30 = vadd.f32 %v2646_v51, %v2547_v57  ;;  %v2212_v20 = vmul.f32 %v6548_v2, %v2163_v54  ;;  %v2354_v9 = vmul.f32 %v6561_v56, %v2305_v35  ;;  %v2358_v33 = vmul.f32 %v6561_v56, %v2309_v24  ;;  %v2748_v12 = vld [vmem:[#allocation6 + $0x239] sm:$0x3] }
 0x16f   : > { %3058 = vst [vmem:[#allocation2 + $0xe8] sm:$0xff] %v3033_v16  ;;  %v2698_v15 = vadd.f32 %v2650_v38, %v2551_v22  ;;  %v2109_v42 = vadd.f32 %v2061_v62, %v1963_v8  ;;  %v2113_v32 = vadd.f32 %v2065_v21, %v1967_v25  ;;  %v2500_v31 = vmul.f32 %v6564_v45, %v2451_v44  ;;  %v2890_v5 = vld [vmem:[#allocation6 + $0x21a] sm:$0x3] }
 0x170   : > { %v2894_v50 = vld [vmem:[#allocation6 + $0x23a] sm:$0x3]  ;;  %v2840_v19 = vadd.f32 %v2792_v49, %v2694_v30  ;;  %v2504_v23 = vmul.f32 %v6564_v45, %v2455_v7  ;;  %v2647_v51 = vmul.f32 %v6581_v29, %v2598_v14  ;;  %v2651_v27 = vmul.f32 %v6581_v29, %v2602_v47  ;;  %v6731_v47 = vld [vmem:[#allocation6 + $0x240] sm:$0xff] }
 0x171   : > { %v2844_v4 = vadd.f32 %v2796_v13, %v2698_v15  ;;  %v2256_v54 = vadd.f32 %v2208_v55, %v2109_v42  ;;  %v2260_v35 = vadd.f32 %v2212_v20, %v2113_v32  ;;  %v2793_v24 = vmul.f32 %v6590_v63, %v2744_v18  ;;  %v6743_v42 = vld [vmem:[#allocation6 + $0x242] sm:$0xff] }
 0x172   : > { %v2986_v38 = vadd.f32 %v2938_v60, %v2840_v19  ;;  %v2797_v57 = vmul.f32 %v6590_v63, %v2748_v12  ;;  %v2939_v62 = vmul.f32 %v6599_v26, %v2890_v5  ;;  %v2943_v21 = vmul.f32 %v6599_v26, %v2894_v50  ;;  %v6749_v5 = vld [vmem:[#allocation6 + $0x260] sm:$0xff] }
 0x173   : > { %v2990_v44 = vadd.f32 %v2942_v59, %v2844_v4  ;;  %v2402_v49 = vadd.f32 %v2354_v9, %v2256_v54  ;;  %v2406_v16 = vadd.f32 %v2358_v33, %v2260_v35  ;;  %v1774_v22 = vmul.f32 %v6554_v36, %v6519_v41  ;;  %v6737_v9 = vld [vmem:[#allocation6 + $0x241] sm:$0xff] }
 0x174   : > { %v1778_v13 = vmul.f32 %v6578_v40, %v6519_v41  ;;  %v1920_v55 = vmul.f32 %v6566_v43, %v6522_v52  ;;  %v1924_v60 = vmul.f32 %v6587_v28, %v6522_v52  ;;  %v2066_v8 = vmul.f32 %v6570_v61, %v6541_v37  ;;  %v6761_v35 = vld [vmem:[#allocation6 + $0x262] sm:$0xff] }
 0x175   : > { %v3034_v25 = vmax.f32 %v2986_v38, %v2990_v44  ;;  %v2548_v7 = vadd.f32 %v2500_v31, %v2402_v49  ;;  %v2552_v59 = vadd.f32 %v2504_v23, %v2406_v16  ;;  %v2070_v14 = vmul.f32 %v6596_v34, %v6541_v37 }
 0x176   : > { %v1968_v36 = vadd.f32 %v1920_v55, %v1774_v22  ;;  %v1972_v30 = vadd.f32 %v1924_v60, %v1778_v13  ;;  %v2213_v20 = vmul.f32 %v6578_v40, %v6548_v2  ;;  %v2217_v43 = vmul.f32 %v6548_v2, %v6731_v47 }
 0x177   : > { %3059 = vst [vmem:[#allocation2 + $0xf0] sm:$0xff] %v3034_v25  ;;  %v2695_v61 = vadd.f32 %v2647_v51, %v2548_v7  ;;  %v2699_v33 = vadd.f32 %v2651_v27, %v2552_v59  ;;  %v2359_v18 = vmul.f32 %v6587_v28, %v6561_v56  ;;  %v2363_v15 = vmul.f32 %v6561_v56, %v6737_v9  ;;  %v6755_v51 = vld [vmem:[#allocation6 + $0x261] sm:$0xff] }
 0x178   : > { %v2114_v32 = vadd.f32 %v2066_v8, %v1968_v36  ;;  %v2118_v31 = vadd.f32 %v2070_v14, %v1972_v30  ;;  %v2505_v40 = vmul.f32 %v6596_v34, %v6564_v45  ;;  %v2509_v12 = vmul.f32 %v6564_v45, %v6743_v42  ;;  %v6779_v59 = vld [vmem:[#allocation6 + $0x248] sm:$0xff] }
 0x179   : > { %v2841_v50 = vadd.f32 %v2793_v24, %v2695_v61  ;;  %v2845_v19 = vadd.f32 %v2797_v57, %v2699_v33  ;;  %v2652_v28 = vmul.f32 %v6581_v29, %v6731_v47  ;;  %v2656_v23 = vmul.f32 %v6581_v29, %v6749_v5  ;;  %v6785_v30 = vld [vmem:[#allocation6 + $0x249] sm:$0xff] }
 0x17a   : > { %v2261_v27 = vadd.f32 %v2213_v20, %v2114_v32  ;;  %v2265_v4 = vadd.f32 %v2217_v43, %v2118_v31  ;;  %v2798_v34 = vmul.f32 %v6590_v63, %v6737_v9  ;;  %v2802_v54 = vmul.f32 %v6590_v63, %v6755_v51  ;;  %v6791_v33 = vld [vmem:[#allocation6 + $0x24a] sm:$0xff] }
 0x17b   : > { %v2987_v24 = vadd.f32 %v2939_v62, %v2841_v50  ;;  %v2991_v38 = vadd.f32 %v2943_v21, %v2845_v19  ;;  %v2944_v57 = vmul.f32 %v6599_v26, %v6743_v42  ;;  %v2948_v44 = vmul.f32 %v6599_v26, %v6761_v35  ;;  %v6797_v31 = vld [vmem:[#allocation6 + $0x268] sm:$0xff] }
 0x17c   : > { %v2407_v49 = vadd.f32 %v2359_v18, %v2261_v27  ;;  %v2411_v16 = vadd.f32 %v2363_v15, %v2265_v4  ;;  %v1775_v22 = vmul.f32 %v6617_v11, %v6519_v41  ;;  %v1779_v13 = vmul.f32 %v6635_v1, %v6519_v41  ;;  %v6803_v19 = vld [vmem:[#allocation6 + $0x269] sm:$0xff] }
 0x17d   : > { %v3035_v55 = vmax.f32 %v2987_v24, %v2991_v38  ;;  %v1921_v60 = vmul.f32 %v6623_v6, %v6522_v52  ;;  %v1925_v62 = vmul.f32 %v6641_v46, %v6522_v52  ;;  %v2067_v21 = vmul.f32 %v6629_v10, %v6541_v37  ;;  %v6809_v4 = vld [vmem:[#allocation6 + $0x26a] sm:$0xff] }
 0x17e   : > { %v2553_v8 = vadd.f32 %v2505_v40, %v2407_v49  ;;  %v2557_v25 = vadd.f32 %v2509_v12, %v2411_v16  ;;  %v2071_v7 = vmul.f32 %v6647_v3, %v6541_v37  ;;  %v2214_v11 = vmul.f32 %v6635_v1, %v6548_v2 }
 0x17f   : > { %3060 = vst [vmem:[#allocation2 + $0xf8] sm:$0x3] %v3035_v55  ;;  %v1969_v14 = vadd.f32 %v1921_v60, %v1775_v22  ;;  %v1973_v36 = vadd.f32 %v1925_v62, %v1779_v13  ;;  %v2218_v6 = vmul.f32 %v6548_v2, %v6779_v59  ;;  %v2360_v10 = vmul.f32 %v6641_v46, %v6561_v56 }
 0x180   : > { %v2700_v20 = vadd.f32 %v2652_v28, %v2553_v8  ;;  %v2704_v43 = vadd.f32 %v2656_v23, %v2557_v25  ;;  %v2364_v61 = vmul.f32 %v6561_v56, %v6785_v30  ;;  %v2506_v1 = vmul.f32 %v6647_v3, %v6564_v45  ;;  %v6827_v25 = vld [vmem:[#allocation6 + $0x250] sm:$0xff] }
 0x181   : > { %v2115_v18 = vadd.f32 %v2067_v21, %v1969_v14  ;;  %v2119_v15 = vadd.f32 %v2071_v7, %v1973_v36  ;;  %v2510_v32 = vmul.f32 %v6564_v45, %v6791_v33  ;;  %v2653_v46 = vmul.f32 %v6581_v29, %v6779_v59 }
 0x182   : > { %v2846_v40 = vadd.f32 %v2798_v34, %v2700_v20  ;;  %v2850_v12 = vadd.f32 %v2802_v54, %v2704_v43  ;;  %v2657_v50 = vmul.f32 %v6581_v29, %v6797_v31  ;;  %v2799_v3 = vmul.f32 %v6590_v63, %v6785_v30  ;;  %v6839_v43 = vld [vmem:[#allocation6 + $0x252] sm:$0xff] }
 0x183   : > { %v2262_v28 = vadd.f32 %v2214_v11, %v2115_v18  ;;  %v2266_v23 = vadd.f32 %v2218_v6, %v2119_v15  ;;  %v2803_v27 = vmul.f32 %v6590_v63, %v6803_v19  ;;  %v2945_v24 = vmul.f32 %v6599_v26, %v6791_v33  ;;  %v6831_v11 = vld [vmem:[#allocation6 + $0x251] sm:$0xff] }
 0x184   : > { %v2992_v34 = vadd.f32 %v2944_v57, %v2846_v40  ;;  %v2996_v54 = vadd.f32 %v2948_v44, %v2850_v12  ;;  %v2949_v38 = vmul.f32 %v6599_v26, %v6809_v4  ;;  %v1776_v49 = vmul.f32 %v6665_v53, %v6519_v41  ;;  %v1732_v40 = vld [vmem:[#allocation6 + $0x238] sm:$0x3] }
 0x185   : > { %v2408_v16 = vadd.f32 %v2360_v10, %v2262_v28  ;;  %v2412_v22 = vadd.f32 %v2364_v61, %v2266_v23  ;;  %v1780_v13 = vmul.f32 %v6683_v0, %v6519_v41  ;;  %v1922_v55 = vmul.f32 %v6671_v48, %v6522_v52  ;;  %v6843_v61 = vld [vmem:[#allocation6 + $0x270] sm:$0xff] }
 0x186   : > { %v3036_v60 = vmax.f32 %v2992_v34, %v2996_v54  ;;  %v1926_v62 = vmul.f32 %v6689_v58, %v6522_v52  ;;  %v2068_v57 = vmul.f32 %v6677_v39, %v6541_v37  ;;  %v2072_v44 = vmul.f32 %v6695_v17, %v6541_v37  ;;  %v6855_v23 = vld [vmem:[#allocation6 + $0x272] sm:$0xff] }
 0x187   : > { %v2554_v21 = vadd.f32 %v2506_v1, %v2408_v16  ;;  %v2558_v53 = vadd.f32 %v2510_v32, %v2412_v22  ;;  %v1970_v8 = vadd.f32 %v1922_v55, %v1776_v49  ;;  %v2215_v7 = vmul.f32 %v6683_v0, %v6548_v2  ;;  %v6851_v32 = vld [vmem:[#allocation6 + $0x271] sm:$0xff]  ;;  %v1874_v34 = vld [vmem:[#allocation6 + $0x219] sm:$0x3] }
 0x188   : > { %3061 = vst [vmem:[#allocation2 + $0x100] sm:$0xff] %v3036_v60  ;;  %v1974_v48 = vadd.f32 %v1926_v62, %v1780_v13  ;;  %v2219_v14 = vmul.f32 %v6548_v2, %v6827_v25  ;;  %v2361_v39 = vmul.f32 %v6689_v58, %v6561_v56  ;;  %v2365_v36 = vmul.f32 %v6561_v56, %v6831_v11  ;;  %v1878_v54 = vld [vmem:[#allocation6 + $0x239] sm:$0x3] }
 0x189   : > { %v2701_v6 = vadd.f32 %v2653_v46, %v2554_v21  ;;  %v2705_v10 = vadd.f32 %v2657_v50, %v2558_v53  ;;  %v2116_v20 = vadd.f32 %v2068_v57, %v1970_v8  ;;  %v2507_v0 = vmul.f32 %v6695_v17, %v6564_v45  ;;  %v1728_v46 = vld [vmem:[#allocation6 + $0x218] sm:$0x3] }
 0x18a   : > { %v2120_v1 = vadd.f32 %v2072_v44, %v1974_v48  ;;  %v2511_v18 = vmul.f32 %v6564_v45, %v6839_v43  ;;  %v2654_v58 = vmul.f32 %v6581_v29, %v6827_v25  ;;  %v2658_v15 = vmul.f32 %v6581_v29, %v6843_v61  ;;  %v2167_v44 = vld [vmem:[#allocation6 + $0x238] sm:$0x3] }
 0x18b   : > { %v2847_v12 = vadd.f32 %v2799_v3, %v2701_v6  ;;  %v2851_v50 = vadd.f32 %v2803_v27, %v2705_v10  ;;  %v2263_v28 = vadd.f32 %v2215_v7, %v2116_v20  ;;  %v2800_v17 = vmul.f32 %v6590_v63, %v6831_v11  ;;  %v2020_v3 = vld [vmem:[#allocation6 + $0x21a] sm:$0x3]  ;;  %v2171_v48 = vld [vmem:[#allocation6 + $0x258] sm:$0x3] }
 0x18c   : > { %v2267_v49 = vadd.f32 %v2219_v14, %v2120_v1  ;;  %v2804_v16 = vmul.f32 %v6590_v63, %v6851_v32  ;;  %v2946_v22 = vmul.f32 %v6599_v26, %v6839_v43  ;;  %v2950_v13 = vmul.f32 %v6599_v26, %v6855_v23  ;;  %v2024_v27 = vld [vmem:[#allocation6 + $0x23a] sm:$0x3] }
 0x18d   : > { %v2993_v55 = vadd.f32 %v2945_v24, %v2847_v12  ;;  %v2997_v60 = vadd.f32 %v2949_v38, %v2851_v50  ;;  %v2409_v62 = vadd.f32 %v2361_v39, %v2263_v28  ;;  %v1777_v57 = vmul.f32 %v6519_v41, %v1728_v46  ;;  %v2313_v14 = vld [vmem:[#allocation6 + $0x239] sm:$0x3] }
 0x18e   : > { %v2413_v21 = vadd.f32 %v2365_v36, %v2267_v49  ;;  %v1781_v53 = vmul.f32 %v6519_v41, %v1732_v40  ;;  %v1923_v8 = vmul.f32 %v6522_v52, %v1874_v34  ;;  %v1927_v7 = vmul.f32 %v6522_v52, %v1878_v54  ;;  %v2317_v6 = vld [vmem:[#allocation6 + $0x259] sm:$0x3] }
 0x18f   : > { %v3037_v10 = vmax.f32 %v2993_v55, %v2997_v60  ;;  %v2555_v20 = vadd.f32 %v2507_v0, %v2409_v62  ;;  %v2069_v1 = vmul.f32 %v6541_v37, %v2020_v3  ;;  %v2073_v24 = vmul.f32 %v6541_v37, %v2024_v27  ;;  %v2459_v38 = vld [vmem:[#allocation6 + $0x23a] sm:$0x3]  ;;  %v2606_v50 = vld [vmem:[#allocation6 + $0x258] sm:$0x3] }
 0x190   : > { %v2559_v39 = vadd.f32 %v2511_v18, %v2413_v21  ;;  %v1971_v46 = vadd.f32 %v1923_v8, %v1777_v57  ;;  %v1975_v12 = vadd.f32 %v1927_v7, %v1781_v53  ;;  %v2216_v36 = vmul.f32 %v6548_v2, %v2167_v44  ;;  %v2463_v40 = vld [vmem:[#allocation6 + $0x25a] sm:$0x3]  ;;  %v2610_v28 = vld [vmem:[#allocation6 + $0x278] sm:$0x3] }
 0x191   : > { %3062 = vst [vmem:[#allocation2 + $0x108] sm:$0xff] %v3037_v10  ;;  %v2702_v34 = vadd.f32 %v2654_v58, %v2555_v20  ;;  %v2220_v54 = vmul.f32 %v6548_v2, %v2171_v48  ;;  %v2362_v49 = vmul.f32 %v6561_v56, %v2313_v14  ;;  %v2366_v0 = vmul.f32 %v6561_v56, %v2317_v6  ;;  %v2752_v3 = vld [vmem:[#allocation6 + $0x259] sm:$0x3] }
 0x192   : > { %v2706_v55 = vadd.f32 %v2658_v15, %v2559_v39  ;;  %v2117_v27 = vadd.f32 %v2069_v1, %v1971_v46  ;;  %v2121_v60 = vadd.f32 %v2073_v24, %v1975_v12  ;;  %v2508_v18 = vmul.f32 %v6564_v45, %v2459_v38  ;;  %v2756_v62 = vld [vmem:[#allocation6 + $0x279] sm:$0x3] }
 0x193   : > { %v2898_v57 = vld [vmem:[#allocation6 + $0x25a] sm:$0x3]  ;;  %v2848_v21 = vadd.f32 %v2800_v17, %v2702_v34  ;;  %v2512_v53 = vmul.f32 %v6564_v45, %v2463_v40  ;;  %v2655_v58 = vmul.f32 %v6581_v29, %v2606_v50  ;;  %v2659_v8 = vmul.f32 %v6581_v29, %v2610_v28  ;;  %v6893_v28 = vld [vmem:[#allocation6 + $0x280] sm:$0xff] }
 0x194   : > { %v2902_v44 = vld [vmem:[#allocation6 + $0x27a] sm:$0x3]  ;;  %v2852_v7 = vadd.f32 %v2804_v16, %v2706_v55  ;;  %v2264_v48 = vadd.f32 %v2216_v36, %v2117_v27  ;;  %v2268_v14 = vadd.f32 %v2220_v54, %v2121_v60  ;;  %v2801_v6 = vmul.f32 %v6590_v63, %v2752_v3  ;;  %v6905_v27 = vld [vmem:[#allocation6 + $0x282] sm:$0xff] }
 0x195   : > { %v2994_v15 = vadd.f32 %v2946_v22, %v2848_v21  ;;  %v2805_v10 = vmul.f32 %v6590_v63, %v2756_v62  ;;  %v2947_v20 = vmul.f32 %v6599_v26, %v2898_v57  ;;  %v2951_v1 = vmul.f32 %v6599_v26, %v2902_v44  ;;  %v6911_v57 = vld [vmem:[#allocation6 + $0x2a0] sm:$0xff] }
 0x196   : > { %v2998_v24 = vadd.f32 %v2950_v13, %v2852_v7  ;;  %v2410_v17 = vadd.f32 %v2362_v49, %v2264_v48  ;;  %v2414_v38 = vadd.f32 %v2366_v0, %v2268_v14  ;;  %v1782_v39 = vmul.f32 %v6731_v47, %v6519_v41  ;;  %v6899_v49 = vld [vmem:[#allocation6 + $0x281] sm:$0xff] }
 0x197   : > { %v1786_v16 = vmul.f32 %v6749_v5, %v6519_v41  ;;  %v1928_v46 = vmul.f32 %v6737_v9, %v6522_v52  ;;  %v1932_v22 = vmul.f32 %v6755_v51, %v6522_v52  ;;  %v2074_v12 = vmul.f32 %v6743_v42, %v6541_v37  ;;  %v6923_v14 = vld [vmem:[#allocation6 + $0x2a2] sm:$0xff] }
 0x198   : > { %v3038_v36 = vmax.f32 %v2994_v15, %v2998_v24  ;;  %v2556_v40 = vadd.f32 %v2508_v18, %v2410_v17  ;;  %v2560_v13 = vadd.f32 %v2512_v53, %v2414_v38  ;;  %v2078_v50 = vmul.f32 %v6761_v35, %v6541_v37 }
 0x199   : > { %v1976_v47 = vadd.f32 %v1928_v46, %v1782_v39  ;;  %v1980_v34 = vadd.f32 %v1932_v22, %v1786_v16  ;;  %v2221_v54 = vmul.f32 %v6749_v5, %v6548_v2  ;;  %v2225_v9 = vmul.f32 %v6548_v2, %v6893_v28 }
 0x19a   : > { %3063 = vst [vmem:[#allocation2 + $0x110] sm:$0xff] %v3038_v36  ;;  %v2703_v42 = vadd.f32 %v2655_v58, %v2556_v40  ;;  %v2707_v0 = vadd.f32 %v2659_v8, %v2560_v13  ;;  %v2367_v3 = vmul.f32 %v6755_v51, %v6561_v56  ;;  %v2371_v55 = vmul.f32 %v6561_v56, %v6899_v49  ;;  %v6917_v58 = vld [vmem:[#allocation6 + $0x2a1] sm:$0xff] }
 0x19b   : > { %v2122_v60 = vadd.f32 %v2074_v12, %v1976_v47  ;;  %v2126_v18 = vadd.f32 %v2078_v50, %v1980_v34  ;;  %v2513_v5 = vmul.f32 %v6761_v35, %v6564_v45  ;;  %v2517_v62 = vmul.f32 %v6564_v45, %v6905_v27  ;;  %v6941_v13 = vld [vmem:[#allocation6 + $0x288] sm:$0xff] }
 0x19c   : > { %v2849_v44 = vadd.f32 %v2801_v6, %v2703_v42  ;;  %v2853_v21 = vadd.f32 %v2805_v10, %v2707_v0  ;;  %v2660_v51 = vmul.f32 %v6581_v29, %v6893_v28  ;;  %v2664_v53 = vmul.f32 %v6581_v29, %v6911_v57  ;;  %v6947_v34 = vld [vmem:[#allocation6 + $0x289] sm:$0xff] }
 0x19d   : > { %v2269_v8 = vadd.f32 %v2221_v54, %v2122_v60  ;;  %v2273_v7 = vadd.f32 %v2225_v9, %v2126_v18  ;;  %v2806_v35 = vmul.f32 %v6590_v63, %v6899_v49  ;;  %v2810_v48 = vmul.f32 %v6590_v63, %v6917_v58  ;;  %v6953_v0 = vld [vmem:[#allocation6 + $0x28a] sm:$0xff] }
 0x19e   : > { %v2995_v6 = vadd.f32 %v2947_v20, %v2849_v44  ;;  %v2999_v15 = vadd.f32 %v2951_v1, %v2853_v21  ;;  %v2952_v10 = vmul.f32 %v6599_v26, %v6905_v27  ;;  %v2956_v24 = vmul.f32 %v6599_v26, %v6923_v14  ;;  %v6959_v18 = vld [vmem:[#allocation6 + $0x2a8] sm:$0xff] }
 0x19f   : > { %v2415_v17 = vadd.f32 %v2367_v3, %v2269_v8  ;;  %v2419_v38 = vadd.f32 %v2371_v55, %v2273_v7  ;;  %v1783_v39 = vmul.f32 %v6779_v59, %v6519_v41  ;;  %v1787_v16 = vmul.f32 %v6797_v31, %v6519_v41  ;;  %v6965_v21 = vld [vmem:[#allocation6 + $0x2a9] sm:$0xff] }
 0x1a0   : > { %v3039_v46 = vmax.f32 %v2995_v6, %v2999_v15  ;;  %v1929_v22 = vmul.f32 %v6785_v30, %v6522_v52  ;;  %v1933_v20 = vmul.f32 %v6803_v19, %v6522_v52  ;;  %v2075_v1 = vmul.f32 %v6791_v33, %v6541_v37  ;;  %v6971_v7 = vld [vmem:[#allocation6 + $0x2aa] sm:$0xff] }
 0x1a1   : > { %v2561_v12 = vadd.f32 %v2513_v5, %v2415_v17  ;;  %v2565_v36 = vadd.f32 %v2517_v62, %v2419_v38  ;;  %v2079_v40 = vmul.f32 %v6809_v4, %v6541_v37  ;;  %v2222_v59 = vmul.f32 %v6797_v31, %v6548_v2 }
 0x1a2   : > { %3064 = vst [vmem:[#allocation2 + $0x118] sm:$0x3] %v3039_v46  ;;  %v1977_v50 = vadd.f32 %v1929_v22, %v1783_v39  ;;  %v1981_v47 = vadd.f32 %v1933_v20, %v1787_v16  ;;  %v2226_v30 = vmul.f32 %v6548_v2, %v6941_v13  ;;  %v2368_v33 = vmul.f32 %v6803_v19, %v6561_v56 }
 0x1a3   : > { %v2708_v54 = vadd.f32 %v2660_v51, %v2561_v12  ;;  %v2712_v9 = vadd.f32 %v2664_v53, %v2565_v36  ;;  %v2372_v42 = vmul.f32 %v6561_v56, %v6947_v34  ;;  %v2514_v31 = vmul.f32 %v6809_v4, %v6564_v45  ;;  %v6989_v36 = vld [vmem:[#allocation6 + $0x290] sm:$0xff] }
 0x1a4   : > { %v2123_v3 = vadd.f32 %v2075_v1, %v1977_v50  ;;  %v2127_v55 = vadd.f32 %v2079_v40, %v1981_v47  ;;  %v2518_v60 = vmul.f32 %v6564_v45, %v6953_v0  ;;  %v2661_v19 = vmul.f32 %v6581_v29, %v6941_v13 }
 0x1a5   : > { %v2854_v5 = vadd.f32 %v2806_v35, %v2708_v54  ;;  %v2858_v62 = vadd.f32 %v2810_v48, %v2712_v9  ;;  %v2665_v44 = vmul.f32 %v6581_v29, %v6959_v18  ;;  %v2807_v4 = vmul.f32 %v6590_v63, %v6947_v34  ;;  %v7001_v9 = vld [vmem:[#allocation6 + $0x292] sm:$0xff] }
 0x1a6   : > { %v2270_v51 = vadd.f32 %v2222_v59, %v2123_v3  ;;  %v2274_v53 = vadd.f32 %v2226_v30, %v2127_v55  ;;  %v2811_v8 = vmul.f32 %v6590_v63, %v6965_v21  ;;  %v2953_v6 = vmul.f32 %v6599_v26, %v6953_v0  ;;  %v6993_v59 = vld [vmem:[#allocation6 + $0x291] sm:$0xff] }
 0x1a7   : > { %v3000_v35 = vadd.f32 %v2952_v10, %v2854_v5  ;;  %v3004_v48 = vadd.f32 %v2956_v24, %v2858_v62  ;;  %v2957_v15 = vmul.f32 %v6599_v26, %v6971_v7  ;;  %v1784_v17 = vmul.f32 %v6827_v25, %v6519_v41  ;;  %v1740_v5 = vld [vmem:[#allocation6 + $0x278] sm:$0x3] }
 0x1a8   : > { %v2416_v38 = vadd.f32 %v2368_v33, %v2270_v51  ;;  %v2420_v39 = vadd.f32 %v2372_v42, %v2274_v53  ;;  %v1788_v16 = vmul.f32 %v6843_v61, %v6519_v41  ;;  %v1930_v46 = vmul.f32 %v6831_v11, %v6522_v52  ;;  %v7005_v42 = vld [vmem:[#allocation6 + $0x2b0] sm:$0xff] }
 0x1a9   : > { %v3040_v22 = vmax.f32 %v3000_v35, %v3004_v48  ;;  %v1934_v20 = vmul.f32 %v6851_v32, %v6522_v52  ;;  %v2076_v10 = vmul.f32 %v6839_v43, %v6541_v37  ;;  %v2080_v24 = vmul.f32 %v6855_v23, %v6541_v37  ;;  %v7017_v53 = vld [vmem:[#allocation6 + $0x2b2] sm:$0xff] }
 0x1aa   : > { %v2562_v1 = vadd.f32 %v2514_v31, %v2416_v38  ;;  %v2566_v25 = vadd.f32 %v2518_v60, %v2420_v39  ;;  %v1978_v12 = vadd.f32 %v1930_v46, %v1784_v17  ;;  %v2223_v40 = vmul.f32 %v6843_v61, %v6548_v2  ;;  %v7013_v60 = vld [vmem:[#allocation6 + $0x2b1] sm:$0xff]  ;;  %v1882_v35 = vld [vmem:[#allocation6 + $0x259] sm:$0x3] }
 0x1ab   : > { %3065 = vst [vmem:[#allocation2 + $0x120] sm:$0xff] %v3040_v22  ;;  %v1982_v11 = vadd.f32 %v1934_v20, %v1788_v16  ;;  %v2227_v50 = vmul.f32 %v6548_v2, %v6989_v36  ;;  %v2369_v43 = vmul.f32 %v6851_v32, %v6561_v56  ;;  %v2373_v47 = vmul.f32 %v6561_v56, %v6993_v59  ;;  %v1886_v48 = vld [vmem:[#allocation6 + $0x279] sm:$0x3] }
 0x1ac   : > { %v2709_v30 = vadd.f32 %v2661_v19, %v2562_v1  ;;  %v2713_v33 = vadd.f32 %v2665_v44, %v2566_v25  ;;  %v2124_v54 = vadd.f32 %v2076_v10, %v1978_v12  ;;  %v2515_v61 = vmul.f32 %v6855_v23, %v6564_v45  ;;  %v1736_v19 = vld [vmem:[#allocation6 + $0x258] sm:$0x3] }
 0x1ad   : > { %v2128_v31 = vadd.f32 %v2080_v24, %v1982_v11  ;;  %v2519_v3 = vmul.f32 %v6564_v45, %v7001_v9  ;;  %v2662_v32 = vmul.f32 %v6581_v29, %v6989_v36  ;;  %v2666_v55 = vmul.f32 %v6581_v29, %v7005_v42  ;;  %v2175_v24 = vld [vmem:[#allocation6 + $0x278] sm:$0x3] }
 0x1ae   : > { %v2855_v62 = vadd.f32 %v2807_v4, %v2709_v30  ;;  %v2859_v44 = vadd.f32 %v2811_v8, %v2713_v33  ;;  %v2271_v51 = vadd.f32 %v2223_v40, %v2124_v54  ;;  %v2808_v23 = vmul.f32 %v6590_v63, %v6993_v59  ;;  %v2028_v4 = vld [vmem:[#allocation6 + $0x25a] sm:$0x3]  ;;  %v2179_v11 = vld [vmem:[#allocation6 + $0x298] sm:$0x3] }
 0x1af   : > { %v2275_v17 = vadd.f32 %v2227_v50, %v2128_v31  ;;  %v2812_v38 = vmul.f32 %v6590_v63, %v7013_v60  ;;  %v2954_v39 = vmul.f32 %v6599_v26, %v7001_v9  ;;  %v2958_v16 = vmul.f32 %v6599_v26, %v7017_v53  ;;  %v2032_v8 = vld [vmem:[#allocation6 + $0x27a] sm:$0x3] }
 0x1b0   : > { %v3001_v46 = vadd.f32 %v2953_v6, %v2855_v62  ;;  %v3005_v22 = vadd.f32 %v2957_v15, %v2859_v44  ;;  %v2417_v20 = vadd.f32 %v2369_v43, %v2271_v51  ;;  %v1785_v10 = vmul.f32 %v6519_v41, %v1736_v19  ;;  %v2321_v50 = vld [vmem:[#allocation6 + $0x279] sm:$0x3] }
 0x1b1   : > { %v2421_v1 = vadd.f32 %v2373_v47, %v2275_v17  ;;  %v1789_v25 = vmul.f32 %v6519_v41, %v1740_v5  ;;  %v1931_v12 = vmul.f32 %v6522_v52, %v1882_v35  ;;  %v1935_v40 = vmul.f32 %v6522_v52, %v1886_v48  ;;  %v2325_v30 = vld [vmem:[#allocation6 + $0x299] sm:$0x3] }
 0x1b2   : > { %v3041_v33 = vmax.f32 %v3001_v46, %v3005_v22  ;;  %v2563_v54 = vadd.f32 %v2515_v61, %v2417_v20  ;;  %v2077_v31 = vmul.f32 %v6541_v37, %v2028_v4  ;;  %v2081_v6 = vmul.f32 %v6541_v37, %v2032_v8  ;;  %v2467_v15 = vld [vmem:[#allocation6 + $0x27a] sm:$0x3]  ;;  %v2614_v44 = vld [vmem:[#allocation6 + $0x298] sm:$0x3] }
 0x1b3   : > { %v2567_v43 = vadd.f32 %v2519_v3, %v2421_v1  ;;  %v1979_v19 = vadd.f32 %v1931_v12, %v1785_v10  ;;  %v1983_v62 = vadd.f32 %v1935_v40, %v1789_v25  ;;  %v2224_v47 = vmul.f32 %v6548_v2, %v2175_v24  ;;  %v2471_v5 = vld [vmem:[#allocation6 + $0x29a] sm:$0x3]  ;;  %v2618_v51 = vld [vmem:[#allocation6 + $0x2b8] sm:$0x3] }
 0x1b4   : > { %3066 = vst [vmem:[#allocation2 + $0x128] sm:$0xff] %v3041_v33  ;;  %v2710_v35 = vadd.f32 %v2662_v32, %v2563_v54  ;;  %v2228_v48 = vmul.f32 %v6548_v2, %v2179_v11  ;;  %v2370_v17 = vmul.f32 %v6561_v56, %v2321_v50  ;;  %v2374_v61 = vmul.f32 %v6561_v56, %v2325_v30  ;;  %v2760_v4 = vld [vmem:[#allocation6 + $0x299] sm:$0x3] }
 0x1b5   : > { %v2714_v46 = vadd.f32 %v2666_v55, %v2567_v43  ;;  %v2125_v8 = vadd.f32 %v2077_v31, %v1979_v19  ;;  %v2129_v22 = vadd.f32 %v2081_v6, %v1983_v62  ;;  %v2516_v3 = vmul.f32 %v6564_v45, %v2467_v15  ;;  %v2764_v20 = vld [vmem:[#allocation6 + $0x2b9] sm:$0x3] }
 0x1b6   : > { %v2906_v10 = vld [vmem:[#allocation6 + $0x29a] sm:$0x3]  ;;  %v2856_v1 = vadd.f32 %v2808_v23, %v2710_v35  ;;  %v2520_v25 = vmul.f32 %v6564_v45, %v2471_v5  ;;  %v2663_v32 = vmul.f32 %v6581_v29, %v2614_v44  ;;  %v2667_v12 = vmul.f32 %v6581_v29, %v2618_v51  ;;  %v7055_v51 = vld [vmem:[#allocation6 + $0x2c0] sm:$0xff] }
 0x1b7   : > { %v2910_v24 = vld [vmem:[#allocation6 + $0x2ba] sm:$0x3]  ;;  %v2860_v40 = vadd.f32 %v2812_v38, %v2714_v46  ;;  %v2272_v11 = vadd.f32 %v2224_v47, %v2125_v8  ;;  %v2276_v50 = vadd.f32 %v2228_v48, %v2129_v22  ;;  %v2809_v30 = vmul.f32 %v6590_v63, %v2760_v4  ;;  %v7067_v8 = vld [vmem:[#allocation6 + $0x2c2] sm:$0xff] }
 0x1b8   : > { %v3002_v55 = vadd.f32 %v2954_v39, %v2856_v1  ;;  %v2813_v33 = vmul.f32 %v6590_v63, %v2764_v20  ;;  %v2955_v54 = vmul.f32 %v6599_v26, %v2906_v10  ;;  %v2959_v31 = vmul.f32 %v6599_v26, %v2910_v24  ;;  %v7073_v10 = vld [vmem:[#allocation6 + $0x2e0] sm:$0xff] }
 0x1b9   : > { %v3006_v6 = vadd.f32 %v2958_v16, %v2860_v40  ;;  %v2418_v23 = vadd.f32 %v2370_v17, %v2272_v11  ;;  %v2422_v15 = vadd.f32 %v2374_v61, %v2276_v50  ;;  %v1790_v43 = vmul.f32 %v6893_v28, %v6519_v41  ;;  %v7061_v17 = vld [vmem:[#allocation6 + $0x2c1] sm:$0xff] }
 0x1ba   : > { %v1794_v38 = vmul.f32 %v6911_v57, %v6519_v41  ;;  %v1936_v19 = vmul.f32 %v6899_v49, %v6522_v52  ;;  %v1940_v39 = vmul.f32 %v6917_v58, %v6522_v52  ;;  %v2082_v62 = vmul.f32 %v6905_v27, %v6541_v37  ;;  %v7085_v50 = vld [vmem:[#allocation6 + $0x2e2] sm:$0xff] }
 0x1bb   : > { %v3042_v47 = vmax.f32 %v3002_v55, %v3006_v6  ;;  %v2564_v5 = vadd.f32 %v2516_v3, %v2418_v23  ;;  %v2568_v16 = vadd.f32 %v2520_v25, %v2422_v15  ;;  %v2086_v44 = vmul.f32 %v6923_v14, %v6541_v37 }
 0x1bc   : > { %v1984_v28 = vadd.f32 %v1936_v19, %v1790_v43  ;;  %v1988_v35 = vadd.f32 %v1940_v39, %v1794_v38  ;;  %v2229_v48 = vmul.f32 %v6911_v57, %v6548_v2  ;;  %v2233_v49 = vmul.f32 %v6548_v2, %v7055_v51 }
 0x1bd   : > { %3067 = vst [vmem:[#allocation2 + $0x130] sm:$0xff] %v3042_v47  ;;  %v2711_v27 = vadd.f32 %v2663_v32, %v2564_v5  ;;  %v2715_v61 = vadd.f32 %v2667_v12, %v2568_v16  ;;  %v2375_v4 = vmul.f32 %v6917_v58, %v6561_v56  ;;  %v2379_v46 = vmul.f32 %v6561_v56, %v7061_v17  ;;  %v7079_v32 = vld [vmem:[#allocation6 + $0x2e1] sm:$0xff] }
 0x1be   : > { %v2130_v22 = vadd.f32 %v2082_v62, %v1984_v28  ;;  %v2134_v3 = vadd.f32 %v2086_v44, %v1988_v35  ;;  %v2521_v57 = vmul.f32 %v6923_v14, %v6564_v45  ;;  %v2525_v20 = vmul.f32 %v6564_v45, %v7067_v8  ;;  %v7103_v16 = vld [vmem:[#allocation6 + $0x2c8] sm:$0xff] }
 0x1bf   : > { %v2857_v24 = vadd.f32 %v2809_v30, %v2711_v27  ;;  %v2861_v1 = vadd.f32 %v2813_v33, %v2715_v61  ;;  %v2668_v58 = vmul.f32 %v6581_v29, %v7055_v51  ;;  %v2672_v25 = vmul.f32 %v6581_v29, %v7073_v10  ;;  %v7109_v35 = vld [vmem:[#allocation6 + $0x2c9] sm:$0xff] }
 0x1c0   : > { %v2277_v12 = vadd.f32 %v2229_v48, %v2130_v22  ;;  %v2281_v40 = vadd.f32 %v2233_v49, %v2134_v3  ;;  %v2814_v14 = vmul.f32 %v6590_v63, %v7061_v17  ;;  %v2818_v11 = vmul.f32 %v6590_v63, %v7079_v32  ;;  %v7115_v61 = vld [vmem:[#allocation6 + $0x2ca] sm:$0xff] }
 0x1c1   : > { %v3003_v30 = vadd.f32 %v2955_v54, %v2857_v24  ;;  %v3007_v55 = vadd.f32 %v2959_v31, %v2861_v1  ;;  %v2960_v33 = vmul.f32 %v6599_v26, %v7067_v8  ;;  %v2964_v6 = vmul.f32 %v6599_v26, %v7085_v50  ;;  %v7121_v3 = vld [vmem:[#allocation6 + $0x2e8] sm:$0xff] }
 0x1c2   : > { %v2423_v23 = vadd.f32 %v2375_v4, %v2277_v12  ;;  %v2427_v15 = vadd.f32 %v2379_v46, %v2281_v40  ;;  %v1791_v43 = vmul.f32 %v6941_v13, %v6519_v41  ;;  %v1795_v38 = vmul.f32 %v6959_v18, %v6519_v41  ;;  %v7127_v1 = vld [vmem:[#allocation6 + $0x2e9] sm:$0xff] }
 0x1c3   : > { %v3043_v19 = vmax.f32 %v3003_v30, %v3007_v55  ;;  %v1937_v39 = vmul.f32 %v6947_v34, %v6522_v52  ;;  %v1941_v54 = vmul.f32 %v6965_v21, %v6522_v52  ;;  %v2083_v31 = vmul.f32 %v6953_v0, %v6541_v37  ;;  %v7133_v40 = vld [vmem:[#allocation6 + $0x2ea] sm:$0xff] }
 0x1c4   : > { %v2569_v62 = vadd.f32 %v2521_v57, %v2423_v23  ;;  %v2573_v47 = vadd.f32 %v2525_v20, %v2427_v15  ;;  %v2087_v5 = vmul.f32 %v6971_v7, %v6541_v37  ;;  %v2230_v13 = vmul.f32 %v6959_v18, %v6548_v2 }
 0x1c5   : > { %3068 = vst [vmem:[#allocation2 + $0x138] sm:$0x3] %v3043_v19  ;;  %v1985_v44 = vadd.f32 %v1937_v39, %v1791_v43  ;;  %v1989_v28 = vadd.f32 %v1941_v54, %v1795_v38  ;;  %v2234_v34 = vmul.f32 %v6548_v2, %v7103_v16  ;;  %v2376_v0 = vmul.f32 %v6965_v21, %v6561_v56 }
 0x1c6   : > { %v2716_v48 = vadd.f32 %v2668_v58, %v2569_v62  ;;  %v2720_v49 = vadd.f32 %v2672_v25, %v2573_v47  ;;  %v2380_v27 = vmul.f32 %v6561_v56, %v7109_v35  ;;  %v2522_v18 = vmul.f32 %v6971_v7, %v6564_v45  ;;  %v7151_v47 = vld [vmem:[#allocation6 + $0x2d0] sm:$0xff] }
 0x1c7   : > { %v2131_v4 = vadd.f32 %v2083_v31, %v1985_v44  ;;  %v2135_v46 = vadd.f32 %v2087_v5, %v1989_v28  ;;  %v2526_v22 = vmul.f32 %v6564_v45, %v7115_v61  ;;  %v2669_v21 = vmul.f32 %v6581_v29, %v7103_v16 }
 0x1c8   : > { %v2862_v57 = vadd.f32 %v2814_v14, %v2716_v48  ;;  %v2866_v20 = vadd.f32 %v2818_v11, %v2720_v49  ;;  %v2673_v24 = vmul.f32 %v6581_v29, %v7121_v3  ;;  %v2815_v7 = vmul.f32 %v6590_v63, %v7109_v35  ;;  %v7163_v49 = vld [vmem:[#allocation6 + $0x2d2] sm:$0xff] }
 0x1c9   : > { %v2278_v58 = vadd.f32 %v2230_v13, %v2131_v4  ;;  %v2282_v25 = vadd.f32 %v2234_v34, %v2135_v46  ;;  %v2819_v12 = vmul.f32 %v6590_v63, %v7127_v1  ;;  %v2961_v30 = vmul.f32 %v6599_v26, %v7115_v61  ;;  %v7155_v13 = vld [vmem:[#allocation6 + $0x2d1] sm:$0xff] }
 0x1ca   : > { %v3008_v14 = vadd.f32 %v2960_v33, %v2862_v57  ;;  %v3012_v11 = vadd.f32 %v2964_v6, %v2866_v20  ;;  %v2965_v55 = vmul.f32 %v6599_v26, %v7133_v40  ;;  %v1792_v23 = vmul.f32 %v6989_v36, %v6519_v41  ;;  %v1748_v57 = vld [vmem:[#allocation6 + $0x2b8] sm:$0x3] }
 0x1cb   : > { %v2424_v15 = vadd.f32 %v2376_v0, %v2278_v58  ;;  %v2428_v43 = vadd.f32 %v2380_v27, %v2282_v25  ;;  %v1796_v38 = vmul.f32 %v7005_v42, %v6519_v41  ;;  %v1938_v19 = vmul.f32 %v6993_v59, %v6522_v52  ;;  %v7167_v27 = vld [vmem:[#allocation6 + $0x2f0] sm:$0xff] }
 0x1cc   : > { %v3044_v39 = vmax.f32 %v3008_v14, %v3012_v11  ;;  %v1942_v54 = vmul.f32 %v7013_v60, %v6522_v52  ;;  %v2084_v33 = vmul.f32 %v7001_v9, %v6541_v37  ;;  %v2088_v6 = vmul.f32 %v7017_v53, %v6541_v37  ;;  %v7179_v25 = vld [vmem:[#allocation6 + $0x2f2] sm:$0xff] }
 0x1cd   : > { %v2570_v31 = vadd.f32 %v2522_v18, %v2424_v15  ;;  %v2574_v36 = vadd.f32 %v2526_v22, %v2428_v43  ;;  %v1986_v62 = vadd.f32 %v1938_v19, %v1792_v23  ;;  %v2231_v5 = vmul.f32 %v7005_v42, %v6548_v2  ;;  %v7175_v22 = vld [vmem:[#allocation6 + $0x2f1] sm:$0xff]  ;;  %v1890_v14 = vld [vmem:[#allocation6 + $0x299] sm:$0x3] }
 0x1ce   : > { %3069 = vst [vmem:[#allocation2 + $0x140] sm:$0xff] %v3044_v39  ;;  %v1990_v59 = vadd.f32 %v1942_v54, %v1796_v38  ;;  %v2235_v44 = vmul.f32 %v6548_v2, %v7151_v47  ;;  %v2377_v9 = vmul.f32 %v7013_v60, %v6561_v56  ;;  %v2381_v28 = vmul.f32 %v6561_v56, %v7155_v13  ;;  %v1894_v11 = vld [vmem:[#allocation6 + $0x2b9] sm:$0x3] }
 0x1cf   : > { %v2717_v34 = vadd.f32 %v2669_v21, %v2570_v31  ;;  %v2721_v0 = vadd.f32 %v2673_v24, %v2574_v36  ;;  %v2132_v48 = vadd.f32 %v2084_v33, %v1986_v62  ;;  %v2523_v42 = vmul.f32 %v7017_v53, %v6564_v45  ;;  %v1744_v21 = vld [vmem:[#allocation6 + $0x298] sm:$0x3] }
 0x1d0   : > { %v2136_v18 = vadd.f32 %v2088_v6, %v1990_v59  ;;  %v2527_v4 = vmul.f32 %v6564_v45, %v7163_v49  ;;  %v2670_v60 = vmul.f32 %v6581_v29, %v7151_v47  ;;  %v2674_v46 = vmul.f32 %v6581_v29, %v7167_v27  ;;  %v2183_v6 = vld [vmem:[#allocation6 + $0x2b8] sm:$0x3] }
 0x1d1   : > { %v2863_v20 = vadd.f32 %v2815_v7, %v2717_v34  ;;  %v2867_v24 = vadd.f32 %v2819_v12, %v2721_v0  ;;  %v2279_v58 = vadd.f32 %v2231_v5, %v2132_v48  ;;  %v2816_v53 = vmul.f32 %v6590_v63, %v7155_v13  ;;  %v2036_v7 = vld [vmem:[#allocation6 + $0x29a] sm:$0x3]  ;;  %v2187_v59 = vld [vmem:[#allocation6 + $0x2d8] sm:$0x3] }
 0x1d2   : > { %v2283_v23 = vadd.f32 %v2235_v44, %v2136_v18  ;;  %v2820_v15 = vmul.f32 %v6590_v63, %v7175_v22  ;;  %v2962_v43 = vmul.f32 %v6599_v26, %v7163_v49  ;;  %v2966_v38 = vmul.f32 %v6599_v26, %v7179_v25  ;;  %v2040_v12 = vld [vmem:[#allocation6 + $0x2ba] sm:$0x3] }
 0x1d3   : > { %v3009_v19 = vadd.f32 %v2961_v30, %v2863_v20  ;;  %v3013_v39 = vadd.f32 %v2965_v55, %v2867_v24  ;;  %v2425_v54 = vadd.f32 %v2377_v9, %v2279_v58  ;;  %v1793_v33 = vmul.f32 %v6519_v41, %v1744_v21  ;;  %v2329_v44 = vld [vmem:[#allocation6 + $0x2b9] sm:$0x3] }
 0x1d4   : > { %v2429_v31 = vadd.f32 %v2381_v28, %v2283_v23  ;;  %v1797_v36 = vmul.f32 %v6519_v41, %v1748_v57  ;;  %v1939_v62 = vmul.f32 %v6522_v52, %v1890_v14  ;;  %v1943_v5 = vmul.f32 %v6522_v52, %v1894_v11  ;;  %v2333_v34 = vld [vmem:[#allocation6 + $0x2d9] sm:$0x3] }
 0x1d5   : > { %v3045_v0 = vmax.f32 %v3009_v19, %v3013_v39  ;;  %v2571_v48 = vadd.f32 %v2523_v42, %v2425_v54  ;;  %v2085_v18 = vmul.f32 %v6541_v37, %v2036_v7  ;;  %v2089_v30 = vmul.f32 %v6541_v37, %v2040_v12  ;;  %v2475_v55 = vld [vmem:[#allocation6 + $0x2ba] sm:$0x3]  ;;  %v2622_v24 = vld [vmem:[#allocation6 + $0x2d8] sm:$0x3] }
 0x1d6   : > { %v2575_v9 = vadd.f32 %v2527_v4, %v2429_v31  ;;  %v1987_v21 = vadd.f32 %v1939_v62, %v1793_v33  ;;  %v1991_v20 = vadd.f32 %v1943_v5, %v1797_v36  ;;  %v2232_v28 = vmul.f32 %v6548_v2, %v2183_v6  ;;  %v2479_v57 = vld [vmem:[#allocation6 + $0x2da] sm:$0x3]  ;;  %v2626_v58 = vld [vmem:[#allocation6 + $0x2f8] sm:$0x3] }
 0x1d7   : > { %3070 = vst [vmem:[#allocation2 + $0x148] sm:$0xff] %v3045_v0  ;;  %v2718_v14 = vadd.f32 %v2670_v60, %v2571_v48  ;;  %v2236_v11 = vmul.f32 %v6548_v2, %v2187_v59  ;;  %v2378_v23 = vmul.f32 %v6561_v56, %v2329_v44  ;;  %v2382_v42 = vmul.f32 %v6561_v56, %v2333_v34  ;;  %v2768_v7 = vld [vmem:[#allocation6 + $0x2d9] sm:$0x3] }
 0x1d8   : > { %v2722_v19 = vadd.f32 %v2674_v46, %v2575_v9  ;;  %v2133_v12 = vadd.f32 %v2085_v18, %v1987_v21  ;;  %v2137_v39 = vadd.f32 %v2089_v30, %v1991_v20  ;;  %v2524_v4 = vmul.f32 %v6564_v45, %v2475_v55  ;;  %v2772_v54 = vld [vmem:[#allocation6 + $0x2f9] sm:$0x3] }
 0x1d9   : > { %v2914_v33 = vld [vmem:[#allocation6 + $0x2da] sm:$0x3]  ;;  %v2864_v31 = vadd.f32 %v2816_v53, %v2718_v14  ;;  %v2528_v36 = vmul.f32 %v6564_v45, %v2479_v57  ;;  %v2671_v60 = vmul.f32 %v6581_v29, %v2622_v24  ;;  %v2675_v62 = vmul.f32 %v6581_v29, %v2626_v58  ;;  %v7217_v58 = vld [vmem:[#allocation6 + $0x300] sm:$0xff] }
 0x1da   : > { %v2918_v6 = vld [vmem:[#allocation6 + $0x2fa] sm:$0x3]  ;;  %v2868_v5 = vadd.f32 %v2820_v15, %v2722_v19  ;;  %v2280_v59 = vadd.f32 %v2232_v28, %v2133_v12  ;;  %v2284_v44 = vadd.f32 %v2236_v11, %v2137_v39  ;;  %v2817_v34 = vmul.f32 %v6590_v63, %v2768_v7  ;;  %v7229_v12 = vld [vmem:[#allocation6 + $0x302] sm:$0xff] }
 0x1db   : > { %v3010_v46 = vadd.f32 %v2962_v43, %v2864_v31  ;;  %v2821_v0 = vmul.f32 %v6590_v63, %v2772_v54  ;;  %v2963_v48 = vmul.f32 %v6599_v26, %v2914_v33  ;;  %v2967_v18 = vmul.f32 %v6599_v26, %v2918_v6  ;;  %v7235_v33 = vld [vmem:[#allocation6 + $0x320] sm:$0xff] }
 0x1dc   : > { %v3014_v30 = vadd.f32 %v2966_v38, %v2868_v5  ;;  %v2426_v53 = vadd.f32 %v2378_v23, %v2280_v59  ;;  %v2430_v55 = vadd.f32 %v2382_v42, %v2284_v44  ;;  %v1798_v9 = vmul.f32 %v7055_v51, %v6519_v41  ;;  %v7223_v23 = vld [vmem:[#allocation6 + $0x301] sm:$0xff] }
 0x1dd   : > { %v1802_v15 = vmul.f32 %v7073_v10, %v6519_v41  ;;  %v1944_v21 = vmul.f32 %v7061_v17, %v6522_v52  ;;  %v1948_v43 = vmul.f32 %v7079_v32, %v6522_v52  ;;  %v2090_v20 = vmul.f32 %v7067_v8, %v6541_v37  ;;  %v7247_v44 = vld [vmem:[#allocation6 + $0x322] sm:$0xff] }
 0x1de   : > { %v3046_v28 = vmax.f32 %v3010_v46, %v3014_v30  ;;  %v2572_v57 = vadd.f32 %v2524_v4, %v2426_v53  ;;  %v2576_v38 = vadd.f32 %v2528_v36, %v2430_v55  ;;  %v2094_v24 = vmul.f32 %v7085_v50, %v6541_v37 }
 0x1df   : > { %v1992_v51 = vadd.f32 %v1944_v21, %v1798_v9  ;;  %v1996_v14 = vadd.f32 %v1948_v43, %v1802_v15  ;;  %v2237_v11 = vmul.f32 %v7073_v10, %v6548_v2  ;;  %v2241_v17 = vmul.f32 %v6548_v2, %v7217_v58 }
 0x1e0   : > { %3071 = vst [vmem:[#allocation2 + $0x150] sm:$0xff] %v3046_v28  ;;  %v2719_v8 = vadd.f32 %v2671_v60, %v2572_v57  ;;  %v2723_v42 = vadd.f32 %v2675_v62, %v2576_v38  ;;  %v2383_v7 = vmul.f32 %v7079_v32, %v6561_v56  ;;  %v2387_v19 = vmul.f32 %v6561_v56, %v7223_v23  ;;  %v7241_v60 = vld [vmem:[#allocation6 + $0x321] sm:$0xff] }
 0x1e1   : > { %v2138_v39 = vadd.f32 %v2090_v20, %v1992_v51  ;;  %v2142_v4 = vadd.f32 %v2094_v24, %v1996_v14  ;;  %v2529_v10 = vmul.f32 %v7085_v50, %v6564_v45  ;;  %v2533_v54 = vmul.f32 %v6564_v45, %v7229_v12  ;;  %v7265_v38 = vld [vmem:[#allocation6 + $0x308] sm:$0xff] }
 0x1e2   : > { %v2865_v6 = vadd.f32 %v2817_v34, %v2719_v8  ;;  %v2869_v31 = vadd.f32 %v2821_v0, %v2723_v42  ;;  %v2676_v32 = vmul.f32 %v6581_v29, %v7217_v58  ;;  %v2680_v36 = vmul.f32 %v6581_v29, %v7235_v33  ;;  %v7271_v14 = vld [vmem:[#allocation6 + $0x309] sm:$0xff] }
 0x1e3   : > { %v2285_v62 = vadd.f32 %v2237_v11, %v2138_v39  ;;  %v2289_v5 = vadd.f32 %v2241_v17, %v2142_v4  ;;  %v2822_v50 = vmul.f32 %v6590_v63, %v7223_v23  ;;  %v2826_v59 = vmul.f32 %v6590_v63, %v7241_v60  ;;  %v7277_v42 = vld [vmem:[#allocation6 + $0x30a] sm:$0xff] }
 0x1e4   : > { %v3011_v34 = vadd.f32 %v2963_v48, %v2865_v6  ;;  %v3015_v46 = vadd.f32 %v2967_v18, %v2869_v31  ;;  %v2968_v0 = vmul.f32 %v6599_v26, %v7229_v12  ;;  %v2972_v30 = vmul.f32 %v6599_v26, %v7247_v44  ;;  %v7283_v4 = vld [vmem:[#allocation6 + $0x328] sm:$0xff] }
 0x1e5   : > { %v2431_v53 = vadd.f32 %v2383_v7, %v2285_v62  ;;  %v2435_v55 = vadd.f32 %v2387_v19, %v2289_v5  ;;  %v1799_v9 = vmul.f32 %v7103_v16, %v6519_v41  ;;  %v1803_v15 = vmul.f32 %v7121_v3, %v6519_v41  ;;  %v7289_v31 = vld [vmem:[#allocation6 + $0x329] sm:$0xff] }
 0x1e6   : > { %v3047_v21 = vmax.f32 %v3011_v34, %v3015_v46  ;;  %v1945_v43 = vmul.f32 %v7109_v35, %v6522_v52  ;;  %v1949_v48 = vmul.f32 %v7127_v1, %v6522_v52  ;;  %v2091_v18 = vmul.f32 %v7115_v61, %v6541_v37  ;;  %v7295_v5 = vld [vmem:[#allocation6 + $0x32a] sm:$0xff] }
 0x1e7   : > { %v2577_v20 = vadd.f32 %v2529_v10, %v2431_v53  ;;  %v2581_v28 = vadd.f32 %v2533_v54, %v2435_v55  ;;  %v2095_v57 = vmul.f32 %v7133_v40, %v6541_v37  ;;  %v2238_v16 = vmul.f32 %v7121_v3, %v6548_v2 }
 0x1e8   : > { %3072 = vst [vmem:[#allocation2 + $0x158] sm:$0x3] %v3047_v21  ;;  %v1993_v24 = vadd.f32 %v1945_v43, %v1799_v9  ;;  %v1997_v51 = vadd.f32 %v1949_v48, %v1803_v15  ;;  %v2242_v35 = vmul.f32 %v6548_v2, %v7265_v38  ;;  %v2384_v61 = vmul.f32 %v7127_v1, %v6561_v56 }
 0x1e9   : > { %v2724_v11 = vadd.f32 %v2676_v32, %v2577_v20  ;;  %v2728_v17 = vadd.f32 %v2680_v36, %v2581_v28  ;;  %v2388_v8 = vmul.f32 %v6561_v56, %v7271_v14  ;;  %v2530_v3 = vmul.f32 %v7133_v40, %v6564_v45  ;;  %v7313_v28 = vld [vmem:[#allocation6 + $0x310] sm:$0xff] }
 0x1ea   : > { %v2139_v7 = vadd.f32 %v2091_v18, %v1993_v24  ;;  %v2143_v19 = vadd.f32 %v2095_v57, %v1997_v51  ;;  %v2534_v39 = vmul.f32 %v6564_v45, %v7277_v42  ;;  %v2677_v1 = vmul.f32 %v6581_v29, %v7265_v38 }
 0x1eb   : > { %v2870_v10 = vadd.f32 %v2822_v50, %v2724_v11  ;;  %v2874_v54 = vadd.f32 %v2826_v59, %v2728_v17  ;;  %v2681_v6 = vmul.f32 %v6581_v29, %v7283_v4  ;;  %v2823_v40 = vmul.f32 %v6590_v63, %v7271_v14  ;;  %v7325_v17 = vld [vmem:[#allocation6 + $0x312] sm:$0xff] }
 0x1ec   : > { %v2286_v32 = vadd.f32 %v2238_v16, %v2139_v7  ;;  %v2290_v36 = vadd.f32 %v2242_v35, %v2143_v19  ;;  %v2827_v62 = vmul.f32 %v6590_v63, %v7289_v31  ;;  %v2969_v34 = vmul.f32 %v6599_v26, %v7277_v42  ;;  %v7317_v16 = vld [vmem:[#allocation6 + $0x311] sm:$0xff] }
 0x1ed   : > { %v3016_v50 = vadd.f32 %v2968_v0, %v2870_v10  ;;  %v3020_v59 = vadd.f32 %v2972_v30, %v2874_v54  ;;  %v2973_v46 = vmul.f32 %v6599_v26, %v7295_v5  ;;  %v1800_v53 = vmul.f32 %v7151_v47, %v6519_v41  ;;  %v1756_v10 = vld [vmem:[#allocation6 + $0x2f8] sm:$0x3] }
 0x1ee   : > { %v2432_v55 = vadd.f32 %v2384_v61, %v2286_v32  ;;  %v2436_v9 = vadd.f32 %v2388_v8, %v2290_v36  ;;  %v1804_v15 = vmul.f32 %v7167_v27, %v6519_v41  ;;  %v1946_v21 = vmul.f32 %v7155_v13, %v6522_v52  ;;  %v7329_v8 = vld [vmem:[#allocation6 + $0x330] sm:$0xff] }
 0x1ef   : > { %v3048_v43 = vmax.f32 %v3016_v50, %v3020_v59  ;;  %v1950_v48 = vmul.f32 %v7175_v22, %v6522_v52  ;;  %v2092_v0 = vmul.f32 %v7163_v49, %v6541_v37  ;;  %v2096_v30 = vmul.f32 %v7179_v25, %v6541_v37  ;;  %v7341_v36 = vld [vmem:[#allocation6 + $0x332] sm:$0xff] }
 0x1f0   : > { %v2578_v18 = vadd.f32 %v2530_v3, %v2432_v55  ;;  %v2582_v47 = vadd.f32 %v2534_v39, %v2436_v9  ;;  %v1994_v20 = vadd.f32 %v1946_v21, %v1800_v53  ;;  %v2239_v57 = vmul.f32 %v7167_v27, %v6548_v2  ;;  %v7337_v39 = vld [vmem:[#allocation6 + $0x331] sm:$0xff]  ;;  %v1898_v50 = vld [vmem:[#allocation6 + $0x2d9] sm:$0x3] }
 0x1f1   : > { %3073 = vst [vmem:[#allocation2 + $0x160] sm:$0xff] %v3048_v43  ;;  %v1998_v13 = vadd.f32 %v1950_v48, %v1804_v15  ;;  %v2243_v24 = vmul.f32 %v6548_v2, %v7313_v28  ;;  %v2385_v49 = vmul.f32 %v7175_v22, %v6561_v56  ;;  %v2389_v51 = vmul.f32 %v6561_v56, %v7317_v16  ;;  %v1902_v59 = vld [vmem:[#allocation6 + $0x2f9] sm:$0x3] }
 0x1f2   : > { %v2725_v35 = vadd.f32 %v2677_v1, %v2578_v18  ;;  %v2729_v61 = vadd.f32 %v2681_v6, %v2582_v47  ;;  %v2140_v11 = vadd.f32 %v2092_v0, %v1994_v20  ;;  %v2531_v27 = vmul.f32 %v7179_v25, %v6564_v45  ;;  %v1752_v1 = vld [vmem:[#allocation6 + $0x2d8] sm:$0x3] }
 0x1f3   : > { %v2144_v3 = vadd.f32 %v2096_v30, %v1998_v13  ;;  %v2535_v7 = vmul.f32 %v6564_v45, %v7325_v17  ;;  %v2678_v22 = vmul.f32 %v6581_v29, %v7313_v28  ;;  %v2682_v19 = vmul.f32 %v6581_v29, %v7329_v8  ;;  %v2191_v30 = vld [vmem:[#allocation6 + $0x2f8] sm:$0x3] }
 0x1f4   : > { %v2871_v54 = vadd.f32 %v2823_v40, %v2725_v35  ;;  %v2875_v6 = vadd.f32 %v2827_v62, %v2729_v61  ;;  %v2287_v32 = vadd.f32 %v2239_v57, %v2140_v11  ;;  %v2824_v25 = vmul.f32 %v6590_v63, %v7317_v16  ;;  %v2044_v40 = vld [vmem:[#allocation6 + $0x2da] sm:$0x3]  ;;  %v2195_v13 = vld [vmem:[#allocation6 + $0x318] sm:$0x3] }
 0x1f5   : > { %v2291_v53 = vadd.f32 %v2243_v24, %v2144_v3  ;;  %v2828_v55 = vmul.f32 %v6590_v63, %v7337_v39  ;;  %v2970_v9 = vmul.f32 %v6599_v26, %v7325_v17  ;;  %v2974_v15 = vmul.f32 %v6599_v26, %v7341_v36  ;;  %v2048_v62 = vld [vmem:[#allocation6 + $0x2fa] sm:$0x3] }
 0x1f6   : > { %v3017_v21 = vadd.f32 %v2969_v34, %v2871_v54  ;;  %v3021_v43 = vadd.f32 %v2973_v46, %v2875_v6  ;;  %v2433_v48 = vadd.f32 %v2385_v49, %v2287_v32  ;;  %v1801_v0 = vmul.f32 %v6519_v41, %v1752_v1  ;;  %v2337_v24 = vld [vmem:[#allocation6 + $0x2f9] sm:$0x3] }
 0x1f7   : > { %v2437_v18 = vadd.f32 %v2389_v51, %v2291_v53  ;;  %v1805_v47 = vmul.f32 %v6519_v41, %v1756_v10  ;;  %v1947_v20 = vmul.f32 %v6522_v52, %v1898_v50  ;;  %v1951_v57 = vmul.f32 %v6522_v52, %v1902_v59  ;;  %v2341_v35 = vld [vmem:[#allocation6 + $0x319] sm:$0x3] }
 0x1f8   : > { %v3049_v61 = vmax.f32 %v3017_v21, %v3021_v43  ;;  %v2579_v11 = vadd.f32 %v2531_v27, %v2433_v48  ;;  %v2093_v3 = vmul.f32 %v6541_v37, %v2044_v40  ;;  %v2097_v34 = vmul.f32 %v6541_v37, %v2048_v62  ;;  %v2483_v46 = vld [vmem:[#allocation6 + $0x2fa] sm:$0x3]  ;;  %v2630_v6 = vld [vmem:[#allocation6 + $0x318] sm:$0x3] }
 0x1f9   : > { %v2583_v49 = vadd.f32 %v2535_v7, %v2437_v18  ;;  %v1995_v1 = vadd.f32 %v1947_v20, %v1801_v0  ;;  %v1999_v54 = vadd.f32 %v1951_v57, %v1805_v47  ;;  %v2240_v51 = vmul.f32 %v6548_v2, %v2191_v30  ;;  %v2487_v10 = vld [vmem:[#allocation6 + $0x31a] sm:$0x3]  ;;  %v2634_v32 = vld [vmem:[#allocation6 + $0x338] sm:$0x3] }
 0x1fa   : > { %3074 = vst [vmem:[#allocation2 + $0x168] sm:$0xff] %v3049_v61  ;;  %v2726_v50 = vadd.f32 %v2678_v22, %v2579_v11  ;;  %v2244_v59 = vmul.f32 %v6548_v2, %v2195_v13  ;;  %v2386_v53 = vmul.f32 %v6561_v56, %v2337_v24  ;;  %v2390_v27 = vmul.f32 %v6561_v56, %v2341_v35  ;;  %v2776_v40 = vld [vmem:[#allocation6 + $0x319] sm:$0x3] }
 0x1fb   : > { %v2730_v21 = vadd.f32 %v2682_v19, %v2583_v49  ;;  %v2141_v62 = vadd.f32 %v2093_v3, %v1995_v1  ;;  %v2145_v43 = vadd.f32 %v2097_v34, %v1999_v54  ;;  %v2532_v7 = vmul.f32 %v6564_v45, %v2483_v46  ;;  %v2780_v48 = vld [vmem:[#allocation6 + $0x339] sm:$0x3]  ;;  %v2200_v1 = vld [vmem:[#allocation6 + $0x340] sm:$0xff] }
 0x1fc   : > { %v2922_v0 = vld [vmem:[#allocation6 + $0x31a] sm:$0x3]  ;;  %v2872_v18 = vadd.f32 %v2824_v25, %v2726_v50  ;;  %v2536_v47 = vmul.f32 %v6564_v45, %v2487_v10  ;;  %v2679_v22 = vmul.f32 %v6581_v29, %v2630_v6  ;;  %v2683_v20 = vmul.f32 %v6581_v29, %v2634_v32  ;;  %v2346_v10 = vld [vmem:[#allocation6 + $0x341] sm:$0xff] }
 0x1fd   : > { %v2926_v30 = vld [vmem:[#allocation6 + $0x33a] sm:$0x3]  ;;  %v2876_v57 = vadd.f32 %v2828_v55, %v2730_v21  ;;  %v2288_v13 = vadd.f32 %v2240_v51, %v2141_v62  ;;  %v2292_v24 = vadd.f32 %v2244_v59, %v2145_v43  ;;  %v2825_v35 = vmul.f32 %v6590_v63, %v2776_v40  ;;  %v2492_v50 = vld [vmem:[#allocation6 + $0x342] sm:$0xff] }
 0x1fe   : > { %v3018_v19 = vadd.f32 %v2970_v9, %v2872_v18  ;;  %v2829_v61 = vmul.f32 %v6590_v63, %v2780_v48  ;;  %v2971_v11 = vmul.f32 %v6599_v26, %v2922_v0  ;;  %v2975_v3 = vmul.f32 %v6599_v26, %v2926_v30  ;;  %v2639_v40 = vld [vmem:[#allocation6 + $0x360] sm:$0xff] }
 0x1ff   : > { %v3022_v34 = vadd.f32 %v2974_v15, %v2876_v57  ;;  %v2434_v25 = vadd.f32 %v2386_v53, %v2288_v13  ;;  %v2438_v46 = vadd.f32 %v2390_v27, %v2292_v24  ;;  %v1806_v49 = vmul.f32 %v7217_v58, %v6519_v41 }
 0x200   : > { %v1810_v55 = vmul.f32 %v7235_v33, %v6519_v41  ;;  %v1952_v54 = vmul.f32 %v7223_v23, %v6522_v52  ;;  %v1956_v9 = vmul.f32 %v7241_v60, %v6522_v52  ;;  %v2098_v51 = vmul.f32 %v7229_v12, %v6541_v37 }
 0x201   : > { %v3050_v15 = vmax.f32 %v3018_v19, %v3022_v34  ;;  %v2580_v6 = vadd.f32 %v2532_v7, %v2434_v25  ;;  %v2584_v32 = vadd.f32 %v2536_v47, %v2438_v46  ;;  %v2102_v58 = vmul.f32 %v7247_v44, %v6541_v37  ;;  %v2785_v7 = vld [vmem:[#allocation6 + $0x361] sm:$0xff] }
 0x202   : > { %v2000_v59 = vadd.f32 %v1952_v54, %v1806_v49  ;;  %v2004_v53 = vadd.f32 %v1956_v9, %v1810_v55  ;;  %v2245_v27 = vmul.f32 %v7235_v33, %v6548_v2  ;;  %v2249_v23 = vmul.f32 %v6548_v2, %v2200_v1  ;;  %v2931_v33 = vld [vmem:[#allocation6 + $0x362] sm:$0xff] }
 0x203   : > { %3075 = vst [vmem:[#allocation2 + $0x170] sm:$0xff] %v3050_v15  ;;  %v2727_v21 = vadd.f32 %v2679_v22, %v2580_v6  ;;  %v2731_v62 = vadd.f32 %v2683_v20, %v2584_v32  ;;  %v2391_v12 = vmul.f32 %v7241_v60, %v6561_v56  ;;  %v2395_v43 = vmul.f32 %v6561_v56, %v2346_v10  ;;  %v2493_v32 = vld [vmem:[#allocation6 + $0x34a] sm:$0xff] }
 0x204   : > { %v2146_v48 = vadd.f32 %v2098_v51, %v2000_v59  ;;  %v2150_v0 = vadd.f32 %v2102_v58, %v2004_v53  ;;  %v2537_v30 = vmul.f32 %v7247_v44, %v6564_v45  ;;  %v2541_v18 = vmul.f32 %v6564_v45, %v2492_v50  ;;  %v2347_v51 = vld [vmem:[#allocation6 + $0x349] sm:$0xff] }
 0x205   : > { %v2873_v47 = vadd.f32 %v2825_v35, %v2727_v21  ;;  %v2877_v57 = vadd.f32 %v2829_v61, %v2731_v62  ;;  %v2684_v13 = vmul.f32 %v6581_v29, %v2200_v1  ;;  %v2688_v22 = vmul.f32 %v6581_v29, %v2639_v40  ;;  %v2201_v1 = vld [vmem:[#allocation6 + $0x348] sm:$0xff] }
 0x206   : > { %v2293_v20 = vadd.f32 %v2245_v27, %v2146_v48  ;;  %v2297_v24 = vadd.f32 %v2249_v23, %v2150_v0  ;;  %v2830_v60 = vmul.f32 %v6590_v63, %v2346_v10  ;;  %v2834_v19 = vmul.f32 %v6590_v63, %v2785_v7  ;;  %v2640_v53 = vld [vmem:[#allocation6 + $0x368] sm:$0xff] }
 0x207   : > { %v3019_v34 = vadd.f32 %v2971_v11, %v2873_v47  ;;  %v3023_v25 = vadd.f32 %v2975_v3, %v2877_v57  ;;  %v2976_v46 = vmul.f32 %v6599_v26, %v2492_v50  ;;  %v2980_v44 = vmul.f32 %v6599_v26, %v2931_v33  ;;  %v2786_v21 = vld [vmem:[#allocation6 + $0x369] sm:$0xff] }
 0x208   : > { %v2439_v49 = vadd.f32 %v2391_v12, %v2293_v20  ;;  %v2443_v55 = vadd.f32 %v2395_v43, %v2297_v24  ;;  %v1807_v35 = vmul.f32 %v7265_v38, %v6519_v41  ;;  %v1811_v61 = vmul.f32 %v7283_v4, %v6519_v41  ;;  %v2932_v7 = vld [vmem:[#allocation6 + $0x36a] sm:$0xff] }
 0x209   : > { %v3051_v54 = vmax.f32 %v3019_v34, %v3023_v25  ;;  %v1953_v9 = vmul.f32 %v7271_v14, %v6522_v52  ;;  %v1957_v11 = vmul.f32 %v7289_v31, %v6522_v52  ;;  %v2099_v3 = vmul.f32 %v7277_v42, %v6541_v37  ;;  %v2202_v25 = vld [vmem:[#allocation6 + $0x350] sm:$0xff] }
 0x20a   : > { %v2585_v10 = vadd.f32 %v2537_v30, %v2439_v49  ;;  %v2589_v15 = vadd.f32 %v2541_v18, %v2443_v55  ;;  %v2103_v38 = vmul.f32 %v7295_v5, %v6541_v37  ;;  %v2246_v6 = vmul.f32 %v7283_v4, %v6548_v2  ;;  %v2348_v49 = vld [vmem:[#allocation6 + $0x351] sm:$0xff] }
 0x20b   : > { %3076 = vst [vmem:[#allocation2 + $0x178] sm:$0x3] %v3051_v54  ;;  %v2001_v58 = vadd.f32 %v1953_v9, %v1807_v35  ;;  %v2005_v50 = vadd.f32 %v1957_v11, %v1811_v61  ;;  %v2250_v14 = vmul.f32 %v6548_v2, %v2201_v1  ;;  %v2392_v59 = vmul.f32 %v7289_v31, %v6561_v56  ;;  %v2494_v9 = vld [vmem:[#allocation6 + $0x352] sm:$0xff] }
 0x20c   : > { %v2732_v42 = vadd.f32 %v2684_v13, %v2585_v10  ;;  %v2736_v27 = vadd.f32 %v2688_v22, %v2589_v15  ;;  %v2396_v23 = vmul.f32 %v6561_v56, %v2347_v51  ;;  %v2538_v40 = vmul.f32 %v7295_v5, %v6564_v45 }
 0x20d   : > { %v2147_v62 = vadd.f32 %v2099_v3, %v2001_v58  ;;  %v2151_v4 = vadd.f32 %v2103_v38, %v2005_v50  ;;  %v2542_v12 = vmul.f32 %v6564_v45, %v2493_v32  ;;  %v2685_v43 = vmul.f32 %v6581_v29, %v2201_v1  ;;  %v2933_v58 = vld [vmem:[#allocation6 + $0x372] sm:$0xff] }
 0x20e   : > { %v2878_v48 = vadd.f32 %v2830_v60, %v2732_v42  ;;  %v2882_v0 = vadd.f32 %v2834_v19, %v2736_v27  ;;  %v2689_v31 = vmul.f32 %v6581_v29, %v2640_v53  ;;  %v2831_v30 = vmul.f32 %v6590_v63, %v2347_v51  ;;  %v1760_v53 = vld [vmem:[#allocation6 + $0x318] sm:$0x3] }
 0x20f   : > { %v2294_v18 = vadd.f32 %v2246_v6, %v2147_v62  ;;  %v2298_v33 = vadd.f32 %v2250_v14, %v2151_v4  ;;  %v2835_v47 = vmul.f32 %v6590_v63, %v2786_v21  ;;  %v2977_v5 = vmul.f32 %v6599_v26, %v2493_v32  ;;  %v2787_v32 = vld [vmem:[#allocation6 + $0x371] sm:$0xff]  ;;  %v1906_v21 = vld [vmem:[#allocation6 + $0x319] sm:$0x3] }
 0x210   : > { %v3024_v57 = vadd.f32 %v2976_v46, %v2878_v48  ;;  %v3028_v13 = vadd.f32 %v2980_v44, %v2882_v0  ;;  %v2981_v22 = vmul.f32 %v6599_v26, %v2932_v7  ;;  %v1808_v20 = vmul.f32 %v7313_v28, %v6519_v41  ;;  %v1910_v62 = vld [vmem:[#allocation6 + $0x339] sm:$0x3] }
 0x211   : > { %v2440_v24 = vadd.f32 %v2392_v59, %v2294_v18  ;;  %v2444_v60 = vadd.f32 %v2396_v23, %v2298_v33  ;;  %v1812_v19 = vmul.f32 %v7329_v8, %v6519_v41  ;;  %v1954_v34 = vmul.f32 %v7317_v16, %v6522_v52  ;;  %v2641_v16 = vld [vmem:[#allocation6 + $0x370] sm:$0xff]  ;;  %v2052_v7 = vld [vmem:[#allocation6 + $0x31a] sm:$0x3]  ;;  %v2199_v33 = vld [vmem:[#allocation6 + $0x338] sm:$0x3] }
 0x212   : > { %v3052_v55 = vmax.f32 %v3024_v57, %v3028_v13  ;;  %v1958_v46 = vmul.f32 %v7337_v39, %v6522_v52  ;;  %v2100_v44 = vmul.f32 %v7325_v17, %v6541_v37  ;;  %v2104_v28 = vmul.f32 %v7341_v36, %v6541_v37  ;;  %v2056_v48 = vld [vmem:[#allocation6 + $0x33a] sm:$0x3] }
 0x213   : > { %v2586_v35 = vadd.f32 %v2538_v40, %v2440_v24  ;;  %v2590_v61 = vadd.f32 %v2542_v12, %v2444_v60  ;;  %v2002_v1 = vadd.f32 %v1954_v34, %v1808_v20  ;;  %v2247_v54 = vmul.f32 %v7329_v8, %v6548_v2  ;;  %v1764_v40 = vld [vmem:[#allocation6 + $0x338] sm:$0x3]  ;;  %v2491_v34 = vld [vmem:[#allocation6 + $0x33a] sm:$0x3] }
 0x214   : > { %3077 = vst [vmem:[#allocation2 + $0x180] sm:$0xff] %v3052_v55  ;;  %v2006_v11 = vadd.f32 %v1958_v46, %v1812_v19  ;;  %v2251_v3 = vmul.f32 %v6548_v2, %v2202_v25  ;;  %v2393_v51 = vmul.f32 %v7337_v39, %v6561_v56  ;;  %v2397_v17 = vmul.f32 %v6561_v56, %v2348_v49  ;;  %v2345_v60 = vld [vmem:[#allocation6 + $0x339] sm:$0x3] }
 0x215   : > { %v2733_v10 = vadd.f32 %v2685_v43, %v2586_v35  ;;  %v2737_v15 = vadd.f32 %v2689_v31, %v2590_v61  ;;  %v2148_v38 = vadd.f32 %v2100_v44, %v2002_v1  ;;  %v2539_v6 = vmul.f32 %v7341_v36, %v6564_v45  ;;  %v2349_v19 = vld [vmem:[#allocation6 + $0x359] sm:$0x3] }
 0x216   : > { %v2152_v8 = vadd.f32 %v2104_v28, %v2006_v11  ;;  %v2543_v50 = vmul.f32 %v6564_v45, %v2494_v9  ;;  %v2686_v14 = vmul.f32 %v6581_v29, %v2202_v25  ;;  %v2690_v59 = vmul.f32 %v6581_v29, %v2641_v16  ;;  %v2495_v55 = vld [vmem:[#allocation6 + $0x35a] sm:$0x3]  ;;  %v2638_v46 = vld [vmem:[#allocation6 + $0x358] sm:$0x3] }
 0x217   : > { %v2879_v42 = vadd.f32 %v2831_v30, %v2733_v10  ;;  %v2883_v39 = vadd.f32 %v2835_v47, %v2737_v15  ;;  %v2295_v27 = vadd.f32 %v2247_v54, %v2148_v38  ;;  %v2832_v23 = vmul.f32 %v6590_v63, %v2348_v49  ;;  %v2203_v47 = vld [vmem:[#allocation6 + $0x358] sm:$0x3]  ;;  %v2930_v11 = vld [vmem:[#allocation6 + $0x35a] sm:$0x3] }
 0x218   : > { %v2299_v4 = vadd.f32 %v2251_v3, %v2152_v8  ;;  %v2836_v36 = vmul.f32 %v6590_v63, %v2787_v32  ;;  %v2978_v12 = vmul.f32 %v6599_v26, %v2494_v9  ;;  %v7448_v43 = vmul.f32 %v6599_v26, %v2933_v58  ;;  %v2642_v61 = vld [vmem:[#allocation6 + $0x378] sm:$0x3]  ;;  %v2934_v3 = vld [vmem:[#allocation6 + $0x37a] sm:$0x3] }
 0x219   : > { %v3025_v0 = vadd.f32 %v2977_v5, %v2879_v42  ;;  %v3029_v31 = vadd.f32 %v2981_v22, %v2883_v39  ;;  %v2441_v30 = vadd.f32 %v2393_v51, %v2295_v27  ;;  %v1809_v18 = vmul.f32 %v6519_v41, %v1760_v53  ;;  %v2788_v1 = vld [vmem:[#allocation6 + $0x379] sm:$0x3]  ;;  %v3135_v32 = vld [vmem:[#allocation2 + $0x11] ss:$2 sm:$0x1f] }
 0x21a   : > { %v2445_v57 = vadd.f32 %v2397_v17, %v2299_v4  ;;  %v1813_v13 = vmul.f32 %v6519_v41, %v1764_v40  ;;  %v1955_v20 = vmul.f32 %v6522_v52, %v1906_v21  ;;  %v1959_v24 = vmul.f32 %v6522_v52, %v1910_v62  ;;  %v2784_v52 = vld [vmem:[#allocation6 + $0x359] sm:$0x3]  ;;  %v3087_v40 = vld [vmem:[#allocation2 + $0x30] ss:$2 sm:$0x1f] }
 0x21b   : > { %v3053_v25 = vmax.f32 %v3025_v0, %v3029_v31  ;;  %v2587_v49 = vadd.f32 %v2539_v6, %v2441_v30  ;;  %v2101_v5 = vmul.f32 %v6541_v37, %v2052_v7  ;;  %v2105_v22 = vmul.f32 %v6541_v37, %v2056_v48  ;;  %v3081_v51 = vld [vmem:[#allocation2] ss:$2 sm:$0xff]  ;;  %v3083_v6 = vld [vmem:[#allocation2 + $0x10] ss:$2 sm:$0x1f] }
 0x21c   : > { %v2591_v44 = vadd.f32 %v2543_v50, %v2445_v57  ;;  %v2003_v28 = vadd.f32 %v1955_v20, %v1809_v18  ;;  %v2007_v41 = vadd.f32 %v1959_v24, %v1813_v13  ;;  %v2248_v35 = vmul.f32 %v6548_v2, %v2199_v33  ;;  %v3137_v53 = vld [vmem:[#allocation2 + $0x21] ss:$2 sm:$0xff]  ;;  %v3139_v21 = vld [vmem:[#allocation2 + $0x31] ss:$2 sm:$0x1f] }
 0x21d   : > { %3078 = vst [vmem:[#allocation2 + $0x188] sm:$0xff] %v3053_v25  ;;  %v2734_v54 = vadd.f32 %v2686_v14, %v2587_v49  ;;  %v2252_v9 = vmul.f32 %v6548_v2, %v2203_v47  ;;  %v2394_v16 = vmul.f32 %v6561_v56, %v2345_v60  ;;  %v2398_v37 = vmul.f32 %v6561_v56, %v2349_v19  ;;  %v3133_v14 = vld [vmem:[#allocation2 + $0x1] ss:$2 sm:$0xff]  ;;  %v3085_v56 = vld [vmem:[#allocation2 + $0x20] ss:$2 sm:$0xff] }
 0x21e   : > { %v2738_v17 = vadd.f32 %v2690_v59, %v2591_v44  ;;  %v2149_v10 = vadd.f32 %v2101_v5, %v2003_v28  ;;  %v2153_v15 = vadd.f32 %v2105_v22, %v2007_v41  ;;  %v2540_v38 = vmul.f32 %v6564_v45, %v2491_v34  ;;  %v3141_v31 = vld [vmem:[#allocation2 + $0x41] ss:$2 sm:$0xff]  ;;  %v3091_v30 = vld [vmem:[#allocation2 + $0x50] ss:$2 sm:$0x1f] }
 0x21f   : > { %v2880_v58 = vadd.f32 %v2832_v23, %v2734_v54  ;;  %v2544_v8 = vmul.f32 %v6564_v45, %v2495_v55  ;;  %v2687_v2 = vmul.f32 %v6581_v29, %v2638_v46  ;;  %v2691_v50 = vmul.f32 %v6581_v29, %v2642_v61  ;;  %v3089_v29 = vld [vmem:[#allocation2 + $0x40] ss:$2 sm:$0xff]  ;;  %v3143_v47 = vld [vmem:[#allocation2 + $0x51] ss:$2 sm:$0x1f] }
 0x220   : > { %v2884_v42 = vadd.f32 %v2836_v36, %v2738_v17  ;;  %v2296_v39 = vadd.f32 %v2248_v35, %v2149_v10  ;;  %v2300_v59 = vadd.f32 %v2252_v9, %v2153_v15  ;;  %v2833_v27 = vmul.f32 %v6590_v63, %v2784_v52  ;;  %v3093_v57 = vld [vmem:[#allocation2 + $0x60] ss:$2 sm:$0xff]  ;;  %v3145_v13 = vld [vmem:[#allocation2 + $0x61] ss:$2 sm:$0xff] }
 0x221   : > { %v3026_v62 = vadd.f32 %v2978_v12, %v2880_v58  ;;  %v2837_v23 = vmul.f32 %v6590_v63, %v2788_v1  ;;  %v7470_v45 = vmul.f32 %v6599_v26, %v2930_v11  ;;  %v7473_v4 = vmul.f32 %v6599_v26, %v2934_v3  ;;  %v3095_v19 = vld [vmem:[#allocation2 + $0x70] ss:$2 sm:$0x1f]  ;;  %v3097_v34 = vld [vmem:[#allocation2 + $0x80] ss:$2 sm:$0xff] }
 0x222   : > { %v3030_v36 = vadd.f32 %v7448_v43, %v2884_v42  ;;  %v2442_v7 = vadd.f32 %v2394_v16, %v2296_v39  ;;  %v2446_v48 = vadd.f32 %v2398_v37, %v2300_v59  ;;  %v3184_v0 = vmax.f32 %v3081_v51, %v3133_v14  ;;  %v3147_v43 = vld [vmem:[#allocation2 + $0x71] ss:$2 sm:$0x1f]  ;;  %v3149_v55 = vld [vmem:[#allocation2 + $0x81] ss:$2 sm:$0xff] }
 0x223   : > { %v7478_v18 = vstv %s7457_s5  ;;  %v3185_v12 = vmax.f32 %v3083_v6, %v3135_v32  ;;  %v3186_v33 = vmax.f32 %v3085_v56, %v3137_v53  ;;  %v3187_v63 = vmax.f32 %v3087_v40, %v3139_v21  ;;  %v3099_v46 = vld [vmem:[#allocation2 + $0x90] ss:$2 sm:$0x1f]  ;;  %v3151_v61 = vld [vmem:[#allocation2 + $0x91] ss:$2 sm:$0x1f] }
 0x224   : > { %v3054_v20 = vmax.f32 %v3026_v62, %v3030_v36  ;;  %v2588_v26 = vadd.f32 %v2540_v38, %v2442_v7  ;;  %v2592_v24 = vadd.f32 %v2544_v8, %v2446_v48  ;;  %v3212_v60 = vadd.f32 %v7478_v18, %v3184_v0  ;;  %v3101_v52 = vld [vmem:[#allocation2 + $0xa0] ss:$2 sm:$0xff]  ;;  %v3103_v37 = vld [vmem:[#allocation2 + $0xb0] ss:$2 sm:$0x1f] }
 0x225   : > { %v3213_v25 = vadd.f32 %v7478_v18, %v3185_v12  ;;  %v3214_v49 = vadd.f32 %v7478_v18, %v3186_v33  ;;  %v3215_v5 = vadd.f32 %v7478_v18, %v3187_v63  ;;  %v3188_v22 = vmax.f32 %v3089_v29, %v3141_v31  ;;  %v3155_v11 = vld [vmem:[#allocation2 + $0xb1] ss:$2 sm:$0x1f]  ;;  %v3153_v15 = vld [vmem:[#allocation2 + $0xa1] ss:$2 sm:$0xff] }
 0x226   : > { %3079 = vst [vmem:[#allocation2 + $0x190] sm:$0xff] %v3054_v20  ;;  %v2735_v44 = vadd.f32 %v2687_v2, %v2588_v26  ;;  %v2739_v28 = vadd.f32 %v2691_v50, %v2592_v24  ;;  %v3238_v41 = vmax.f32 %v3212_v60, 0.0  ;;  %v3189_v35 = vmax.f32 %v3091_v30, %v3143_v47  ;;  %v3105_v38 = vld [vmem:[#allocation2 + $0xc0] ss:$2 sm:$0xff]  ;;  %v3157_v6 = vld [vmem:[#allocation2 + $0xc1] ss:$2 sm:$0xff] }
 0x227   : > { %v3239_v1 = vmax.f32 %v3213_v25, 0.0  ;;  %v3240_v54 = vmax.f32 %v3214_v49, 0.0  ;;  %v3241_v9 = vmax.f32 %v3215_v5, 0.0  ;;  %v3216_v16 = vadd.f32 %v7478_v18, %v3188_v22  ;;  %v3107_v50 = vld [vmem:[#allocation2 + $0xd0] ss:$2 sm:$0x1f] }
 0x228   : > { %v2881_v3 = vadd.f32 %v2833_v27, %v2735_v44  ;;  %v2885_v51 = vadd.f32 %v2837_v23, %v2739_v28  ;;  %3266 = vst [vmem:[%s7487_s29] sm:$0xff] %v3238_v41  ;;  %v3217_v17 = vadd.f32 %v7478_v18, %v3189_v35  ;;  %v3190_v10 = vmax.f32 %v3093_v57, %v3145_v13  ;;  %v3159_v14 = vld [vmem:[#allocation2 + $0xd1] ss:$2 sm:$0x1f]  ;;  %v3109_v56 = vld [vmem:[#allocation2 + $0xe0] ss:$2 sm:$0xff] }
 0x229   : > { %3267 = vst [vmem:[%s7487_s29 + $0x8] sm:$0x1f] %v3239_v1  ;;  %3268 = vst [vmem:[%s7487_s29 + $0x10] sm:$0xff] %v3240_v54  ;;  %v3242_v32 = vmax.f32 %v3216_v16, 0.0  ;;  %v3191_v58 = vmax.f32 %v3095_v19, %v3147_v43  ;;  %v3192_v8 = vmax.f32 %v3097_v34, %v3149_v55  ;;  %v3193_v2 = vmax.f32 %v3099_v46, %v3151_v61  ;;  %v3161_v53 = vld [vmem:[#allocation2 + $0xe1] ss:$2 sm:$0xff] }
 0x22a   : > { %3269 = vst [vmem:[%s7487_s29 + $0x18] sm:$0x1f] %v3241_v9  ;;  %v3027_v42 = vadd.f32 %v7470_v45, %v2881_v3  ;;  %v3031_v39 = vadd.f32 %v7473_v4, %v2885_v51  ;;  %v3243_v59 = vmax.f32 %v3217_v17, 0.0  ;;  %v3218_v27 = vadd.f32 %v7478_v18, %v3190_v10  ;;  %v3111_v40 = vld [vmem:[#allocation2 + $0xf0] ss:$2 sm:$0x1f] }
 0x22b   : > { %v3163_v21 = vld [vmem:[#allocation2 + $0xf1] ss:$2 sm:$0x1f]  ;;  %v3113_v62 = vld [vmem:[#allocation2 + $0x100] ss:$2 sm:$0xff]  ;;  %3270 = vst [vmem:[%s7487_s29 + $0x20] sm:$0xff] %v3242_v32  ;;  %v3219_v29 = vadd.f32 %v7478_v18, %v3191_v58  ;;  %v3220_v36 = vadd.f32 %v7478_v18, %v3192_v8  ;;  %v3221_v7 = vadd.f32 %v7478_v18, %v3193_v2  ;;  %v3194_v48 = vmax.f32 %v3101_v52, %v3153_v15 }
 0x22c   : > { %v3165_v23 = vld [vmem:[#allocation2 + $0x101] ss:$2 sm:$0xff]  ;;  %v3115_v45 = vld [vmem:[#allocation2 + $0x110] ss:$2 sm:$0x1f]  ;;  %v3055_v31 = vmax.f32 %v3027_v42, %v3031_v39  ;;  %v3244_v4 = vmax.f32 %v3218_v27, 0.0  ;;  %v3195_v30 = vmax.f32 %v3103_v37, %v3155_v11  ;;  %v3196_v12 = vmax.f32 %v3105_v38, %v3157_v6 }
 0x22d   : > { %v3167_v0 = vld [vmem:[#allocation2 + $0x111] ss:$2 sm:$0x1f]  ;;  %3271 = vst [vmem:[%s7487_s29 + $0x28] sm:$0x1f] %v3243_v59  ;;  %v3245_v47 = vmax.f32 %v3219_v29, 0.0  ;;  %v3222_v20 = vadd.f32 %v7478_v18, %v3194_v48  ;;  %v3197_v19 = vmax.f32 %v3107_v50, %v3159_v14  ;;  %v3198_v43 = vmax.f32 %v3109_v56, %v3161_v53 }
 0x22e   : > { %v3117_v33 = vld [vmem:[#allocation2 + $0x120] ss:$2 sm:$0xff]  ;;  %v3169_v63 = vld [vmem:[#allocation2 + $0x121] ss:$2 sm:$0xff]  ;;  %v3246_v57 = vmax.f32 %v3220_v36, 0.0  ;;  %v3247_v13 = vmax.f32 %v3221_v7, 0.0  ;;  %v3223_v24 = vadd.f32 %v7478_v18, %v3195_v30  ;;  %v3224_v60 = vadd.f32 %v7478_v18, %v3196_v12 }
 0x22f   : > { %v3119_v26 = vld [vmem:[#allocation2 + $0x130] ss:$2 sm:$0x1f]  ;;  %3080 = vst [vmem:[#allocation2 + $0x198] sm:$0x3] %v3055_v31  ;;  %3272 = vst [vmem:[%s7487_s29 + $0x30] sm:$0xff] %v3244_v4  ;;  %v3199_v5 = vmax.f32 %v3111_v40, %v3163_v21  ;;  %v3200_v22 = vmax.f32 %v3113_v62, %v3165_v23  ;;  %v3201_v55 = vmax.f32 %v3115_v45, %v3167_v0 }
 0x230   : > { %v3171_v34 = vld [vmem:[#allocation2 + $0x131] ss:$2 sm:$0x1f]  ;;  %v3121_v25 = vld [vmem:[#allocation2 + $0x140] ss:$2 sm:$0xff]  ;;  %3274 = vst [vmem:[%s7487_s29 + $0x40] sm:$0xff] %v3246_v57  ;;  %v3225_v61 = vadd.f32 %v7478_v18, %v3197_v19  ;;  %v3226_v52 = vadd.f32 %v7478_v18, %v3198_v43  ;;  %v3202_v11 = vmax.f32 %v3117_v33, %v3169_v63 }
 0x231   : > { %3273 = vst [vmem:[%s7487_s29 + $0x38] sm:$0x1f] %v3245_v47  ;;  %3275 = vst [vmem:[%s7487_s29 + $0x48] sm:$0x1f] %v3247_v13  ;;  %v3248_v49 = vmax.f32 %v3222_v20, 0.0  ;;  %v3249_v41 = vmax.f32 %v3223_v24, 0.0  ;;  %v3227_v9 = vadd.f32 %v7478_v18, %v3199_v5  ;;  %v3228_v16 = vadd.f32 %v7478_v18, %v3200_v22 }
 0x232   : > { %v3173_v46 = vld [vmem:[#allocation2 + $0x141] ss:$2 sm:$0xff]  ;;  %v3123_v44 = vld [vmem:[#allocation2 + $0x150] ss:$2 sm:$0x1f]  ;;  %v3250_v35 = vmax.f32 %v3224_v60, 0.0  ;;  %v3229_v37 = vadd.f32 %v7478_v18, %v3201_v55  ;;  %v3203_v15 = vmax.f32 %v3119_v26, %v3171_v34  ;;  %v3230_v50 = vadd.f32 %v7478_v18, %v3202_v11 }
 0x233   : > { %v3175_v28 = vld [vmem:[#allocation2 + $0x151] ss:$2 sm:$0x1f]  ;;  %v3125_v1 = vld [vmem:[#allocation2 + $0x160] ss:$2 sm:$0xff]  ;;  %3276 = vst [vmem:[%s7487_s29 + $0x50] sm:$0xff] %v3248_v49  ;;  %v3204_v38 = vmax.f32 %v3121_v25, %v3173_v46 }
 0x234   : > { %v3177_v54 = vld [vmem:[#allocation2 + $0x161] ss:$2 sm:$0xff]  ;;  %v3127_v3 = vld [vmem:[#allocation2 + $0x170] ss:$2 sm:$0x1f]  ;;  %3278 = vst [vmem:[%s7487_s29 + $0x60] sm:$0xff] %v3250_v35  ;;  %v3231_v14 = vadd.f32 %v7478_v18, %v3203_v15  ;;  %v3205_v53 = vmax.f32 %v3123_v44, %v3175_v28 }
 0x235   : > { %v3179_v51 = vld [vmem:[#allocation2 + $0x171] ss:$2 sm:$0x1f]  ;;  %3277 = vst [vmem:[%s7487_s29 + $0x58] sm:$0x1f] %v3249_v41  ;;  %v3251_v17 = vmax.f32 %v3225_v61, 0.0  ;;  %v3232_v56 = vadd.f32 %v7478_v18, %v3204_v38  ;;  %v3206_v42 = vmax.f32 %v3125_v1, %v3177_v54 }
 0x236   : > { %v3252_v10 = vmax.f32 %v3226_v52, 0.0  ;;  %v3129_v6 = vld [vmem:[#allocation2 + $0x180] ss:$2 sm:$0xff]  ;;  %v3181_v32 = vld [vmem:[#allocation2 + $0x181] ss:$2 sm:$0xff]  ;;  %v3253_v58 = vmax.f32 %v3227_v9, 0.0  ;;  %v3207_v59 = vmax.f32 %v3127_v3, %v3179_v51  ;;  %v3233_v23 = vadd.f32 %v7478_v18, %v3205_v53 }
 0x237   : > { %v3254_v8 = vmax.f32 %v3228_v16, 0.0  ;;  %v3255_v2 = vmax.f32 %v3229_v37, 0.0  ;;  %3279 = vst [vmem:[%s7487_s29 + $0x68] sm:$0x1f] %v3251_v17  ;;  %v3256_v39 = vmax.f32 %v3230_v50, 0.0  ;;  %v3208_v27 = vmax.f32 %v3129_v6, %v3181_v32 }
 0x238   : > { %3280 = vst [vmem:[%s7487_s29 + $0x70] sm:$0xff] %v3252_v10  ;;  %3281 = vst [vmem:[%s7487_s29 + $0x78] sm:$0x1f] %v3253_v58  ;;  %v3131_v40 = vld [vmem:[#allocation2 + $0x190] ss:$2 sm:$0x1f]  ;;  %v3234_v29 = vadd.f32 %v7478_v18, %v3206_v42  ;;  %v3235_v7 = vadd.f32 %v7478_v18, %v3207_v59 }
 0x239   : > { %3282 = vst [vmem:[%s7487_s29 + $0x80] sm:$0xff] %v3254_v8  ;;  %3283 = vst [vmem:[%s7487_s29 + $0x88] sm:$0x1f] %v3255_v2  ;;  %v3257_v21 = vmax.f32 %v3231_v14, 0.0  ;;  %v3258_v62 = vmax.f32 %v3232_v56, 0.0  ;;  %v3236_v48 = vadd.f32 %v7478_v18, %v3208_v27  ;;  %v3259_v0 = vmax.f32 %v3233_v23, 0.0 }
 0x23a   : > { %v3183_v36 = vld [vmem:[#allocation2 + $0x191] ss:$2 sm:$0x1f]  ;;  %3284 = vst [vmem:[%s7487_s29 + $0x90] sm:$0xff] %v3256_v39  ;;  %v3260_v31 = vmax.f32 %v3234_v29, 0.0  ;;  %v3261_v4 = vmax.f32 %v3235_v7, 0.0 }
 0x23b   : > { %v3209_v45 = vmax.f32 %v3131_v40, %v3183_v36  ;;  %3285 = vst [vmem:[%s7487_s29 + $0x98] sm:$0x1f] %v3257_v21  ;;  %3286 = vst [vmem:[%s7487_s29 + $0xa0] sm:$0xff] %v3258_v62  ;;  %v3262_v30 = vmax.f32 %v3236_v48, 0.0 }
 0x23c   : > { %3287 = vst [vmem:[%s7487_s29 + $0xa8] sm:$0x1f] %v3259_v0  ;;  %3288 = vst [vmem:[%s7487_s29 + $0xb0] sm:$0xff] %v3260_v31 }
 0x23d   : > { %v3237_v12 = vadd.f32 %v7478_v18, %v3209_v45  ;;  %3289 = vst [vmem:[%s7487_s29 + $0xb8] sm:$0x1f] %v3261_v4  ;;  %3290 = vst [vmem:[%s7487_s29 + $0xc0] sm:$0xff] %v3262_v30  ;;  %116 = sbr.rel (!%p114_p2) target bundleno = 81 (0x51), region = 184 }
 0x23f   : > { %v3263_v33 = vmax.f32 %v3237_v12, 0.0 }
 0x241   : > { %3291 = vst [vmem:[%s7487_s29 + $0xc8] sm:$0x1f] %v3263_v33 }
 0x242 LB: > { %v7546_v18 = vmov 0.0   ;;  %v7548_v63 = vmov 0.0   ;;  %v7550_v47 = vmov 0.0   ;;  %v7552_v57 = vmov 0.0   ;;  %s7586_s23 = smov 0   ;;  %s5144_s30 = sphi %s7541_s30, %s3297_s30  }
 0x243   : > { %v7554_v13 = vmov 0.0   ;;  %v7556_v20 = vmov 0.0   ;;  %v7558_v26 = vmov 0.0   ;;  %v7560_v24 = vmov 0.0  }
 0x244   : > { %8313 = vst [vmem:[#allocation28_spill] sm:$0xff] %v7556_v20  ;;  %v7562_v60 = vmov 0.0   ;;  %v7564_v19 = vmov 0.0   ;;  %v7566_v43 = vmov 0.0   ;;  %v7568_v34 = vmov 0.0  }
 0x245   : > { %8314 = vst [vmem:[#allocation29_spill] sm:$0xff] %v7564_v19  ;;  %v7570_v25 = vmov 0.0   ;;  %v7572_v49 = vmov 0.0   ;;  %v7574_v5 = vmov 0.0   ;;  %v7576_v22 = vmov 0.0  }
 0x246   : > { %8315 = vst [vmem:[#allocation30_spill] sm:$0xff] %v7572_v49  ;;  %8316 = vst [vmem:[#allocation31_spill] sm:$0xff] %v7574_v5  ;;  %v7578_v55 = vmov 0.0   ;;  %v7580_v46 = vmov 0.0   ;;  %v7582_v44 = vmov 0.0   ;;  %v7584_v28 = vmov 0.0  }
 0x247   : > { %8317 = vst [vmem:[#allocation32_spill] sm:$0xff] %v7582_v44 }
 0x248 LB: >> { %s3326_s11 = smul.u32 90, %s5144_s30  ;;  %s5228_s23 = sphi %s7586_s23, %s3303_s23   ;;  %v5224_v28 = vphi %v7584_v28, %v8409_v28   ;;  %v5216_v46 = vphi %v7580_v46, %v8407_v46   ;;  %v5212_v55 = vphi %v7578_v55, %v8406_v55   ;;  %v5208_v22 = vphi %v7576_v22, %v8405_v22   ;;  %v5196_v25 = vphi %v7570_v25, %v8402_v25   ;;  %v5192_v34 = vphi %v7568_v34, %v8401_v34   ;;  %v5188_v43 = vphi %v7566_v43, %v8400_v43   ;;  %v5180_v60 = vphi %v7562_v60, %v8398_v60   ;;  %v5176_v24 = vphi %v7560_v24, %v8397_v24   ;;  %v5172_v26 = vphi %v7558_v26, %v8396_v26   ;;  %v5164_v13 = vphi %v7554_v13, %v8394_v13   ;;  %v5160_v57 = vphi %v7552_v57, %v8393_v57   ;;  %v5156_v47 = vphi %v7550_v47, %v8392_v47   ;;  %v5152_v63 = vphi %v7548_v63, %v8391_v63   ;;  %v5148_v18 = vphi %v7546_v18, %v8390_v18  }
 0x249   : >> { %s3327_s0 = smul.u32 9, %s5228_s23 }
 0x24a   : >> { %s3330_s1 = smul.u32 208, %s5228_s23  ;;  %s3303_s23 = sadd.s32 1, %s5228_s23  }
 0x24b   : >> { %v8323_v20 = vld [vmem:[#allocation28_spill] sm:$0xff]  ;;  %s7642_s3 = sadd.s32 %s3327_s0, %s3326_s11  ;;  %p8155_p3 = scmp.ge.s32.totalorder %s3303_s23, 10  }
 0x24c   : >> { %v8324_v19 = vld [vmem:[#allocation29_spill] sm:$0xff]  ;;  %s3329_s12 = sld [smem:[#allocation13 + %s7642_s3]]  ;;  %s7645_s13 = scalar_lea.vmem [#allocation3], %s3330_s1 }
 0x24d   : >> { %v8325_v49 = vld [vmem:[#allocation30_spill] sm:$0xff]  ;;  %v8326_v5 = vld [vmem:[#allocation31_spill] sm:$0xff]  ;;  %v3333_v35 = vld [vmem:[%s7645_s13 + $0x8] sm:$0x7]  ;;  %s3399_s14 = sadd.s32 1, %s7642_s3  ;;  %s3468_s16 = sadd.s32 2, %s7642_s3 }
 0x24e   : >> { %v8327_v44 = vld [vmem:[#allocation32_spill] sm:$0xff]  ;;  %v3332_v41 = vld [vmem:[%s7645_s13] sm:$0xff]  ;;  %v7650_v61 = vld [vmem:[%s7645_s13 + $0x10] sm:$0xff]  ;;  %s7689_s15 = sld [smem:[#allocation13 + %s3399_s14]]  ;;  %s3537_s17 = sadd.s32 3, %s7642_s3 }
 0x24f   : >> { %v3335_v52 = vld [vmem:[%s7645_s13 + $0x18] sm:$0x7]  ;;  %v7654_v1 = vld [vmem:[%s7645_s13 + $0x20] sm:$0xff]  ;;  %v3337_v54 = vld [vmem:[%s7645_s13 + $0x28] sm:$0x7]  ;;  %s3608_s18 = sadd.s32 4, %s7642_s3 }
 0x250   : >> { %v7658_v9 = vld [vmem:[%s7645_s13 + $0x30] sm:$0xff]  ;;  %v3339_v16 = vld [vmem:[%s7645_s13 + $0x38] sm:$0x7]  ;;  %v7662_v37 = vld [vmem:[%s7645_s13 + $0x40] sm:$0xff]  ;;  %s7786_s4 = sld [smem:[#allocation13 + %s3468_s16]]  ;;  %s3677_s22 = sadd.s32 5, %s7642_s3 }
 0x251   : >> { %v3341_v11 = vld [vmem:[%s7645_s13 + $0x48] sm:$0x7]  ;;  %v7666_v3 = vld [vmem:[%s7645_s13 + $0x50] sm:$0xff]  ;;  %v3343_v17 = vld [vmem:[%s7645_s13 + $0x58] sm:$0x7]  ;;  %s7797_s19 = sld [smem:[#allocation13 + %s3537_s17]] }
 0x252   : >> { %v3354_v51 = vstv %s3329_s12  ;;  %v7671_v10 = vld [vmem:[%s7645_s13 + $0x60] sm:$0xff]  ;;  %v3345_v15 = vld [vmem:[%s7645_s13 + $0x68] sm:$0x7]  ;;  %v7675_v38 = vld [vmem:[%s7645_s13 + $0x70] sm:$0xff]  ;;  %s7802_s20 = sld [smem:[#allocation13 + %s3608_s18]]  ;;  %s3746_s24 = sadd.s32 6, %s7642_s3 }
 0x253   : >> { %v3347_v6 = vld [vmem:[%s7645_s13 + $0x78] sm:$0x7]  ;;  %v7679_v32 = vld [vmem:[%s7645_s13 + $0x80] sm:$0xff]  ;;  %v3355_v58 = vmul.f32 %v3354_v51, %v3332_v41  ;;  %v3356_v8 = vmul.f32 %v3354_v51, %v3333_v35  ;;  %v3357_v2 = vmul.f32 %v3354_v51, %v7650_v61  ;;  %v3358_v50 = vmul.f32 %v3354_v51, %v3335_v52  ;;  %v3349_v14 = vld [vmem:[%s7645_s13 + $0x88] sm:$0x7]  ;;  %s3817_s25 = sadd.s32 7, %s7642_s3 }
 0x254   : >> { %v7684_v56 = vld [vmem:[%s7645_s13 + $0x90] sm:$0xff]  ;;  %v3351_v53 = vld [vmem:[%s7645_s13 + $0x98] sm:$0x7]  ;;  %v3359_v42 = vmul.f32 %v3354_v51, %v7654_v1  ;;  %v3360_v39 = vmul.f32 %v3354_v51, %v3337_v54  ;;  %v3361_v59 = vmul.f32 %v3354_v51, %v7658_v9  ;;  %v3362_v27 = vmul.f32 %v3354_v51, %v3339_v16  ;;  %v3401_v35 = vld [vmem:[%s7645_s13 + $0x1] sm:$0xff]  ;;  %s7955_s26 = sld [smem:[#allocation13 + %s3677_s22]]  ;;  %s3886_s27 = sadd.s32 8, %s7642_s3 }
 0x255   : >> { %8328 = vst [vmem:[#allocation31_spill] sm:$0xff] %v7684_v56  ;;  %v3363_v40 = vmul.f32 %v3354_v51, %v7662_v37  ;;  %v3364_v21 = vmul.f32 %v3354_v51, %v3341_v11  ;;  %v3365_v62 = vmul.f32 %v3354_v51, %v7666_v3  ;;  %v3366_v23 = vmul.f32 %v3354_v51, %v3343_v17  ;;  %v7738_v17 = vld [vmem:[%s7645_s13 + $0x31] sm:$0xff]  ;;  %s7966_s5 = sld [smem:[#allocation13 + %s3746_s24]]  ;;  %s4011_s23 = smul.u32 (%p8155_p3), 25, %s5144_s30 }
 0x256   : >> { %v3367_v29 = vmul.f32 %v3354_v51, %v7671_v10  ;;  %v3368_v36 = vmul.f32 %v3354_v51, %v3345_v15  ;;  %v3369_v7 = vmul.f32 %v3354_v51, %v7675_v38  ;;  %v3370_v48 = vmul.f32 %v3354_v51, %v3347_v6  ;;  %8331 = vst [vmem:[#allocation29_spill] sm:$0xff] %v7738_v17  ;;  %v3408_v15 = vld [vmem:[%s7645_s13 + $0x39] sm:$0x7]  ;;  %v7755_v6 = vld [vmem:[%s7645_s13 + $0x41] sm:$0xff]  ;;  %s7979_s28 = sld [smem:[#allocation13 + %s3817_s25]] }
 0x257   : >> { %v3371_v45 = vmul.f32 %v3354_v51, %v7679_v32  ;;  %v3372_v0 = vmul.f32 %v3354_v51, %v3349_v14  ;;  %v3373_v31 = vmul.f32 %v3354_v51, %v7684_v56  ;;  %v3374_v4 = vmul.f32 %v3354_v51, %v3351_v53  ;;  %v3406_v51 = vld [vmem:[%s7645_s13 + $0x29] sm:$0x7]  ;;  %8332 = vst [vmem:[#allocation28_spill] sm:$0xff] %v7755_v6  ;;  %v7782_v53 = vld [vmem:[%s7645_s13 + $0x71] sm:$0xff]  ;;  %s7987_s29 = sld [smem:[#allocation13 + %s3886_s27]]  ;;  %s4012_s1 = scalar_lea.vmem (%p8155_p3), [#allocation5], %s4011_s23 }
 0x258   : >> { %v7697_v30 = vadd.f32 %v5224_v28, %v3355_v58  ;;  %v7699_v12 = vadd.f32 %v8327_v44, %v3356_v8  ;;  %v7701_v33 = vadd.f32 %v5216_v46, %v3357_v2  ;;  %v7703_v41 = vadd.f32 %v5212_v55, %v3358_v50  ;;  %v3402_v44 = vld [vmem:[%s7645_s13 + $0x9] sm:$0x7]  ;;  %v7718_v46 = vld [vmem:[%s7645_s13 + $0x11] sm:$0xff]  ;;  %v3404_v55 = vld [vmem:[%s7645_s13 + $0x19] sm:$0x7]  ;;  %8335 = vst [vmem:[#allocation35_spill] sm:$0xff] %v7782_v53 }
 0x259   : >> { %v7706_v52 = vadd.f32 %v5208_v22, %v3359_v42  ;;  %v7708_v54 = vadd.f32 %v8326_v5, %v3360_v39  ;;  %v7711_v16 = vadd.f32 %v8325_v49, %v3361_v59  ;;  %v7714_v28 = vadd.f32 %v5196_v25, %v3362_v27  ;;  %8329 = vst [vmem:[#allocation32_spill] sm:$0xff] %v7718_v46  ;;  %v7734_v22 = vld [vmem:[%s7645_s13 + $0x21] sm:$0xff]  ;;  %v3410_v58 = vld [vmem:[%s7645_s13 + $0x49] sm:$0x7]  ;;  %v3412_v8 = vld [vmem:[%s7645_s13 + $0x59] sm:$0x7] }
 0x25a   : >> { %v7722_v11 = vadd.f32 %v5192_v34, %v3363_v40  ;;  %v7725_v5 = vadd.f32 %v5188_v43, %v3364_v21  ;;  %v7728_v49 = vadd.f32 %v8324_v19, %v3365_v62  ;;  %v7731_v25 = vadd.f32 %v5180_v60, %v3366_v23  ;;  %8330 = vst [vmem:[#allocation30_spill] sm:$0xff] %v7734_v22  ;;  %v7773_v2 = vld [vmem:[%s7645_s13 + $0x61] sm:$0xff]  ;;  %v3418_v27 = vld [vmem:[%s7645_s13 + $0x89] sm:$0x7]  ;;  %v7793_v40 = vld [vmem:[%s7645_s13 + $0x91] sm:$0xff]  ;;  %s3999_s0 = sld [smem:[#allocation14 + %s5144_s30]] (%p8155_p3) }
 0x25b   : >> { %v7742_v43 = vadd.f32 %v5176_v24, %v3367_v29  ;;  %v7745_v19 = vadd.f32 %v5172_v26, %v3368_v36  ;;  %v7748_v60 = vadd.f32 %v8323_v20, %v3369_v7  ;;  %v7751_v34 = vadd.f32 %v5164_v13, %v3370_v48  ;;  %v7769_v13 = vld [vmem:[%s7645_s13 + $0x51] sm:$0xff]  ;;  %8334 = vst [vmem:[#allocation34_spill] sm:$0xff] %v7773_v2  ;;  %v7789_v59 = vld [vmem:[%s7645_s13 + $0x81] sm:$0xff]  ;;  %v3420_v29 = vld [vmem:[%s7645_s13 + $0x99] sm:$0x7]  ;;  %s3297_s30 = sadd.s32 (%p8155_p3), 1, %s5144_s30  }
 0x25c   : >> { %v7760_v24 = vadd.f32 %v5160_v57, %v3371_v45  ;;  %v7763_v26 = vadd.f32 %v5156_v47, %v3372_v0  ;;  %v7766_v20 = vadd.f32 %v5152_v63, %v3373_v31  ;;  %8333 = vst [vmem:[#allocation33_spill] sm:$0xff] %v7769_v13  ;;  %v3423_v50 = vstv %s7689_s15  ;;  %v3414_v57 = vld [vmem:[%s7645_s13 + $0x69] sm:$0x7]  ;;  %v3416_v47 = vld [vmem:[%s7645_s13 + $0x79] sm:$0x7]  ;;  %8336 = vst [vmem:[#allocation36_spill] sm:$0xff] %v7789_v59 }
 0x25d   : >> { %v7778_v14 = vadd.f32 %v5148_v18, %v3374_v4  ;;  %v3424_v42 = vmul.f32 %v3423_v50, %v3401_v35  ;;  %v3425_v39 = vmul.f32 %v3423_v50, %v3402_v44  ;;  %v3426_v63 = vmul.f32 %v3423_v50, %v7718_v46  ;;  %8337 = vst [vmem:[#allocation37_spill] sm:$0xff] %v7793_v40  ;;  %p3294_p4 = scmp.ge.s32.totalorder (%p8155_p3), %s3297_s30, 10  }
 0x25e   : >> { %v3427_v21 = vmul.f32 %v3423_v50, %v3404_v55  ;;  %v3428_v18 = vmul.f32 %v3423_v50, %v7734_v22  ;;  %v3429_v62 = vmul.f32 %v3423_v50, %v3406_v51  ;;  %v3430_v23 = vmul.f32 %v3423_v50, %v7738_v17 }
 0x25f   : >> { %v3431_v36 = vmul.f32 %v3423_v50, %v3408_v15  ;;  %v3432_v7 = vmul.f32 %v3423_v50, %v7755_v6  ;;  %v3433_v48 = vmul.f32 %v3423_v50, %v3410_v58  ;;  %v3434_v45 = vmul.f32 %v3423_v50, %v7769_v13 }
 0x260   : >> { %v3435_v0 = vmul.f32 %v3423_v50, %v3412_v8  ;;  %v3436_v31 = vmul.f32 %v3423_v50, %v7773_v2  ;;  %v3437_v4 = vmul.f32 %v3423_v50, %v3414_v57  ;;  %v3438_v35 = vmul.f32 %v3423_v50, %v7782_v53 }
 0x261   : >> { %v3439_v44 = vmul.f32 %v3423_v50, %v3416_v47  ;;  %v3440_v55 = vmul.f32 %v3423_v50, %v7789_v59  ;;  %v3441_v51 = vmul.f32 %v3423_v50, %v3418_v27  ;;  %v3442_v15 = vmul.f32 %v3423_v50, %v7793_v40  ;;  %v7885_v40 = vld [vmem:[%s7645_s13 + $0x92] sm:$0xff] }
 0x262   : >> { %v3443_v58 = vmul.f32 %v3423_v50, %v3420_v29  ;;  %v7809_v13 = vadd.f32 %v3424_v42, %v7697_v30  ;;  %v7812_v8 = vadd.f32 %v3425_v39, %v7699_v12  ;;  %v7815_v57 = vadd.f32 %v3426_v63, %v7701_v33  ;;  %v3470_v42 = vld [vmem:[%s7645_s13 + $0x2] sm:$0xff]  ;;  %v3471_v12 = vld [vmem:[%s7645_s13 + $0xa] sm:$0x7]  ;;  %v7832_v39 = vld [vmem:[%s7645_s13 + $0x12] sm:$0xff]  ;;  %8347 = vst [vmem:[#allocation47_spill] sm:$0xff] %v7885_v40 }
 0x263   : >> { %v7818_v47 = vadd.f32 %v3427_v21, %v7703_v41  ;;  %v7821_v27 = vadd.f32 %v3428_v18, %v7706_v52  ;;  %v7824_v50 = vadd.f32 %v3429_v62, %v7708_v54  ;;  %v7827_v30 = vadd.f32 %v3430_v23, %v7711_v16  ;;  %8338 = vst [vmem:[#allocation38_spill] sm:$0xff] %v7832_v39  ;;  %v3473_v33 = vld [vmem:[%s7645_s13 + $0x1a] sm:$0x7]  ;;  %v7840_v16 = vld [vmem:[%s7645_s13 + $0x22] sm:$0xff]  ;;  %v3475_v21 = vld [vmem:[%s7645_s13 + $0x2a] sm:$0x7] }
 0x264   : >> { %v3453_v41 = vadd.f32 %v3431_v36, %v7714_v28  ;;  %v3454_v63 = vadd.f32 %v3432_v7, %v7722_v11  ;;  %v3455_v52 = vadd.f32 %v3433_v48, %v7725_v5  ;;  %v3456_v54 = vadd.f32 %v3434_v45, %v7728_v49  ;;  %8339 = vst [vmem:[#allocation39_spill] sm:$0xff] %v7840_v16  ;;  %v7844_v18 = vld [vmem:[%s7645_s13 + $0x32] sm:$0xff]  ;;  %v3477_v49 = vld [vmem:[%s7645_s13 + $0x3a] sm:$0x7]  ;;  %v7852_v23 = vld [vmem:[%s7645_s13 + $0x42] sm:$0xff] }
 0x265   : >> { %8340 = vst [vmem:[#allocation40_spill] sm:$0xff] %v7844_v18  ;;  %v3457_v62 = vadd.f32 %v3435_v0, %v7731_v25  ;;  %v3458_v28 = vadd.f32 %v3436_v31, %v7742_v43  ;;  %v3459_v11 = vadd.f32 %v3437_v4, %v7745_v19  ;;  %v3460_v5 = vadd.f32 %v3438_v35, %v7748_v60  ;;  %v3479_v29 = vld [vmem:[%s7645_s13 + $0x4a] sm:$0x7]  ;;  %v7860_v19 = vld [vmem:[%s7645_s13 + $0x52] sm:$0xff]  ;;  %v3481_v60 = vld [vmem:[%s7645_s13 + $0x5a] sm:$0x7] }
 0x266   : >> { %8341 = vst [vmem:[#allocation41_spill] sm:$0xff] %v7852_v23  ;;  %v3461_v36 = vadd.f32 %v3439_v44, %v7751_v34  ;;  %v3462_v25 = vadd.f32 %v3440_v55, %v7760_v24  ;;  %v3463_v7 = vadd.f32 %v3441_v51, %v7763_v26  ;;  %v3464_v43 = vadd.f32 %v3442_v15, %v7766_v20  ;;  %v7864_v48 = vld [vmem:[%s7645_s13 + $0x62] sm:$0xff]  ;;  %v3483_v0 = vld [vmem:[%s7645_s13 + $0x6a] sm:$0x7]  ;;  %v7876_v24 = vld [vmem:[%s7645_s13 + $0x72] sm:$0xff] }
 0x267   : >> { %8342 = vst [vmem:[#allocation42_spill] sm:$0xff] %v7860_v19  ;;  %8343 = vst [vmem:[#allocation43_spill] sm:$0xff] %v7864_v48  ;;  %v3465_v45 = vadd.f32 %v3443_v58, %v7778_v14  ;;  %v3492_v31 = vstv %s7786_s4  ;;  %v7870_v4 = vstv %s7797_s19  ;;  %v7873_v34 = vstv %s7802_s20  ;;  %v3485_v26 = vld [vmem:[%s7645_s13 + $0x7a] sm:$0x7] }
 0x268   : >> { %8344 = vst [vmem:[#allocation44_spill] sm:$0xff] %v7873_v34  ;;  %8345 = vst [vmem:[#allocation45_spill] sm:$0xff] %v7876_v24  ;;  %v7880_v20 = vld [vmem:[%s7645_s13 + $0x82] sm:$0xff]  ;;  %v3493_v35 = vmul.f32 %v3492_v31, %v3470_v42  ;;  %v3494_v44 = vmul.f32 %v3492_v31, %v3471_v12  ;;  %v3495_v55 = vmul.f32 %v3492_v31, %v7832_v39  ;;  %v3487_v15 = vld [vmem:[%s7645_s13 + $0x8a] sm:$0x7] }
 0x269   : >> { %8346 = vst [vmem:[#allocation46_spill] sm:$0xff] %v7880_v20  ;;  %v3496_v51 = vmul.f32 %v3492_v31, %v3473_v33  ;;  %v3489_v14 = vld [vmem:[%s7645_s13 + $0x9a] sm:$0x7]  ;;  %v3497_v58 = vmul.f32 %v3492_v31, %v7840_v16  ;;  %v3498_v59 = vmul.f32 %v3492_v31, %v3475_v21  ;;  %v3499_v53 = vmul.f32 %v3492_v31, %v7844_v18 }
 0x26a   : >> { %v3500_v2 = vmul.f32 %v3492_v31, %v3477_v49  ;;  %v3501_v6 = vmul.f32 %v3492_v31, %v7852_v23  ;;  %v3502_v17 = vmul.f32 %v3492_v31, %v3479_v29  ;;  %v3503_v22 = vmul.f32 %v3492_v31, %v7860_v19 }
 0x26b   : >> { %v3504_v42 = vmul.f32 %v3492_v31, %v3481_v60  ;;  %v3505_v12 = vmul.f32 %v3492_v31, %v7864_v48  ;;  %v3506_v39 = vmul.f32 %v3492_v31, %v3483_v0  ;;  %v3507_v33 = vmul.f32 %v3492_v31, %v7876_v24 }
 0x26c   : >> { %v3508_v34 = vmul.f32 %v3492_v31, %v3485_v26  ;;  %v3509_v46 = vmul.f32 %v3492_v31, %v7880_v20  ;;  %v3510_v16 = vmul.f32 %v3492_v31, %v3487_v15  ;;  %v3511_v21 = vmul.f32 %v3492_v31, %v7885_v40 }
 0x26d   : >> { %v3512_v49 = vmul.f32 %v3492_v31, %v3489_v14  ;;  %v3515_v23 = vadd.f32 %v3493_v35, %v7809_v13  ;;  %v3516_v29 = vadd.f32 %v3494_v44, %v7812_v8  ;;  %v3517_v60 = vadd.f32 %v3495_v55, %v7815_v57  ;;  %v4492_v57 = vld [vmem:[%s7645_s13 + $0x18] sm:$0x7]  ;;  %v4494_v35 = vld [vmem:[%s7645_s13 + $0x28] sm:$0x7] }
 0x26e   : >> { %v3518_v0 = vadd.f32 %v3496_v51, %v7818_v47  ;;  %v3519_v26 = vadd.f32 %v3497_v58, %v7821_v27  ;;  %v3520_v20 = vadd.f32 %v3498_v59, %v7824_v50  ;;  %v3521_v15 = vadd.f32 %v3499_v53, %v7827_v30  ;;  %v4496_v59 = vld [vmem:[%s7645_s13 + $0x38] sm:$0x7]  ;;  %v4498_v53 = vld [vmem:[%s7645_s13 + $0x48] sm:$0x7] }
 0x26f   : >> { %v3522_v24 = vadd.f32 %v3500_v2, %v3453_v41  ;;  %v3523_v48 = vadd.f32 %v3501_v6, %v3454_v63  ;;  %v3524_v31 = vadd.f32 %v3502_v17, %v3455_v52  ;;  %v3525_v13 = vadd.f32 %v3503_v22, %v3456_v54  ;;  %v4500_v30 = vld [vmem:[%s7645_s13 + $0x58] sm:$0x7]  ;;  %v4502_v22 = vld [vmem:[%s7645_s13 + $0x68] sm:$0x7] }
 0x270   : >> { %v3526_v8 = vadd.f32 %v3504_v42, %v3457_v62  ;;  %v3527_v44 = vadd.f32 %v3505_v12, %v3458_v28  ;;  %v3528_v47 = vadd.f32 %v3506_v39, %v3459_v11  ;;  %v3529_v55 = vadd.f32 %v3507_v33, %v3460_v5  ;;  %v4504_v41 = vld [vmem:[%s7645_s13 + $0x78] sm:$0x7]  ;;  %v4506_v63 = vld [vmem:[%s7645_s13 + $0x88] sm:$0x7]  ;;  %v7919_v11 = vld [vmem:[%s7645_s13 + $0xa0] sm:$0xff] }
 0x271   : >> { %v3530_v27 = vadd.f32 %v3508_v34, %v3461_v36  ;;  %v3531_v2 = vadd.f32 %v3509_v46, %v3462_v25  ;;  %v3532_v6 = vadd.f32 %v3510_v16, %v3463_v7  ;;  %v3533_v50 = vadd.f32 %v3511_v21, %v3464_v43  ;;  %v4508_v28 = vld [vmem:[%s7645_s13 + $0x98] sm:$0x7]  ;;  %8348 = vst [vmem:[#allocation48_spill] sm:$0xff] %v7919_v11  ;;  %v4510_v46 = vld [vmem:[%s7645_s13 + $0xa8] sm:$0x7] }
 0x272   : >> { %v3534_v17 = vadd.f32 %v3512_v49, %v3465_v45  ;;  %v3564_v52 = vmul.f32 %v7870_v4, %v7650_v61  ;;  %v3565_v39 = vmul.f32 %v4492_v57, %v7870_v4  ;;  %v3566_v54 = vmul.f32 %v7870_v4, %v7654_v1 }
 0x273   : >> { %v3567_v62 = vmul.f32 %v4494_v35, %v7870_v4  ;;  %v3568_v16 = vmul.f32 %v7870_v4, %v7658_v9  ;;  %v3569_v5 = vmul.f32 %v4496_v59, %v7870_v4  ;;  %v3570_v36 = vmul.f32 %v7870_v4, %v7662_v37 }
 0x274   : >> { %v3571_v61 = vmul.f32 %v4498_v53, %v7870_v4  ;;  %v3572_v25 = vmul.f32 %v7870_v4, %v7666_v3  ;;  %v3573_v7 = vmul.f32 %v4500_v30, %v7870_v4  ;;  %v3574_v43 = vmul.f32 %v7870_v4, %v7671_v10 }
 0x275   : >> { %v3575_v45 = vmul.f32 %v4502_v22, %v7870_v4  ;;  %v3576_v34 = vmul.f32 %v7870_v4, %v7675_v38  ;;  %v3577_v51 = vmul.f32 %v4504_v41, %v7870_v4  ;;  %v3578_v14 = vmul.f32 %v7870_v4, %v7679_v32 }
 0x276   : >> { %v3579_v58 = vmul.f32 %v4506_v63, %v7870_v4  ;;  %v3580_v42 = vmul.f32 %v7870_v4, %v7684_v56  ;;  %v3581_v12 = vmul.f32 %v4508_v28, %v7870_v4  ;;  %v3582_v33 = vmul.f32 %v7919_v11, %v7870_v4 }
 0x277   : >> { %v3583_v21 = vmul.f32 %v4510_v46, %v7870_v4  ;;  %v3586_v49 = vadd.f32 %v3564_v52, %v3515_v23  ;;  %v3587_v57 = vadd.f32 %v3565_v39, %v3516_v29  ;;  %v3588_v35 = vadd.f32 %v3566_v54, %v3517_v60  ;;  %v4512_v4 = vld [vmem:[%s7645_s13 + $0x19] sm:$0x7]  ;;  %v4514_v46 = vld [vmem:[%s7645_s13 + $0x29] sm:$0x7] }
 0x278   : >> { %v3589_v59 = vadd.f32 %v3567_v62, %v3518_v0  ;;  %v3590_v53 = vadd.f32 %v3568_v16, %v3519_v26  ;;  %v3591_v30 = vadd.f32 %v3569_v5, %v3520_v20  ;;  %v3592_v22 = vadd.f32 %v3570_v36, %v3521_v15  ;;  %v4516_v0 = vld [vmem:[%s7645_s13 + $0x39] sm:$0x7]  ;;  %v4518_v26 = vld [vmem:[%s7645_s13 + $0x49] sm:$0x7]  ;;  %v8353_v16 = vld [vmem:[#allocation29_spill] sm:$0xff] }
 0x279   : >> { %v3593_v41 = vadd.f32 %v3571_v61, %v3522_v24  ;;  %v3594_v63 = vadd.f32 %v3572_v25, %v3523_v48  ;;  %v3595_v28 = vadd.f32 %v3573_v7, %v3524_v31  ;;  %v3596_v56 = vadd.f32 %v3574_v43, %v3525_v13  ;;  %v4520_v13 = vld [vmem:[%s7645_s13 + $0x59] sm:$0x7]  ;;  %v4526_v52 = vld [vmem:[%s7645_s13 + $0x89] sm:$0x7]  ;;  %v8355_v43 = vld [vmem:[#allocation33_spill] sm:$0xff] }
 0x27a   : >> { %v3597_v11 = vadd.f32 %v3575_v45, %v3526_v8  ;;  %v3598_v23 = vadd.f32 %v3576_v34, %v3527_v44  ;;  %v3599_v29 = vadd.f32 %v3577_v51, %v3528_v47  ;;  %v3600_v20 = vadd.f32 %v3578_v14, %v3529_v55  ;;  %v4522_v8 = vld [vmem:[%s7645_s13 + $0x69] sm:$0x7]  ;;  %v4524_v44 = vld [vmem:[%s7645_s13 + $0x79] sm:$0x7] }
 0x27b   : >> { %v3601_v60 = vadd.f32 %v3579_v58, %v3530_v27  ;;  %v3602_v48 = vadd.f32 %v3580_v42, %v3531_v2  ;;  %v3603_v24 = vadd.f32 %v3581_v12, %v3532_v6  ;;  %v3604_v15 = vadd.f32 %v3582_v33, %v3533_v50  ;;  %v8349_v47 = vld [vmem:[#allocation32_spill] sm:$0xff]  ;;  %v8351_v54 = vld [vmem:[#allocation30_spill] sm:$0xff]  ;;  %v8357_v42 = vld [vmem:[#allocation35_spill] sm:$0xff] }
 0x27c   : >> { %v3605_v31 = vadd.f32 %v3583_v21, %v3534_v17  ;;  %v8350_v55 = vld [vmem:[#allocation44_spill] sm:$0xff]  ;;  %v4528_v50 = vld [vmem:[%s7645_s13 + $0x99] sm:$0x7] }
 0x27d   : >> { %v3633_v27 = vmul.f32 %v8350_v55, %v8349_v47  ;;  %v3634_v39 = vmul.f32 %v4512_v4, %v8350_v55  ;;  %v3635_v2 = vmul.f32 %v8350_v55, %v8351_v54  ;;  %v3636_v6 = vmul.f32 %v4514_v46, %v8350_v55  ;;  %v7970_v17 = vld [vmem:[%s7645_s13 + $0xa1] sm:$0xff]  ;;  %v4530_v62 = vld [vmem:[%s7645_s13 + $0xa9] sm:$0x7]  ;;  %v8356_v51 = vld [vmem:[#allocation34_spill] sm:$0xff] }
 0x27e   : >> { %8352 = vst [vmem:[#allocation32_spill] sm:$0xff] %v7970_v17  ;;  %v3637_v5 = vmul.f32 %v8350_v55, %v8353_v16  ;;  %v3638_v36 = vmul.f32 %v4516_v0, %v8350_v55  ;;  %v8354_v61 = vld [vmem:[#allocation28_spill] sm:$0xff]  ;;  %v3640_v7 = vmul.f32 %v4518_v26, %v8350_v55  ;;  %v3641_v45 = vmul.f32 %v8350_v55, %v8355_v43  ;;  %v8359_v0 = vld [vmem:[#allocation37_spill] sm:$0xff] }
 0x27f   : >> { %v3639_v25 = vmul.f32 %v8350_v55, %v8354_v61  ;;  %v3642_v34 = vmul.f32 %v4520_v13, %v8350_v55  ;;  %v3643_v14 = vmul.f32 %v8350_v55, %v8356_v51  ;;  %v3644_v58 = vmul.f32 %v4522_v8, %v8350_v55  ;;  %v8358_v21 = vld [vmem:[#allocation36_spill] sm:$0xff] }
 0x280   : >> { %v3645_v12 = vmul.f32 %v8350_v55, %v8357_v42  ;;  %v3646_v33 = vmul.f32 %v4524_v44, %v8350_v55  ;;  %v3647_v4 = vmul.f32 %v8350_v55, %v8358_v21  ;;  %v3648_v46 = vmul.f32 %v4526_v52, %v8350_v55 }
 0x281   : >> { %v3649_v26 = vmul.f32 %v8350_v55, %v8359_v0  ;;  %v3650_v13 = vmul.f32 %v4528_v50, %v8350_v55  ;;  %v3651_v8 = vmul.f32 %v7970_v17, %v8350_v55  ;;  %v3652_v47 = vmul.f32 %v4530_v62, %v8350_v55  ;;  %v4540_v55 = vld [vmem:[%s7645_s13 + $0x5a] sm:$0x7]  ;;  %v8362_v62 = vld [vmem:[#allocation39_spill] sm:$0xff] }
 0x282   : >> { %v3655_v51 = vadd.f32 %v3633_v27, %v3586_v49  ;;  %v3656_v42 = vadd.f32 %v3634_v39, %v3587_v57  ;;  %v3657_v44 = vadd.f32 %v3635_v2, %v3588_v35  ;;  %v3658_v43 = vadd.f32 %v3636_v6, %v3589_v59  ;;  %v4544_v39 = vld [vmem:[%s7645_s13 + $0x7a] sm:$0x7]  ;;  %v4546_v2 = vld [vmem:[%s7645_s13 + $0x8a] sm:$0x7] }
 0x283   : >> { %v3659_v21 = vadd.f32 %v3637_v5, %v3590_v53  ;;  %v3660_v61 = vadd.f32 %v3638_v36, %v3591_v30  ;;  %v3661_v52 = vadd.f32 %v3639_v25, %v3592_v22  ;;  %v3662_v16 = vadd.f32 %v3640_v7, %v3593_v41  ;;  %v4532_v53 = vld [vmem:[%s7645_s13 + $0x1a] sm:$0x7]  ;;  %v4534_v30 = vld [vmem:[%s7645_s13 + $0x2a] sm:$0x7]  ;;  %v8023_v36 = vld [vmem:[%s7645_s13 + $0xa2] sm:$0xff] }
 0x284   : >> { %v3663_v0 = vadd.f32 %v3641_v45, %v3594_v63  ;;  %v3664_v50 = vadd.f32 %v3642_v34, %v3595_v28  ;;  %v3665_v54 = vadd.f32 %v3643_v14, %v3596_v56  ;;  %v3666_v17 = vadd.f32 %v3644_v58, %v3597_v11  ;;  %v4536_v22 = vld [vmem:[%s7645_s13 + $0x3a] sm:$0x7]  ;;  %v4538_v11 = vld [vmem:[%s7645_s13 + $0x4a] sm:$0x7]  ;;  %v8364_v34 = vld [vmem:[#allocation41_spill] sm:$0xff] }
 0x285   : >> { %v3667_v49 = vadd.f32 %v3645_v12, %v3598_v23  ;;  %v3668_v57 = vadd.f32 %v3646_v33, %v3599_v29  ;;  %v3669_v35 = vadd.f32 %v3647_v4, %v3600_v20  ;;  %v3670_v59 = vadd.f32 %v3648_v46, %v3601_v60  ;;  %v4542_v23 = vld [vmem:[%s7645_s13 + $0x6a] sm:$0x7]  ;;  %v8361_v6 = vld [vmem:[#allocation38_spill] sm:$0xff]  ;;  %v8365_v4 = vld [vmem:[#allocation43_spill] sm:$0xff] }
 0x286   : >> { %v3671_v41 = vadd.f32 %v3649_v26, %v3602_v48  ;;  %v3672_v63 = vadd.f32 %v3650_v13, %v3603_v24  ;;  %v3673_v28 = vadd.f32 %v3651_v8, %v3604_v15  ;;  %v3674_v56 = vadd.f32 %v3652_v47, %v3605_v31  ;;  %v4548_v31 = vld [vmem:[%s7645_s13 + $0x9a] sm:$0x7]  ;;  %8363 = vst [vmem:[#allocation38_spill] sm:$0xff] %v8023_v36  ;;  %v4550_v25 = vld [vmem:[%s7645_s13 + $0xaa] sm:$0x7]  ;;  %v8366_v13 = vld [vmem:[#allocation45_spill] sm:$0xff] }
 0x287   : >> { %v3701_v27 = vstv %s7955_s26  ;;  %v8009_v29 = vstv %s7966_s5  ;;  %v8012_v20 = vstv %s7979_s28  ;;  %v8015_v60 = vstv %s7987_s29 }
 0x288   : >> { %8360 = vst [vmem:[#allocation44_spill] sm:$0xff] %v8015_v60  ;;  %v3702_v48 = vmul.f32 %v3701_v27, %v8361_v6  ;;  %v3703_v24 = vmul.f32 %v4532_v53, %v3701_v27  ;;  %v3704_v15 = vmul.f32 %v3701_v27, %v8362_v62  ;;  %v3705_v5 = vmul.f32 %v4534_v30, %v3701_v27  ;;  %v8367_v53 = vld [vmem:[#allocation46_spill] sm:$0xff] }
 0x289   : >> { %v3706_v7 = vmul.f32 %v3701_v27, %v7844_v18  ;;  %v3707_v45 = vmul.f32 %v4536_v22, %v3701_v27  ;;  %v3708_v14 = vmul.f32 %v3701_v27, %v8364_v34  ;;  %v3709_v58 = vmul.f32 %v4538_v11, %v3701_v27 }
 0x28a   : >> { %v3710_v12 = vmul.f32 %v3701_v27, %v7860_v19  ;;  %v3711_v33 = vmul.f32 %v4540_v55, %v3701_v27  ;;  %v3712_v46 = vmul.f32 %v3701_v27, %v8365_v4  ;;  %v3713_v26 = vmul.f32 %v4542_v23, %v3701_v27 }
 0x28b   : >> { %v3714_v8 = vmul.f32 %v3701_v27, %v8366_v13  ;;  %v3715_v47 = vmul.f32 %v4544_v39, %v3701_v27  ;;  %v3716_v30 = vmul.f32 %v3701_v27, %v8367_v53  ;;  %v3717_v6 = vmul.f32 %v4546_v2, %v3701_v27 }
 0x28c   : >> { %v3718_v60 = vmul.f32 %v3701_v27, %v7885_v40  ;;  %v3719_v18 = vmul.f32 %v4548_v31, %v3701_v27  ;;  %v3720_v22 = vmul.f32 %v8023_v36, %v3701_v27  ;;  %v3721_v11 = vmul.f32 %v4550_v25, %v3701_v27  ;;  %v4552_v36 = vld [vmem:[%s7645_s13 + $0x28] sm:$0x7]  ;;  %v4554_v27 = vld [vmem:[%s7645_s13 + $0x38] sm:$0x7] }
 0x28d   : >> { %v3724_v34 = vadd.f32 %v3702_v48, %v3655_v51  ;;  %v3725_v19 = vadd.f32 %v3703_v24, %v3656_v42  ;;  %v3726_v55 = vadd.f32 %v3704_v15, %v3657_v44  ;;  %v3727_v4 = vadd.f32 %v3705_v5, %v3658_v43  ;;  %v4560_v48 = vld [vmem:[%s7645_s13 + $0x68] sm:$0x7]  ;;  %v4569_v5 = vld [vmem:[%s7645_s13 + $0xb0] sm:$0xff] }
 0x28e   : >> { %v3728_v23 = vadd.f32 %v3706_v7, %v3659_v21  ;;  %v3729_v13 = vadd.f32 %v3707_v45, %v3660_v61  ;;  %v3730_v39 = vadd.f32 %v3708_v14, %v3661_v52  ;;  %v3731_v62 = vadd.f32 %v3709_v58, %v3662_v16  ;;  %v4556_v21 = vld [vmem:[%s7645_s13 + $0x48] sm:$0x7]  ;;  %v4558_v61 = vld [vmem:[%s7645_s13 + $0x58] sm:$0x7]  ;;  %v8368_v7 = vld [vmem:[#allocation31_spill] sm:$0xff] }
 0x28f   : >> { %v3732_v53 = vadd.f32 %v3710_v12, %v3663_v0  ;;  %v3733_v2 = vadd.f32 %v3711_v33, %v3664_v50  ;;  %v3734_v40 = vadd.f32 %v3712_v46, %v3665_v54  ;;  %v3735_v31 = vadd.f32 %v3713_v26, %v3666_v17  ;;  %v4562_v54 = vld [vmem:[%s7645_s13 + $0x78] sm:$0x7]  ;;  %v4564_v24 = vld [vmem:[%s7645_s13 + $0x88] sm:$0x7] }
 0x290   : >> { %v3736_v51 = vadd.f32 %v3714_v8, %v3667_v49  ;;  %v3737_v42 = vadd.f32 %v3715_v47, %v3668_v57  ;;  %v3738_v44 = vadd.f32 %v3716_v30, %v3669_v35  ;;  %v3739_v43 = vadd.f32 %v3717_v6, %v3670_v59  ;;  %v4566_v17 = vld [vmem:[%s7645_s13 + $0x98] sm:$0x7]  ;;  %v4568_v59 = vld [vmem:[%s7645_s13 + $0xa8] sm:$0x7] }
 0x291   : >> { %v3740_v16 = vadd.f32 %v3718_v60, %v3671_v41  ;;  %v3741_v0 = vadd.f32 %v3719_v18, %v3672_v63  ;;  %v3742_v52 = vadd.f32 %v3720_v22, %v3673_v28  ;;  %v3743_v50 = vadd.f32 %v3721_v11, %v3674_v56  ;;  %v4570_v41 = vld [vmem:[%s7645_s13 + $0xb8] sm:$0x7]  ;;  %v8369_v14 = vld [vmem:[#allocation48_spill] sm:$0xff] }
 0x292   : >> { %v3773_v15 = vmul.f32 %v8009_v29, %v7654_v1  ;;  %v3774_v49 = vmul.f32 %v4552_v36, %v8009_v29  ;;  %v3775_v57 = vmul.f32 %v8009_v29, %v7658_v9  ;;  %v3776_v35 = vmul.f32 %v4554_v27, %v8009_v29 }
 0x293   : >> { %v3777_v18 = vmul.f32 %v8009_v29, %v7662_v37  ;;  %v3778_v63 = vmul.f32 %v4556_v21, %v8009_v29  ;;  %v3779_v28 = vmul.f32 %v8009_v29, %v7666_v3  ;;  %v3780_v1 = vmul.f32 %v4558_v61, %v8009_v29  ;;  %v4572_v61 = vld [vmem:[%s7645_s13 + $0x29] sm:$0x7] }
 0x294   : >> { %v3781_v56 = vmul.f32 %v8009_v29, %v7671_v10  ;;  %v3782_v9 = vmul.f32 %v4560_v48, %v8009_v29  ;;  %v3783_v60 = vmul.f32 %v8009_v29, %v7675_v38  ;;  %v3784_v36 = vmul.f32 %v4562_v54, %v8009_v29  ;;  %v4580_v48 = vld [vmem:[%s7645_s13 + $0x69] sm:$0x7] }
 0x295   : >> { %v3785_v37 = vmul.f32 %v8009_v29, %v7679_v32  ;;  %v3786_v25 = vmul.f32 %v4564_v24, %v8009_v29  ;;  %v3787_v3 = vmul.f32 %v8009_v29, %v8368_v7  ;;  %v3788_v45 = vmul.f32 %v4566_v17, %v8009_v29  ;;  %v4584_v54 = vld [vmem:[%s7645_s13 + $0x89] sm:$0x7]  ;;  %v8370_v24 = vld [vmem:[#allocation30_spill] sm:$0xff] }
 0x296   : >> { %v3789_v10 = vmul.f32 %v8369_v14, %v8009_v29  ;;  %v3790_v58 = vmul.f32 %v4568_v59, %v8009_v29  ;;  %v3791_v38 = vmul.f32 %v4569_v5, %v8009_v29  ;;  %v3792_v12 = vmul.f32 %v4570_v41, %v8009_v29  ;;  %v4574_v29 = vld [vmem:[%s7645_s13 + $0x39] sm:$0x7]  ;;  %v8378_v7 = vld [vmem:[#allocation32_spill] sm:$0xff] }
 0x297   : >> { %v3795_v33 = vadd.f32 %v3773_v15, %v3724_v34  ;;  %v3796_v32 = vadd.f32 %v3774_v49, %v3725_v19  ;;  %v3797_v46 = vadd.f32 %v3775_v57, %v3726_v55  ;;  %v3798_v26 = vadd.f32 %v3776_v35, %v3727_v4  ;;  %v4588_v15 = vld [vmem:[%s7645_s13 + $0xa9] sm:$0x7]  ;;  %v4589_v49 = vld [vmem:[%s7645_s13 + $0xb1] sm:$0xff] }
 0x298   : >> { %v3799_v8 = vadd.f32 %v3777_v18, %v3728_v23  ;;  %v3800_v47 = vadd.f32 %v3778_v63, %v3729_v13  ;;  %v3801_v30 = vadd.f32 %v3779_v28, %v3730_v39  ;;  %v3802_v6 = vadd.f32 %v3780_v1, %v3731_v62  ;;  %v4576_v23 = vld [vmem:[%s7645_s13 + $0x49] sm:$0x7]  ;;  %v4578_v13 = vld [vmem:[%s7645_s13 + $0x59] sm:$0x7]  ;;  %v8373_v57 = vld [vmem:[#allocation33_spill] sm:$0xff] }
 0x299   : >> { %v3803_v22 = vadd.f32 %v3781_v56, %v3732_v53  ;;  %v3804_v11 = vadd.f32 %v3782_v9, %v3733_v2  ;;  %v3805_v27 = vadd.f32 %v3783_v60, %v3734_v40  ;;  %v3806_v21 = vadd.f32 %v3784_v36, %v3735_v31  ;;  %v4582_v40 = vld [vmem:[%s7645_s13 + $0x79] sm:$0x7]  ;;  %v8375_v63 = vld [vmem:[#allocation35_spill] sm:$0xff]  ;;  %v8376_v56 = vld [vmem:[#allocation36_spill] sm:$0xff] }
 0x29a   : >> { %v3807_v34 = vadd.f32 %v3785_v37, %v3736_v51  ;;  %v3808_v19 = vadd.f32 %v3786_v25, %v3737_v42  ;;  %v3809_v55 = vadd.f32 %v3787_v3, %v3738_v44  ;;  %v3810_v4 = vadd.f32 %v3788_v45, %v3739_v43  ;;  %v4586_v31 = vld [vmem:[%s7645_s13 + $0x99] sm:$0x7]  ;;  %v8371_v42 = vld [vmem:[#allocation29_spill] sm:$0xff] }
 0x29b   : >> { %v3811_v62 = vadd.f32 %v3789_v10, %v3740_v16  ;;  %v3812_v53 = vadd.f32 %v3790_v58, %v3741_v0  ;;  %v3813_v39 = vadd.f32 %v3791_v38, %v3742_v52  ;;  %v3814_v2 = vadd.f32 %v3792_v12, %v3743_v50  ;;  %v4590_v16 = vld [vmem:[%s7645_s13 + $0xb9] sm:$0x7]  ;;  %v8372_v0 = vld [vmem:[#allocation28_spill] sm:$0xff]  ;;  %v8377_v36 = vld [vmem:[#allocation37_spill] sm:$0xff] }
 0x29c   : >> { %v3842_v17 = vmul.f32 %v8012_v20, %v8370_v24  ;;  %v3843_v51 = vmul.f32 %v4572_v61, %v8012_v20  ;;  %v3844_v44 = vmul.f32 %v8012_v20, %v8371_v42  ;;  %v3845_v43 = vmul.f32 %v4574_v29, %v8012_v20  ;;  %v8374_v5 = vld [vmem:[#allocation34_spill] sm:$0xff]  ;;  %v4592_v42 = vld [vmem:[%s7645_s13 + $0x2a] sm:$0x7] }
 0x29d   : >> { %v3846_v52 = vmul.f32 %v8012_v20, %v8372_v0  ;;  %v3847_v50 = vmul.f32 %v4576_v23, %v8012_v20  ;;  %v3848_v35 = vmul.f32 %v8012_v20, %v8373_v57  ;;  %v3849_v59 = vmul.f32 %v4578_v13, %v8012_v20  ;;  %v8383_v0 = vld [vmem:[#allocation42_spill] sm:$0xff]  ;;  %v8384_v57 = vld [vmem:[#allocation43_spill] sm:$0xff] }
 0x29e   : >> { %v3850_v41 = vmul.f32 %v8012_v20, %v8374_v5  ;;  %v3851_v18 = vmul.f32 %v4580_v48, %v8012_v20  ;;  %v3852_v28 = vmul.f32 %v8012_v20, %v8375_v63  ;;  %v3853_v1 = vmul.f32 %v4582_v40, %v8012_v20  ;;  %v8385_v5 = vld [vmem:[#allocation45_spill] sm:$0xff]  ;;  %v8386_v63 = vld [vmem:[#allocation46_spill] sm:$0xff] }
 0x29f   : >> { %v3854_v9 = vmul.f32 %v8012_v20, %v8376_v56  ;;  %v3855_v60 = vmul.f32 %v4584_v54, %v8012_v20  ;;  %v3856_v37 = vmul.f32 %v8012_v20, %v8377_v36  ;;  %v3857_v25 = vmul.f32 %v4586_v31, %v8012_v20  ;;  %v8387_v56 = vld [vmem:[#allocation47_spill] sm:$0xff]  ;;  %v8388_v36 = vld [vmem:[#allocation38_spill] sm:$0xff] }
 0x2a0   : >> { %v3858_v3 = vmul.f32 %v8378_v7, %v8012_v20  ;;  %v3859_v45 = vmul.f32 %v4588_v15, %v8012_v20  ;;  %v3860_v14 = vmul.f32 %v4589_v49, %v8012_v20  ;;  %v3861_v10 = vmul.f32 %v4590_v16, %v8012_v20  ;;  %v4594_v20 = vld [vmem:[%s7645_s13 + $0x3a] sm:$0x7]  ;;  %v4608_v49 = vld [vmem:[%s7645_s13 + $0xaa] sm:$0x7]  ;;  %v4609_v16 = vld [vmem:[%s7645_s13 + $0xb2] sm:$0xff] }
 0x2a1   : >> { %v3864_v58 = vadd.f32 %v3842_v17, %v3795_v33  ;;  %v3865_v38 = vadd.f32 %v3843_v51, %v3796_v32  ;;  %v3866_v12 = vadd.f32 %v3844_v44, %v3797_v46  ;;  %v3867_v61 = vadd.f32 %v3845_v43, %v3798_v26  ;;  %v4600_v17 = vld [vmem:[%s7645_s13 + $0x6a] sm:$0x7]  ;;  %v8379_v44 = vld [vmem:[#allocation39_spill] sm:$0xff] }
 0x2a2   : >> { %v3868_v29 = vadd.f32 %v3846_v52, %v3799_v8  ;;  %v3869_v23 = vadd.f32 %v3847_v50, %v3800_v47  ;;  %v3870_v13 = vadd.f32 %v3848_v35, %v3801_v30  ;;  %v3871_v48 = vadd.f32 %v3849_v59, %v3802_v6  ;;  %v4596_v8 = vld [vmem:[%s7645_s13 + $0x4a] sm:$0x7]  ;;  %v4598_v47 = vld [vmem:[%s7645_s13 + $0x5a] sm:$0x7] }
 0x2a3   : >> { %v3872_v40 = vadd.f32 %v3850_v41, %v3803_v22  ;;  %v3873_v54 = vadd.f32 %v3851_v18, %v3804_v11  ;;  %v3874_v31 = vadd.f32 %v3852_v28, %v3805_v27  ;;  %v3875_v24 = vadd.f32 %v3853_v1, %v3806_v21  ;;  %v4602_v27 = vld [vmem:[%s7645_s13 + $0x7a] sm:$0x7]  ;;  %v4604_v51 = vld [vmem:[%s7645_s13 + $0x8a] sm:$0x7] }
 0x2a4   : >> { %v3876_v33 = vadd.f32 %v3854_v9, %v3807_v34  ;;  %v3877_v32 = vadd.f32 %v3855_v60, %v3808_v19  ;;  %v3878_v46 = vadd.f32 %v3856_v37, %v3809_v55  ;;  %v3879_v26 = vadd.f32 %v3857_v25, %v3810_v4  ;;  %v4606_v21 = vld [vmem:[%s7645_s13 + $0x9a] sm:$0x7]  ;;  %v8380_v43 = vld [vmem:[#allocation44_spill] sm:$0xff] }
 0x2a5   : >> { %v3880_v30 = vadd.f32 %v3858_v3, %v3811_v62  ;;  %v3881_v6 = vadd.f32 %v3859_v45, %v3812_v53  ;;  %v3882_v22 = vadd.f32 %v3860_v14, %v3813_v39  ;;  %v3883_v11 = vadd.f32 %v3861_v10, %v3814_v2  ;;  %v8381_v19 = vld [vmem:[#allocation40_spill] sm:$0xff]  ;;  %v4610_v62 = vld [vmem:[%s7645_s13 + $0xba] sm:$0x7]  ;;  %v8382_v53 = vld [vmem:[#allocation41_spill] sm:$0xff] }
 0x2a6   : >> { %v3911_v15 = vmul.f32 %v8380_v43, %v8379_v44  ;;  %v3912_v34 = vmul.f32 %v4592_v42, %v8380_v43  ;;  %v3913_v55 = vmul.f32 %v8380_v43, %v8381_v19  ;;  %v3914_v4 = vmul.f32 %v4594_v20, %v8380_v43 }
 0x2a7   : >> { %v3915_v39 = vmul.f32 %v8380_v43, %v8382_v53  ;;  %v3916_v2 = vmul.f32 %v4596_v8, %v8380_v43  ;;  %v3917_v52 = vmul.f32 %v8380_v43, %v8383_v0  ;;  %v3918_v50 = vmul.f32 %v4598_v47, %v8380_v43 }
 0x2a8   : >> { %v3919_v35 = vmul.f32 %v8380_v43, %v8384_v57  ;;  %v3920_v59 = vmul.f32 %v4600_v17, %v8380_v43  ;;  %v3921_v41 = vmul.f32 %v8380_v43, %v8385_v5  ;;  %v3922_v18 = vmul.f32 %v4602_v27, %v8380_v43 }
 0x2a9   : >> { %v3923_v28 = vmul.f32 %v8380_v43, %v8386_v63  ;;  %v3924_v1 = vmul.f32 %v4604_v51, %v8380_v43  ;;  %v3925_v9 = vmul.f32 %v8380_v43, %v8387_v56  ;;  %v3926_v60 = vmul.f32 %v4606_v21, %v8380_v43 }
 0x2aa   : >> { %v3927_v37 = vmul.f32 %v8388_v36, %v8380_v43  ;;  %v3928_v25 = vmul.f32 %v4608_v49, %v8380_v43  ;;  %v3929_v7 = vmul.f32 %v4609_v16, %v8380_v43  ;;  %v3930_v3 = vmul.f32 %v4610_v62, %v8380_v43 }
 0x2ab   : >> { %v3933_v45 = vadd.f32 %v3911_v15, %v3864_v58   ;;  %v3934_v14 = vadd.f32 %v3912_v34, %v3865_v38   ;;  %v3935_v10 = vadd.f32 %v3913_v55, %v3866_v12   ;;  %v3936_v42 = vadd.f32 %v3914_v4, %v3867_v61  }
 0x2ac   : >> { %v3937_v8 = vadd.f32 %v3915_v39, %v3868_v29   ;;  %v3938_v17 = vadd.f32 %v3916_v2, %v3869_v23   ;;  %v3939_v27 = vadd.f32 %v3917_v52, %v3870_v13   ;;  %v3940_v51 = vadd.f32 %v3918_v50, %v3871_v48  }
 0x2ad   : >> { %v3941_v53 = vadd.f32 %v3919_v35, %v3872_v40   ;;  %v3942_v0 = vadd.f32 %v3920_v59, %v3873_v54   ;;  %v3943_v21 = vadd.f32 %v3921_v41, %v3874_v31   ;;  %v3944_v56 = vadd.f32 %v3922_v18, %v3875_v24   ;;  %8408 = vst [vmem:[#allocation32_spill] sm:$0xff] %v3934_v14 }
 0x2ae   : >> { %v3945_v44 = vadd.f32 %v3923_v28, %v3876_v33   ;;  %v3946_v36 = vadd.f32 %v3924_v1, %v3877_v32   ;;  %v3947_v5 = vadd.f32 %v3925_v9, %v3878_v46   ;;  %v3948_v49 = vadd.f32 %v3926_v60, %v3879_v26   ;;  %8403 = vst [vmem:[#allocation30_spill] sm:$0xff] %v3939_v27 }
 0x2af   : >> { %v3949_v19 = vadd.f32 %v3927_v37, %v3880_v30   ;;  %v3950_v16 = vadd.f32 %v3928_v25, %v3881_v6   ;;  %v3951_v20 = vadd.f32 %v3929_v7, %v3882_v22   ;;  %v3952_v62 = vadd.f32 %v3930_v3, %v3883_v11   ;;  %8399 = vst [vmem:[#allocation29_spill] sm:$0xff] %v3943_v21 }
 0x2b0   : >> { %v8394_v13 = vmov %v3948_v49  ;;  %8395 = vst [vmem:[#allocation28_spill] sm:$0xff] %v3947_v5  ;;  %v8396_v26 = vmov %v3946_v36  ;;  %v8397_v24 = vmov %v3945_v44  ;;  %v8398_v60 = vmov %v3944_v56  ;;  %8404 = vst [vmem:[#allocation31_spill] sm:$0xff] %v3938_v17 }
 0x2b1   : >> { %v8390_v18 = vmov %v3952_v62  ;;  %v8391_v63 = vmov %v3951_v20  ;;  %v8392_v47 = vmov %v3950_v16  ;;  %v8393_v57 = vmov %v3949_v19 }
 0x2b2   : >> { %v8400_v43 = vmov %v3942_v0  ;;  %v8401_v34 = vmov %v3941_v53  ;;  %v8402_v25 = vmov %v3940_v51  ;;  %v8405_v22 = vmov %v3937_v8  ;;  %3302 = sbr.rel (!%p8155_p3) target bundleno = 584 (0x248), region = 195 }
 0x2b3   : >> { %v8406_v55 = vmov %v3936_v42  ;;  %v8407_v46 = vmov %v3935_v10  ;;  %v8409_v28 = vmov %v3933_v45  ;;  %v3955_v58 = vmax.f32 (%p8155_p3), %v3933_v45, %v3935_v10 }
 0x2b4   : > { %v3956_v38 = vmax.f32 (%p8155_p3), %v3934_v14, %v3936_v42  ;;  %v3957_v12 = vmax.f32 (%p8155_p3), %v3937_v8, %v3939_v27  ;;  %v3958_v61 = vmax.f32 (%p8155_p3), %v3938_v17, %v3940_v51  ;;  %v3959_v29 = vmax.f32 (%p8155_p3), %v3941_v53, %v3943_v21 }
 0x2b5   : > { %v3960_v23 = vmax.f32 (%p8155_p3), %v3942_v0, %v3944_v56  ;;  %v3961_v48 = vmax.f32 (%p8155_p3), %v3945_v44, %v3947_v5  ;;  %v3962_v40 = vmax.f32 (%p8155_p3), %v3946_v36, %v3948_v49  ;;  %3965 = vst [vmem:[#allocation4] sm:$0xff] (%p8155_p3), %v3955_v58  ;;  %v3963_v54 = vmax.f32 (%p8155_p3), %v3949_v19, %v3951_v20 }
 0x2b6   : > { %3966 = vst [vmem:[#allocation4 + $0x8] sm:$0x7] (%p8155_p3), %v3956_v38  ;;  %3967 = vst [vmem:[#allocation4 + $0x10] sm:$0xff] (%p8155_p3), %v3957_v12  ;;  %v3964_v31 = vmax.f32 (%p8155_p3), %v3950_v16, %v3952_v62  ;;  %v4000_v33 = vstv (%p8155_p3), %s3999_s0 }
 0x2b7   : > { %3968 = vst [vmem:[#allocation4 + $0x18] sm:$0x7] %v3958_v61  ;;  %3969 = vst [vmem:[#allocation4 + $0x20] sm:$0xff] %v3959_v29  ;;  %vm4136_vm0 = vcmask (%p3294_p4), 1041408   ;;  %v5240_v28 = vmov (%p3294_p4), 0   ;;  %vm4114_vm1 = vcmask (%p3294_p4), 998400  }
 0x2b8   : > { %3970 = vst [vmem:[#allocation4 + $0x28] sm:$0x7] %v3960_v23  ;;  %3971 = vst [vmem:[#allocation4 + $0x30] sm:$0xff] %v3961_v48  ;;  %4902 = vset.pattern.permute.xlu0 (%p3294_p4), %v5240_v28  ;;  %4903 = vset.pattern.permute.xlu1 (%p3294_p4), %v5240_v28  ;;  %v4027_v14 = vld [vmem:[#allocation16 + $0x8] sm:$0xff] (%p3294_p4)  ;;  %v4078_v51 = vld [vmem:[%s8271_s6 + $0x30] sm:$0x3] (%p3294_p4) }
 0x2b9   : > { %3972 = vst [vmem:[#allocation4 + $0x38] sm:$0x7] %v3962_v40  ;;  %3973 = vst [vmem:[#allocation4 + $0x40] sm:$0xff] %v3963_v54  ;;  %4616 = vmatprep.mubr.msk.f32.mxu0 (%p3294_p4), %vm4114_vm1, %v4027_v14  ;;  %4111 = vperm.xlu0 (%p3294_p4), %4902, %v4078_v51   ;;  %v4076_v0 = vld [vmem:[%s8271_s6 + $0x20] sm:$0xff] (%p3294_p4)  ;;  %v4077_v56 = vld [vmem:[%s8271_s6 + $0x28] sm:$0xff] (%p3294_p4)  ;;  %vm4268_vm2 = vcmask (%p3294_p4), 408576  }
 0x2ba   : > { %3974 = vst [vmem:[#allocation4 + $0x48] sm:$0x7] %v3964_v31  ;;  %4101 = vperm.xlu1 (%p3294_p4), %4903, %v4076_v0   ;;  %v4075_v16 = vld [vmem:[%s8271_s6 + $0x18] sm:$0xff] (%p3294_p4)  ;;  %v4074_v12 = vld [vmem:[%s8271_s6 + $0x10] sm:$0xff] (%p3294_p4)  ;;  %v4073_v29 = vld [vmem:[%s8271_s6 + $0x8] sm:$0xff] (%p3294_p4)  ;;  %s5241_s11 = smov (%p3294_p4), [#allocation19]  }
 0x2bb   :  { %v4072_v54 = vld [vmem:[%s8271_s6] sm:$0xff] (%p3294_p4)  ;;  %s4372_s0 = sshll.u32 (%p3294_p4), %s5241_s11, 4  ;;  %s4373_s0 = int_to_ptr.vmem [resolvable:$true] %s4372_s0 }
 0x2bc   :  { %s4992_s23 = scalar_lea.vmem (%p3294_p4), %s4373_s0, 896  ;;  %p4997_p6 = scmp.lt.s32.totalorder (%p3294_p4), %s4373_s0, %s4373_s0 }
 0x2bd   : > { %v3975_v13 = vld [vmem:[#allocation4] ss:$2 sm:$0x1f]  ;;  %v3985_v24 = vld [vmem:[#allocation4 + $0x1] ss:$2 sm:$0x1f]  ;;  %4106 = vperm.xlu0 (%p3294_p4), %4902, %v4077_v56   ;;  %p4993_p5 = scmp.ne.s32.totalorder (%p3294_p4), %s4373_s0, %s4992_s23  ;;  %p4998_p7 = scmp.lt.s32.totalorder (%p3294_p4), %s4992_s23, %s4992_s23 }
 0x2be   : > { %v3994_v32 = vmax.f32 %v3975_v13, %v3985_v24  ;;  %v3977_v46 = vld [vmem:[#allocation4 + $0x10] ss:$2 sm:$0x1f]  ;;  %v3987_v26 = vld [vmem:[#allocation4 + $0x11] ss:$2 sm:$0x1f]  ;;  %4096 = vperm.xlu1 (%p3294_p4), %4903, %v4075_v16  }
 0x2bf   : > { %v3995_v47 = vmax.f32 %v3977_v46, %v3987_v26  ;;  %v3979_v30 = vld [vmem:[#allocation4 + $0x20] ss:$2 sm:$0x1f]  ;;  %v3989_v6 = vld [vmem:[#allocation4 + $0x21] ss:$2 sm:$0x1f]  ;;  %p4999_p8 = por (%p3294_p4), %p4998_p7, %p4997_p6 }
 0x2c0   : > { %v4001_v22 = vadd.f32 %v4000_v33, %v3994_v32  ;;  %v3996_v11 = vmax.f32 %v3979_v30, %v3989_v6  ;;  %v3981_v20 = vld [vmem:[#allocation4 + $0x30] ss:$2 sm:$0x1f]  ;;  %v3991_v44 = vld [vmem:[#allocation4 + $0x31] ss:$2 sm:$0x1f] }
 0x2c1   : > { %v4002_v43 = vadd.f32 %v4000_v33, %v3995_v47  ;;  %v3997_v15 = vmax.f32 %v3981_v20, %v3991_v44  ;;  %v3983_v34 = vld [vmem:[#allocation4 + $0x40] ss:$2 sm:$0x1f]  ;;  %v3993_v19 = vld [vmem:[#allocation4 + $0x41] ss:$2 sm:$0x1f]  ;;  %4091 = vperm.xlu0 (%p3294_p4), %4902, %v4074_v12   ;;  %p5000_p9 = pnand (%p3294_p4), %p4999_p8, %p4993_p5 }
 0x2c2   : > { %v4006_v55 = vmax.f32 %v4001_v22, 0.0  ;;  %v4003_v4 = vadd.f32 %v4000_v33, %v3996_v11  ;;  %v3998_v49 = vmax.f32 %v3983_v34, %v3993_v19  ;;  %4086 = vperm.xlu1 (%p3294_p4), %4903, %v4073_v29   ;;  %v4256_v13 = vld [vmem:[%s8273_s8] sm:$0xff] (%p3294_p4)  ;;  %v4257_v46 = vld [vmem:[%s8273_s8 + $0x8] sm:$0x3] (%p3294_p4)  ;;  %v4026_v26 = vld [vmem:[#allocation16] sm:$0xff] (%p3294_p4) }
 0x2c3   : > { %v4007_v39 = vmax.f32 %v4002_v43, 0.0  ;;  %v4004_v2 = vadd.f32 %v4000_v33, %v3997_v15  ;;  %v4029_v47 = vld [vmem:[#allocation16 + $0x18] sm:$0xff] (%p3294_p4)  ;;  %v4028_v30 = vld [vmem:[#allocation16 + $0x10] sm:$0xff] (%p3294_p4)  ;;  %v4031_v6 = vld [vmem:[#allocation16 + $0x28] sm:$0xff] (%p3294_p4) }
 0x2c4   : > { %4013 = vst [vmem:[%s4012_s1] sm:$0x1f] %v4006_v55  ;;  %v4008_v52 = vmax.f32 %v4003_v4, 0.0  ;;  %v4005_v50 = vadd.f32 %v4000_v33, %v3998_v49  ;;  %3296 = sbr.rel (!%p3294_p4) target bundleno = 578 (0x242), region = 206  ;;  %v4030_v22 = vld [vmem:[#allocation16 + $0x20] sm:$0xff] (%p3294_p4)  ;;  %v4033_v11 = vld [vmem:[#allocation16 + $0x38] sm:$0xff] (%p3294_p4)  ;;  %v4032_v20 = vld [vmem:[#allocation16 + $0x30] sm:$0xff] (%p3294_p4) }
 0x2c5   : > { %4611 = vst [vmem:[%s4012_s1 + $0x5] sm:$0x1f] %v4007_v39  ;;  %v4009_v57 = vmax.f32 %v4004_v2, 0.0  ;;  %4081 = vperm.xlu0 (%p3294_p4), %4902, %v4072_v54   ;;  %v4035_v44 = vld [vmem:[#allocation16 + $0x48] sm:$0xff] (%p3294_p4)  ;;  %v4034_v43 = vld [vmem:[#allocation16 + $0x40] sm:$0xff] (%p3294_p4)  ;;  %v4037_v15 = vld [vmem:[#allocation16 + $0x58] sm:$0xff] (%p3294_p4) }
 0x2c6   : > { %4612 = vst [vmem:[%s4012_s1 + $0xa] sm:$0x1f] %v4008_v52  ;;  %v4010_v35 = vmax.f32 %v4005_v50, 0.0  ;;  %4260 = vperm.xlu1 (%p3294_p4), %4903, %v4256_v13   ;;  %v4036_v34 = vld [vmem:[#allocation16 + $0x50] sm:$0xff] (%p3294_p4)  ;;  %v4039_v19 = vld [vmem:[#allocation16 + $0x68] sm:$0x3] (%p3294_p4) }
 0x2c7   : > { %4613 = vst [vmem:[%s4012_s1 + $0xf] sm:$0x1f] %v4009_v57  ;;  %v4038_v55 = vld [vmem:[#allocation16 + $0x60] sm:$0x3] (%p3294_p4)  ;;  %v4254_v4 = vld [vmem:[%s8272_s7] sm:$0xff] (%p3294_p4) }
 0x2c8   : > { %4614 = vst [vmem:[%s4012_s1 + $0x14] sm:$0x1f] %v4010_v35  ;;  %4702 = vmatprep.mubr.msk.f32.mxu1 (%p3294_p4), %vm4268_vm2, %v4254_v4 }
 0x2c9   :  { %4265 = vperm.xlu0 %4902, %v4257_v46  }
 0x2cf   :  { %v4071_v59 = vld [vmem:[#allocation5 + $0xf8] sm:$0x3]  ;;  %v4070_v41 = vld [vmem:[#allocation5 + $0xf0] sm:$0xff]  ;;  %v4069_v63 = vld [vmem:[#allocation5 + $0xe8] sm:$0xff] }
 0x2d0   :  { %v4055_v5 = vld [vmem:[#allocation5 + $0x78] sm:$0xff]  ;;  %4626 = vmatprep.subr.msk.mxu0 %vm4136_vm0, %v4071_v59  ;;  %v4054_v18 = vld [vmem:[#allocation5 + $0x70] sm:$0xff]  ;;  %v4053_v1 = vld [vmem:[#allocation5 + $0x68] sm:$0xff] }
 0x2d1   :  { %4627 = vmatpush3.msra.mxu0 %v4055_v5  ;;  %v4068_v9 = vld [vmem:[#allocation5 + $0xe0] sm:$0xff]  ;;  %v4067_v37 = vld [vmem:[#allocation5 + $0xd8] sm:$0xff]  ;;  %v4066_v7 = vld [vmem:[#allocation5 + $0xd0] sm:$0xff] }
 0x2d2   :  { %4628 = vmatprep.subr.mxu0 %v4070_v41  ;;  %v4052_v60 = vld [vmem:[#allocation5 + $0x60] sm:$0xff]  ;;  %v4051_v25 = vld [vmem:[#allocation5 + $0x58] sm:$0xff]  ;;  %v4050_v3 = vld [vmem:[#allocation5 + $0x50] sm:$0xff] }
 0x2d3   :  { %4629 = vmatpush3.msra.mxu0 %v4054_v18  ;;  %v4065_v45 = vld [vmem:[#allocation5 + $0xc8] sm:$0xff]  ;;  %v4064_v42 = vld [vmem:[#allocation5 + $0xc0] sm:$0xff]  ;;  %v4063_v17 = vld [vmem:[#allocation5 + $0xb8] sm:$0xff] }
 0x2d4   :  { %4630 = vmatprep.subr.mxu0 %v4069_v63  ;;  %v4049_v10 = vld [vmem:[#allocation5 + $0x48] sm:$0xff]  ;;  %v4048_v8 = vld [vmem:[#allocation5 + $0x40] sm:$0xff]  ;;  %v4047_v27 = vld [vmem:[#allocation5 + $0x38] sm:$0xff] }
 0x2d5   :  { %4631 = vmatpush3.msra.mxu0 %v4053_v1  ;;  %v4062_v53 = vld [vmem:[#allocation5 + $0xb0] sm:$0xff]  ;;  %v4061_v36 = vld [vmem:[#allocation5 + $0xa8] sm:$0xff]  ;;  %v4060_v58 = vld [vmem:[#allocation5 + $0xa0] sm:$0xff] }
 0x2d6   :  { %4632 = vmatprep.subr.mxu0 %v4068_v9  ;;  %v4046_v21 = vld [vmem:[#allocation5 + $0x30] sm:$0xff]  ;;  %v4045_v62 = vld [vmem:[#allocation5 + $0x28] sm:$0xff]  ;;  %v4044_v38 = vld [vmem:[#allocation5 + $0x20] sm:$0xff] }
 0x2d7   :  { %4633 = vmatpush3.msra.mxu0 %v4052_v60  ;;  %v4059_v61 = vld [vmem:[#allocation5 + $0x98] sm:$0xff]  ;;  %v4058_v48 = vld [vmem:[#allocation5 + $0x90] sm:$0xff]  ;;  %v4057_v31 = vld [vmem:[#allocation5 + $0x88] sm:$0xff] }
 0x2d8   :  { %4634 = vmatprep.subr.mxu0 %v4067_v37  ;;  %v4043_v23 = vld [vmem:[#allocation5 + $0x18] sm:$0xff]  ;;  %v4042_v40 = vld [vmem:[#allocation5 + $0x10] sm:$0xff]  ;;  %v4041_v24 = vld [vmem:[#allocation5 + $0x8] sm:$0xff] }
 0x2d9   :  { %4635 = vmatpush3.msra.mxu0 %v4051_v25  ;;  %v4056_v33 = vld [vmem:[#allocation5 + $0x80] sm:$0xff] }
 0x2da   :  { %4636 = vmatprep.subr.mxu0 %v4066_v7  ;;  %v4040_v32 = vld [vmem:[#allocation5] sm:$0xff] }
 0x2db   :  { %4637 = vmatpush3.msra.mxu0 %v4050_v3 }
 0x2dc   :  { %4638 = vmatprep.subr.mxu0 %v4065_v45 }
 0x2dd   :  { %4639 = vmatpush3.msra.mxu0 %v4049_v10 }
 0x2de   :  { %4640 = vmatprep.subr.mxu0 %v4064_v42 }
 0x2df   :  { %4641 = vmatpush3.msra.mxu0 %v4048_v8 }
 0x2e0   :  { %4642 = vmatprep.subr.mxu0 %v4063_v17 }
 0x2e1   :  { %4643 = vmatpush3.msra.mxu0 %v4047_v27 }
 0x2e2   :  { %4644 = vmatprep.subr.mxu0 %v4062_v53 }
 0x2e3   :  { %4645 = vmatpush3.msra.mxu0 %v4046_v21 }
 0x2e4   :  { %4646 = vmatprep.subr.mxu0 %v4061_v36 }
 0x2e5   :  { %4647 = vmatpush3.msra.mxu0 %v4045_v62 }
 0x2e6   :  { %4648 = vmatprep.subr.mxu0 %v4060_v58 }
 0x2e7   :  { %4649 = vmatpush3.msra.mxu0 %v4044_v38 }
 0x2e8   :  { %4650 = vmatprep.subr.mxu0 %v4059_v61 }
 0x2e9   :  { %4651 = vmatpush3.msra.mxu0 %v4043_v23 }
 0x2ea   :  { %4652 = vmatprep.subr.mxu0 %v4058_v48 }
 0x2eb   :  { %4653 = vmatpush3.msra.mxu0 %v4042_v40  ;;  %v4255_v40 = vld [vmem:[%s8272_s7 + $0x8] sm:$0x3] }
 0x2ec   :  { %4654 = vmatprep.subr.mxu0 %v4057_v31 }
 0x2ed   :  { %4655 = vmatpush3.msra.mxu0 %v4041_v24 }
 0x2ee   :  { %4656 = vmatprep.subr.mxu0 %v4056_v33 }
 0x2ef   :  { %4657 = vmatpush3.msra.mxu0 %v4040_v32 }
 0x2f0   :  { %4205 = vmatmul.mubr.f32.vlgmr.msra.gmra.mxu0 %v4026_v26 }
 0x2f1   :  { %4617 = vmatprep.mubr.msk.f32.mxu0 %vm4114_vm1, %v4029_v47 }
 0x2f4   :  { %4210 = vmatmul.mubr.f32.gmra.mxu0 %v4028_v30 }
 0x2f5   :  { %4618 = vmatprep.mubr.msk.f32.mxu0 %vm4114_vm1, %v4031_v6 }
 0x2f8   :  { %4215 = vmatmul.mubr.f32.gmra.mxu0 %v4030_v22 }
 0x2f9   :  { %4619 = vmatprep.mubr.msk.f32.mxu0 %vm4114_vm1, %v4033_v11 }
 0x2fc   :  { %4220 = vmatmul.mubr.f32.gmra.mxu0 %v4032_v20 }
 0x2fd   :  { %4620 = vmatprep.mubr.msk.f32.mxu0 %vm4114_vm1, %v4035_v44 }
 0x300   :  { %4225 = vmatmul.mubr.f32.gmra.mxu0 %v4034_v43 }
 0x301   :  { %4621 = vmatprep.mubr.msk.f32.mxu0 %vm4114_vm1, %v4037_v15 }
 0x304   :  { %4230 = vmatmul.mubr.f32.gmra.mxu0 %v4036_v34 }
 0x305   :  { %4622 = vmatprep.mubr.msk.f32.mxu0 %vm4114_vm1, %v4039_v19 }
 0x308   :  { %4235 = vmatmul.mubr.f32.gmra.mxu0 %v4038_v55 }
 0x334   :  { %v4112_v49 = vpop.permute.xlu0 %4111 }
 0x335   :  { %v4102_v2 = vpop.permute.xlu1 %4101 }
 0x338   :  { %v4107_v39 = vpop.permute.xlu0 %4106 }
 0x339   :  { %v4097_v57 = vpop.permute.xlu1 %4096 }
 0x33c   :  { %v4092_v52 = vpop.permute.xlu0 %4091 }
 0x33d   :  { %v4087_v28 = vpop.permute.xlu1 %4086 }
 0x340   :  { %v4082_v59 = vpop.permute.xlu0 %4081 }
 0x3b0   :  { %v4658_v50 = vpop.f32.mrf.mxu0 }
 0x3b2   :  { %v4659_v35 = vpop.f32.mrf.mxu0 }
 0x3b3   :  { %v4660_v5 = vadd.f32 %v4659_v35, %v4658_v50 }
 0x3b4   :  { %v4661_v41 = vpop.f32.mrf.mxu0 }
 0x3b5   :  { %v4207_v18 = vadd.f32 %v4660_v5, %v4082_v59 }
 0x3b6   :  { %v4662_v63 = vpop.f32.mrf.mxu0 }
 0x3b7   :  { %v4240_v1 = vmax.f32 %v4207_v18, 0.0  ;;  %v4663_v9 = vadd.f32 %v4662_v63, %v4661_v41 }
 0x3b8   :  { %v4664_v60 = vpop.f32.mrf.mxu0 }
 0x3b9   :  { %4247 = vst [vmem:[#allocation19] sm:$0xff] %v4240_v1  ;;  %v4212_v37 = vadd.f32 %v4663_v9, %v4087_v28 }
 0x3ba   :  { %v4665_v25 = vpop.f32.mrf.mxu0 }
 0x3bb   :  { %v4241_v7 = vmax.f32 %v4212_v37, 0.0  ;;  %v4666_v3 = vadd.f32 %v4665_v25, %v4664_v60 }
 0x3bc   :  { %v4667_v45 = vpop.f32.mrf.mxu0 }
 0x3bd   :  { %4248 = vst [vmem:[#allocation19 + $0x8] sm:$0xff] %v4241_v7  ;;  %v4217_v14 = vadd.f32 %v4666_v3, %v4092_v52 }
 0x3be   :  { %v4668_v10 = vpop.f32.mrf.mxu0 }
 0x3bf   :  { %v4242_v42 = vmax.f32 %v4217_v14, 0.0  ;;  %v4669_v8 = vadd.f32 %v4668_v10, %v4667_v45 }
 0x3c0   :  { %v4670_v17 = vpop.f32.mrf.mxu0 }
 0x3c1   :  { %4249 = vst [vmem:[#allocation19 + $0x10] sm:$0xff] %v4242_v42  ;;  %v4222_v27 = vadd.f32 %v4669_v8, %v4097_v57 }
 0x3c2   :  { %v4671_v51 = vpop.f32.mrf.mxu0 }
 0x3c3   :  { %v4243_v53 = vmax.f32 %v4222_v27, 0.0  ;;  %v4672_v0 = vadd.f32 %v4671_v51, %v4670_v17 }
 0x3c4   :  { %v4673_v21 = vpop.f32.mrf.mxu0 }
 0x3c5   :  { %4250 = vst [vmem:[#allocation19 + $0x18] sm:$0xff] %v4243_v53  ;;  %v4227_v56 = vadd.f32 %v4672_v0, %v4102_v2 }
 0x3c6   :  { %v4674_v36 = vpop.f32.mrf.mxu0 }
 0x3c7   :  { %v4244_v16 = vmax.f32 %v4227_v56, 0.0  ;;  %v4675_v62 = vadd.f32 %v4674_v36, %v4673_v21 }
 0x3c8   :  { %v4676_v58 = vpop.f32.mrf.mxu0 }
 0x3c9   :  { %4251 = vst [vmem:[#allocation19 + $0x20] sm:$0xff] %v4244_v16  ;;  %v4232_v38 = vadd.f32 %v4675_v62, %v4107_v39 }
 0x3ca   :  { %v4677_v12 = vpop.f32.mrf.mxu0 }
 0x3cb   :  { %v4245_v61 = vmax.f32 %v4232_v38, 0.0  ;;  %v4678_v29 = vadd.f32 %v4677_v12, %v4676_v58 }
 0x3cd   :  { %4252 = vst [vmem:[#allocation19 + $0x28] sm:$0xff] %v4245_v61  ;;  %v4237_v23 = vadd.f32 %v4678_v29, %v4112_v49 }
 0x3cf   :  { %v4246_v48 = vmax.f32 %v4237_v23, 0.0 }
 0x3d1   :  { %4253 = vst [vmem:[#allocation19 + $0x30] sm:$0x3] %v4246_v48  ;;  %4688 = vmatprep.subr.msk.mxu1 %vm4136_vm0, %v4246_v48 }
 0x3d2   :  { %4689 = vmatpush3.msk.msra.mxu1 %vm4136_vm0, %v4246_v48 }
 0x3d3   :  { %4690 = vmatprep.subr.mxu1 %v4245_v61 }
 0x3d4   :  { %4691 = vmatpush3.msra.mxu1 %v4245_v61 }
 0x3d5   :  { %4692 = vmatprep.subr.mxu1 %v4244_v16 }
 0x3d6   :  { %4693 = vmatpush3.msra.mxu1 %v4244_v16 }
 0x3d7   :  { %4694 = vmatprep.subr.mxu1 %v4243_v53 }
 0x3d8   :  { %4695 = vmatpush3.msra.mxu1 %v4243_v53 }
 0x3d9   :  { %4696 = vmatprep.subr.mxu1 %v4242_v42 }
 0x3da   :  { %4697 = vmatpush3.msra.mxu1 %v4242_v42 }
 0x3db   :  { %4698 = vmatprep.subr.mxu1 %v4241_v7 }
 0x3dc   :  { %4699 = vmatpush3.msra.mxu1 %v4241_v7 }
 0x3dd   :  { %4700 = vmatprep.subr.mxu1 %v4240_v1 }
 0x3de   :  { %4701 = vmatpush3.msra.mxu1 %v4240_v1 }
 0x3df   :  { %4703 = vmatmul.mubr.msk.f32.vlgmr.msra.gmra.mxu1 %vm4268_vm2, %v4255_v40 }
 0x3e0   :  { %5003 = shalt.err (!%p5000_p9)
}
 0x3e1   :  { %4378 = dma.vmem_to_hbm [thread:$0]  %s4373_s0, 896, %s8275_s10, [#allocation20], %s5232_s2, %s5232_s2, %s5233_s21   ;;  %v4266_v54 = vpop.permute.xlu0 %4265  ;;  %v4261_v24 = vpop.permute.xlu1 %4260 }
 0x3e2   :  { %s5242_s7 = smov [#allocation18]  }
 0x3e3   :  { %s4360_s3 = sshll.u32 %s5242_s7, 4  ;;  %s4361_s3 = int_to_ptr.vmem [resolvable:$true] %s4360_s3 }
 0x3e4   :  { %s5012_s12 = scalar_lea.vmem %s4361_s3, 256  ;;  %p5017_p11 = scmp.lt.s32.totalorder %s4361_s3, %s4361_s3 }
 0x3e5   :  { %p5013_p10 = scmp.ne.s32.totalorder %s4361_s3, %s5012_s12  ;;  %p5018_p12 = scmp.lt.s32.totalorder %s5012_s12, %s5012_s12 }
 0x3e7   :  { %p5019_p13 = por %p5018_p12, %p5017_p11 }
 0x3e9   :  { %p5020_p0 = pnand %p5019_p13, %p5013_p10 }
 0x49f   :  { %v4704_v31 = vpop.f32.mrf.mxu1 }
 0x4a0   :  { %v4350_v13 = vadd.f32 %v4704_v31, %v4266_v54 }
 0x4a1   :  { %v4344_v33 = vpop.f32.mrf.mxu1 }
 0x4a2   :  { %4354 = vst [vmem:[#allocation18 + $0x8] sm:$0x3] %v4350_v13  ;;  %v4345_v32 = vadd.f32 %v4344_v33, %v4261_v24 }
 0x4a4   :  { %4353 = vst [vmem:[#allocation18] sm:$0xff] %v4345_v32 }
 0x4a5   :  { %5023 = shalt.err (!%p5020_p0)
}
 0x4a6   :  { %4366 = dma.vmem_to_hbm [thread:$0]  %s4361_s3, 256, %s8274_s9, [#allocation8], %s5232_s2, %s5232_s2, %s5233_s21  }
 0x4a7   :  { %5134 = dma.done.wait [#allocation8], 256  }
 0x4a8   :  { %5135 = vsyncadd [#allocation8], 4294967040 }
 0x4a9   :  { %5136 = dma.done.wait [#allocation20], 896  }
 0x4aa   :  { %5137 = vsyncadd [#allocation20], 4294966400 }
 0x4ab   :  { %4385 = vsyncpa [#allocation7], 1 }
 0x4ac   :  { %4386 = vsyncpa [#allocation17], 1 }
 0x4ad   :  { %4387 = vsyncpa [#allocation8], 1 }
 0x4ae   :  { %4388 = vsyncpa [#allocation20], 1 }
 0x4af   :  { %4389 = vsyncpa [#allocation9], 1 }
 0x4b0   :  { %4390 = vsyncpa [#allocation12], 1 }
 0x4b1   :  { %4391 = vsyncpa [#allocation15], 1 }

</bundles_post_ra>
